<compile_context>
chip_gen: v5e
topology: v5e:2x2
jax: 0.10.0
libtpu: 0.0.40
codegen_flags: <defaults>
</compile_context>

<pallas_src>
import functools

import jax
import jax.numpy as jnp
from jax.experimental import pallas as pl
from jax.experimental.pallas import tpu as pltpu

_INV_SQRT2 = 0.7071067811865476
_EPS = 1e-5

# Inter-layer activation / MXU-input dtype.  f32 accumulation + f32
# InstanceNorm/GELU happen inside the kernel regardless.
_ACT_DTYPE = jnp.bfloat16


def _round_up(n, m):
    return ((n + m - 1) // m) * m


def _erf(x):
    # Abramowitz & Stegun 7.1.26 polynomial, |err| < 1.5e-7 vs exact erf
    # (matches torch.nn.GELU(approximate='none') to f32 precision).  The exp
    # goes to the EUP slot; the polynomial is a handful of VALU FMAs.
    p = 0.3275911
    a1, a2, a3, a4, a5 = (0.254829592, -0.284496736, 1.421413741,
                          -1.453152027, 1.061405429)
    ax = jnp.abs(x)
    t = 1.0 / (1.0 + p * ax)
    poly = ((((a5 * t + a4) * t + a3) * t + a2) * t + a1) * t
    e = 1.0 - poly * jnp.exp(-ax * ax)
    return jnp.where(x >= 0, e, -e)       # erf is odd: select instead of sign*


def _conv_block_kernel(x_ref, w_ref, o_ref, xpad, patches, *, width, lead):
    """Fused 3x3 conv (single patch-stack matmul) + InstanceNorm + exact GELU.

    One grid step = one sample.  Transposed layout: channels on sublanes,
    flattened spatial on lanes (lane-dense output stores).
      x_ref   : (Cin, H*W)  bf16      unpadded flattened input plane
      w_ref   : (Cout, 9*Cin_pad) bf16  taps, K index = (3*ky+kx)*Cin_pad + c
      o_ref   : (Cout, H*W) bf16      lane-dense output
      xpad    : VMEM (Cin, lead+H*W+lead) f32   zero-padded plane (in-kernel)
      patches : VMEM (9*Cin_pad, H*W) f32       im2col patch stack, built once
    """
    W, P = width, lead
    cin, HW = x_ref.shape
    cin_pad = patches.shape[0] // 9

    # ---- in-kernel zero padding (replaces the wrapper-side jnp.pad) --------
    # Data element j lives at padded lane index P + j; P is a multiple of 128
    # so the interior write below is an unmasked lane-aligned store.
    xpad[...] = jnp.zeros_like(xpad)
    xpad[:, P:P + HW] = x_ref[...].astype(xpad.dtype)

    # ---- im2col patch stack, built once ------------------------------------
    # Zero the whole stack first: the K-padding rows (cin..cin_pad-1 of each
    # tap slab) must be finite zeros, not stale VMEM, even though their weight
    # columns are zero.
    patches[...] = jnp.zeros_like(patches)

    # Left/right boundary lane masks (flat-wrap correction), applied exactly
    # once per element while the stack is written.
    col = jax.lax.broadcasted_iota(jnp.int32, (1, HW), 1) % W
    not_left = col != 0          # kx == 0 taps
    not_right = col != (W - 1)   # kx == 2 taps

    base = P - (W + 1)
    for ky in range(3):
        for kx in range(3):
            off = base + ky * W + kx
            patch = xpad[:, off:off + HW]            # (Cin, HW) shifted view
            if kx == 0:
                patch = jnp.where(not_left, patch, jnp.zeros_like(patch))
            elif kx == 2:
                patch = jnp.where(not_right, patch, jnp.zeros_like(patch))
            t = 3 * ky + kx
            patches[t * cin_pad:t * cin_pad + cin, :] = patch

    # ---- single MXU matmul: (Cout, 9*Cin_pad) x (9*Cin_pad, HW) -> f32 -----
    acc = jnp.dot(w_ref[...],
                  patches[...].astype(w_ref.dtype),
                  preferred_element_type=jnp.float32)

    # ---- InstanceNorm2d(affine=False, eps=1e-5), two-pass variance in f32 --
    # (The conv bias is omitted entirely: this mean subtraction cancels it.)
    inv_hw = 1.0 / HW
    mean = jnp.sum(acc, axis=1, keepdims=True) * inv_hw
    centered = acc - mean
    var = jnp.sum(centered * centered, axis=1, keepdims=True) * inv_hw
    y = centered * jax.lax.rsqrt(var + _EPS)

    # ---- exact (erf-based) GELU, as in torch.nn.GELU(approximate='none') ---
    o_ref[...] = (0.5 * y * (1.0 + _erf(y * _INV_SQRT2))).astype(o_ref.dtype)


def conv_block(x, w):
    """x: (B, Cin, H, W); w: (Cout, Cin, 3, 3) f32 -> (B, Cout, H, W) bf16."""
    B, Cin, H, W = x.shape
    Cout = w.shape[0]
    HW = H * W
    P = _round_up(W + 1, 128)          # lane-aligned lead so the interior
    L = P + HW + P                     # write into the padded plane is aligned
    Cin_pad = _round_up(Cin, 8)        # sublane-aligned tap slabs in the stack

    xf = x.reshape(B, Cin, HW).astype(_ACT_DTYPE)

    # (Cout, Cin, 3, 3) -> (Cout, 9*Cin_pad) with K index = (3*ky+kx)*Cin_pad+c
    # (zero-padded channels), matching the in-kernel patch-stack order; cast to
    # bf16 once for the MXU.
    w_taps = jnp.transpose(w, (0, 2, 3, 1))                      # (Cout,3,3,Cin)
    w2 = jnp.zeros((Cout, 3, 3, Cin_pad), w.dtype).at[..., :Cin].set(w_taps)
    w2 = w2.reshape(Cout, 9 * Cin_pad).astype(_ACT_DTYPE)

    kernel = functools.partial(_conv_block_kernel, width=W, lead=P)
    out = pl.pallas_call(
        kernel,
        out_shape=jax.ShapeDtypeStruct((B, Cout, HW), _ACT_DTYPE),
        grid=(B,),
        in_specs=[
            pl.BlockSpec((None, Cin, HW), lambda i: (i, 0, 0)),
            pl.BlockSpec((Cout, 9 * Cin_pad), lambda i: (0, 0)),
        ],
        out_specs=pl.BlockSpec((None, Cout, HW), lambda i: (i, 0, 0)),
        scratch_shapes=[
            pltpu.VMEM((Cin, L), jnp.float32),           # padded plane
            pltpu.VMEM((9 * Cin_pad, HW), jnp.float32),  # im2col patch stack
        ],
        compiler_params=pltpu.CompilerParams(
            dimension_semantics=("parallel",),
            vmem_limit_bytes=48 * 1024 * 1024),
    )(xf, w2)
    return out.reshape(B, Cout, H, W)


def max_pool2(x):
    # MaxPool2d(kernel_size=2, stride=2) on NCHW (pure data movement).
    B, C, H, W = x.shape
    return x.reshape(B, C, H // 2, 2, W // 2, 2).max(axis=(3, 5))


def upsample_nearest2(x):
    # nn.Upsample(scale_factor=2, mode='nearest') on NCHW (pure data movement).
    return jnp.repeat(jnp.repeat(x, 2, axis=2), 2, axis=3)


def build_unet_params(key, in_features, nb_features=None, nb_convs_per_level=1,
                      half_resolution=False):
    """Mirrors UNet.__init__ channel bookkeeping; deterministic synthetic weights.

    Conv biases are intentionally not created: ConvBlock applies
    InstanceNorm2d(affine=False) right after the conv, which cancels any
    per-channel bias exactly, so it is mathematically dead work.
    """
    if nb_features is None:
        nb_features = [[16, 32, 32, 32], [32, 32, 32, 32, 32, 16, 16]]
    encoder_feats = list(nb_features[0])
    nb_decoder_convs = len(encoder_feats)
    additional_feats = list(nb_features[1][nb_decoder_convs:])
    decoder_feats = list(nb_features[1][:nb_decoder_convs])
    nb_levels = nb_decoder_convs // nb_convs_per_level + 1

    n_convs = len(encoder_feats) + len(nb_features[1])
    keys = iter(jax.random.split(key, n_convs + 4))

    def make_conv(cin, cout):
        # PyTorch weight layout (Cout, Cin, kh, kw).
        return 0.1 * jax.random.normal(next(keys), (cout, cin, 3, 3), jnp.float32)

    nb_feats_in = in_features
    nb_encoder_feats = [nb_feats_in]
    encoder = []
    for l0 in range(nb_levels - 1):
        convs = []
        for l1 in range(nb_convs_per_level):
            nb_feats_out = encoder_feats[l0 * nb_convs_per_level + l1]
            convs.append(make_conv(nb_feats_in, nb_feats_out))
            nb_feats_in = nb_feats_out
        nb_encoder_feats.append(nb_feats_in)
        encoder.append(convs)

    rev = nb_encoder_feats[::-1]
    decoder = []
    for l0 in range(nb_levels - 1):
        convs = []
        for l1 in range(nb_convs_per_level):
            nb_feats_out = decoder_feats[l0 * nb_convs_per_level + l1]
            convs.append(make_conv(nb_feats_in, nb_feats_out))
            nb_feats_in = nb_feats_out
        decoder.append(convs)
        if (not half_resolution) or l0 < nb_levels - 2:
            nb_feats_in = nb_feats_in + rev[l0]

    additional = []
    for f in additional_feats:
        additional.append(make_conv(nb_feats_in, f))
        nb_feats_in = f

    return dict(encoder=encoder, decoder=decoder, additional=additional,
                nb_levels=nb_levels, half_resolution=half_resolution,
                final_nb_feats=nb_feats_in)


def unet_forward(params, x_nchw):
    """Mirrors UNet.forward.  Activations stay NCHW end-to-end (the kernel's
    (C, H*W) compute layout is exactly flattened NCHW -> no transposes) and
    flow between layers in bf16; the final output is cast back to f32."""
    x = x_nchw
    history = [x]
    for level, convs in enumerate(params["encoder"]):
        for w in convs:
            x = conv_block(x, w)
        history.append(x)
        x = max_pool2(x)
    nb_levels = params["nb_levels"]
    for level, convs in enumerate(params["decoder"]):
        for w in convs:
            x = conv_block(x, w)
        if (not params["half_resolution"]) or level < nb_levels - 2:
            x = upsample_nearest2(x)
            x = jnp.concatenate([x, history.pop()], axis=1)  # channel concat
    for w in params["additional"]:
        x = conv_block(x, w)
    return x.astype(jnp.float32)


if __name__ == "__main__":
    key = jax.random.PRNGKey(0)
    k_x, k_p = jax.random.split(key)

    # Small config consistent with the module:
    #   in_shape=(16, 16), in_features=4, nb_dims=2,
    #   nb_features=[[8, 16], [16, 16, 8]], nb_convs_per_level=1, max_pool=2,
    #   activation='GELU', normalisation='Instance', upsample_mode='nearest'.
    B, C, H, W = 2, 4, 16, 16
    x = jax.random.normal(k_x, (B, C, H, W), jnp.float32)
    params = build_unet_params(k_p, in_features=C,
                               nb_features=[[8, 16], [16, 16, 8]],
                               nb_convs_per_level=1, half_resolution=False)

    fwd = jax.jit(functools.partial(unet_forward, params))
    out = fwd(x)
    out = jax.block_until_ready(out)

    assert out.shape == (B, params["final_nb_feats"], H, W), out.shape
    assert bool(jnp.all(jnp.isfinite(out)))
    print("KERNEL_OK")
</pallas_src>

<mosaic_0001>
module attributes {stable_mosaic.version = 11 : i64} {
  func.func @_conv_block_kernel(%arg0: i32, %arg1: memref<1x4x256xbf16, #tpu.memory_space<vmem>>, %arg2: memref<8x72xbf16, #tpu.memory_space<vmem>>, %arg3: memref<1x8x256xbf16, #tpu.memory_space<vmem>>, %arg4: memref<4x512xf32, #tpu.memory_space<vmem>>, %arg5: memref<72x256xf32, #tpu.memory_space<vmem>>) attributes {dimension_semantics = [#tpu.dimension_semantics<parallel>], iteration_bounds = array<i64: 2>, scalar_prefetch = 0 : i64, scratch_operands = 2 : i64, tpu.core_type = #tpu.core_type<tc>, window_params = [{transform_indices = @transform_0, window_bounds = array<i64: 1, 4, 256>}, {pipeline_mode = #tpu.pipeline_mode<synchronous>, transform_indices = @transform_1, window_bounds = array<i64: 8, 72>}, {transform_indices = @transform_2, window_bounds = array<i64: 1, 8, 256>}]} {
    %cst = arith.constant 0.000000e+00 : f32
    %0 = vector.broadcast %cst : f32 to vector<4x512xf32>
    %c0 = arith.constant 0 : index
    %c0_0 = arith.constant 0 : index
    %1 = vector.load %arg4[%c0, %c0_0] : memref<4x512xf32, #tpu.memory_space<vmem>>, vector<4x512xf32>
    tpu.vector_store %arg4[%c0, %c0_0], %0 {strides = array<i32>} : memref<4x512xf32, #tpu.memory_space<vmem>>, vector<4x512xf32>,
    %c0_1 = arith.constant 0 : index
    %c0_2 = arith.constant 0 : index
    %c0_3 = arith.constant 0 : index
    %2 = vector.load %arg1[%c0_1, %c0_2, %c0_3] : memref<1x4x256xbf16, #tpu.memory_space<vmem>>, vector<1x4x256xbf16>
    %3 = vector.shape_cast %2 : vector<1x4x256xbf16> to vector<4x256xbf16>
    %4 = arith.extf %3 : vector<4x256xbf16> to vector<4x256xf32>
    %c0_4 = arith.constant 0 : index
    %c128 = arith.constant 128 : index
    %5 = vector.load %arg4[%c0_4, %c128] : memref<4x512xf32, #tpu.memory_space<vmem>>, vector<4x256xf32>
    tpu.vector_store %arg4[%c0_4, %c128], %4 {strides = array<i32>} : memref<4x512xf32, #tpu.memory_space<vmem>>, vector<4x256xf32>,
    %cst_5 = arith.constant 0.000000e+00 : f32
    %6 = vector.broadcast %cst_5 : f32 to vector<72x256xf32>
    %c0_6 = arith.constant 0 : index
    %c0_7 = arith.constant 0 : index
    %7 = vector.load %arg5[%c0_6, %c0_7] : memref<72x256xf32, #tpu.memory_space<vmem>>, vector<72x256xf32>
    tpu.vector_store %arg5[%c0_6, %c0_7], %6 {strides = array<i32>} : memref<72x256xf32, #tpu.memory_space<vmem>>, vector<72x256xf32>,
    %8 = tpu.iota {dimensions = array<i32: 1>} : vector<1x256xi32>
    %c16_i32 = arith.constant 16 : i32
    %c0_i32 = arith.constant 0 : i32
    %9 = arith.cmpi eq, %c16_i32, %c0_i32 : i32
    %c1_i32 = arith.constant 1 : i32
    %10 = arith.select %9, %c1_i32, %c16_i32 : i32
    %11 = vector.broadcast %10 : i32 to vector<1x256xi32>
    %12 = arith.remsi %8, %11 : vector<1x256xi32>
    %c0_i32_8 = arith.constant 0 : i32
    %13 = vector.broadcast %c0_i32_8 : i32 to vector<1x256xi32>
    %14 = arith.cmpi ne, %12, %13 : vector<1x256xi32>
    %c0_i32_9 = arith.constant 0 : i32
    %15 = vector.broadcast %c0_i32_9 : i32 to vector<1x256xi32>
    %16 = arith.cmpi slt, %12, %15 : vector<1x256xi32>
    %c0_i32_10 = arith.constant 0 : i32
    %17 = arith.cmpi slt, %10, %c0_i32_10 : i32
    %18 = vector.broadcast %17 : i1 to vector<1x256xi1>
    %19 = vector.broadcast %18 : vector<1x256xi1> to vector<1x256xi1>
    %20 = arith.xori %16, %19 : vector<1x256xi1>
    %21 = arith.andi %20, %14 : vector<1x256xi1>
    %22 = vector.broadcast %10 : i32 to vector<1x256xi32>
    %23 = arith.addi %12, %22 : vector<1x256xi32>
    %24 = arith.select %21, %23, %12 : vector<1x256xi1>, vector<1x256xi32>
    %c0_i32_11 = arith.constant 0 : i32
    %25 = vector.broadcast %c0_i32_11 : i32 to vector<1x256xi32>
    %26 = arith.cmpi ne, %24, %25 : vector<1x256xi32>
    %c15_i32 = arith.constant 15 : i32
    %27 = vector.broadcast %c15_i32 : i32 to vector<1x256xi32>
    %28 = arith.cmpi ne, %24, %27 : vector<1x256xi32>
    %c0_12 = arith.constant 0 : index
    %c111 = arith.constant 111 : index
    %29 = vector.load %arg4[%c0_12, %c111] : memref<4x512xf32, #tpu.memory_space<vmem>>, vector<4x256xf32>
    %cst_13 = arith.constant 0.000000e+00 : f32
    %30 = vector.broadcast %cst_13 : f32 to vector<4x256xf32>
    %31 = vector.shape_cast %26 : vector<1x256xi1> to vector<1x256xi1>
    %32 = vector.broadcast %31 : vector<1x256xi1> to vector<4x256xi1>
    %33 = arith.select %32, %29, %30 : vector<4x256xi1>, vector<4x256xf32>
    %c0_14 = arith.constant 0 : index
    %c0_15 = arith.constant 0 : index
    %34 = vector.load %arg5[%c0_14, %c0_15] : memref<72x256xf32, #tpu.memory_space<vmem>>, vector<4x256xf32>
    tpu.vector_store %arg5[%c0_14, %c0_15], %33 {strides = array<i32>} : memref<72x256xf32, #tpu.memory_space<vmem>>, vector<4x256xf32>,
    %c0_16 = arith.constant 0 : index
    %c112 = arith.constant 112 : index
    %35 = vector.load %arg4[%c0_16, %c112] : memref<4x512xf32, #tpu.memory_space<vmem>>, vector<4x256xf32>
    %c8 = arith.constant 8 : index
    %c0_17 = arith.constant 0 : index
    %36 = vector.load %arg5[%c8, %c0_17] : memref<72x256xf32, #tpu.memory_space<vmem>>, vector<4x256xf32>
    tpu.vector_store %arg5[%c8, %c0_17], %35 {strides = array<i32>} : memref<72x256xf32, #tpu.memory_space<vmem>>, vector<4x256xf32>,
    %c0_18 = arith.constant 0 : index
    %c113 = arith.constant 113 : index
    %37 = vector.load %arg4[%c0_18, %c113] : memref<4x512xf32, #tpu.memory_space<vmem>>, vector<4x256xf32>
    %cst_19 = arith.constant 0.000000e+00 : f32
    %38 = vector.broadcast %cst_19 : f32 to vector<4x256xf32>
    %39 = vector.shape_cast %28 : vector<1x256xi1> to vector<1x256xi1>
    %40 = vector.broadcast %39 : vector<1x256xi1> to vector<4x256xi1>
    %41 = arith.select %40, %37, %38 : vector<4x256xi1>, vector<4x256xf32>
    %c16 = arith.constant 16 : index
    %c0_20 = arith.constant 0 : index
    %42 = vector.load %arg5[%c16, %c0_20] : memref<72x256xf32, #tpu.memory_space<vmem>>, vector<4x256xf32>
    tpu.vector_store %arg5[%c16, %c0_20], %41 {strides = array<i32>} : memref<72x256xf32, #tpu.memory_space<vmem>>, vector<4x256xf32>,
    %c0_21 = arith.constant 0 : index
    %c127 = arith.constant 127 : index
    %43 = vector.load %arg4[%c0_21, %c127] : memref<4x512xf32, #tpu.memory_space<vmem>>, vector<4x256xf32>
    %cst_22 = arith.constant 0.000000e+00 : f32
    %44 = vector.broadcast %cst_22 : f32 to vector<4x256xf32>
    %45 = vector.shape_cast %26 : vector<1x256xi1> to vector<1x256xi1>
    %46 = vector.broadcast %45 : vector<1x256xi1> to vector<4x256xi1>
    %47 = arith.select %46, %43, %44 : vector<4x256xi1>, vector<4x256xf32>
    %c24 = arith.constant 24 : index
    %c0_23 = arith.constant 0 : index
    %48 = vector.load %arg5[%c24, %c0_23] : memref<72x256xf32, #tpu.memory_space<vmem>>, vector<4x256xf32>
    tpu.vector_store %arg5[%c24, %c0_23], %47 {strides = array<i32>} : memref<72x256xf32, #tpu.memory_space<vmem>>, vector<4x256xf32>,
    %c0_24 = arith.constant 0 : index
    %c128_25 = arith.constant 128 : index
    %49 = vector.load %arg4[%c0_24, %c128_25] : memref<4x512xf32, #tpu.memory_space<vmem>>, vector<4x256xf32>
    %c32 = arith.constant 32 : index
    %c0_26 = arith.constant 0 : index
    %50 = vector.load %arg5[%c32, %c0_26] : memref<72x256xf32, #tpu.memory_space<vmem>>, vector<4x256xf32>
    tpu.vector_store %arg5[%c32, %c0_26], %49 {strides = array<i32>} : memref<72x256xf32, #tpu.memory_space<vmem>>, vector<4x256xf32>,
    %c0_27 = arith.constant 0 : index
    %c129 = arith.constant 129 : index
    %51 = vector.load %arg4[%c0_27, %c129] : memref<4x512xf32, #tpu.memory_space<vmem>>, vector<4x256xf32>
    %cst_28 = arith.constant 0.000000e+00 : f32
    %52 = vector.broadcast %cst_28 : f32 to vector<4x256xf32>
    %53 = vector.shape_cast %28 : vector<1x256xi1> to vector<1x256xi1>
    %54 = vector.broadcast %53 : vector<1x256xi1> to vector<4x256xi1>
    %55 = arith.select %54, %51, %52 : vector<4x256xi1>, vector<4x256xf32>
    %c40 = arith.constant 40 : index
    %c0_29 = arith.constant 0 : index
    %56 = vector.load %arg5[%c40, %c0_29] : memref<72x256xf32, #tpu.memory_space<vmem>>, vector<4x256xf32>
    tpu.vector_store %arg5[%c40, %c0_29], %55 {strides = array<i32>} : memref<72x256xf32, #tpu.memory_space<vmem>>, vector<4x256xf32>,
    %c0_30 = arith.constant 0 : index
    %c143 = arith.constant 143 : index
    %57 = vector.load %arg4[%c0_30, %c143] : memref<4x512xf32, #tpu.memory_space<vmem>>, vector<4x256xf32>
    %cst_31 = arith.constant 0.000000e+00 : f32
    %58 = vector.broadcast %cst_31 : f32 to vector<4x256xf32>
    %59 = vector.shape_cast %26 : vector<1x256xi1> to vector<1x256xi1>
    %60 = vector.broadcast %59 : vector<1x256xi1> to vector<4x256xi1>
    %61 = arith.select %60, %57, %58 : vector<4x256xi1>, vector<4x256xf32>
    %c48 = arith.constant 48 : index
    %c0_32 = arith.constant 0 : index
    %62 = vector.load %arg5[%c48, %c0_32] : memref<72x256xf32, #tpu.memory_space<vmem>>, vector<4x256xf32>
    tpu.vector_store %arg5[%c48, %c0_32], %61 {strides = array<i32>} : memref<72x256xf32, #tpu.memory_space<vmem>>, vector<4x256xf32>,
    %c0_33 = arith.constant 0 : index
    %c144 = arith.constant 144 : index
    %63 = vector.load %arg4[%c0_33, %c144] : memref<4x512xf32, #tpu.memory_space<vmem>>, vector<4x256xf32>
    %c56 = arith.constant 56 : index
    %c0_34 = arith.constant 0 : index
    %64 = vector.load %arg5[%c56, %c0_34] : memref<72x256xf32, #tpu.memory_space<vmem>>, vector<4x256xf32>
    tpu.vector_store %arg5[%c56, %c0_34], %63 {strides = array<i32>} : memref<72x256xf32, #tpu.memory_space<vmem>>, vector<4x256xf32>,
    %c0_35 = arith.constant 0 : index
    %c145 = arith.constant 145 : index
    %65 = vector.load %arg4[%c0_35, %c145] : memref<4x512xf32, #tpu.memory_space<vmem>>, vector<4x256xf32>
    %cst_36 = arith.constant 0.000000e+00 : f32
    %66 = vector.broadcast %cst_36 : f32 to vector<4x256xf32>
    %67 = vector.shape_cast %28 : vector<1x256xi1> to vector<1x256xi1>
    %68 = vector.broadcast %67 : vector<1x256xi1> to vector<4x256xi1>
    %69 = arith.select %68, %65, %66 : vector<4x256xi1>, vector<4x256xf32>
    %c64 = arith.constant 64 : index
    %c0_37 = arith.constant 0 : index
    %70 = vector.load %arg5[%c64, %c0_37] : memref<72x256xf32, #tpu.memory_space<vmem>>, vector<4x256xf32>
    tpu.vector_store %arg5[%c64, %c0_37], %69 {strides = array<i32>} : memref<72x256xf32, #tpu.memory_space<vmem>>, vector<4x256xf32>,
    %c0_38 = arith.constant 0 : index
    %c0_39 = arith.constant 0 : index
    %71 = vector.load %arg2[%c0_38, %c0_39] : memref<8x72xbf16, #tpu.memory_space<vmem>>, vector<8x72xbf16>
    %c0_40 = arith.constant 0 : index
    %c0_41 = arith.constant 0 : index
    %72 = vector.load %arg5[%c0_40, %c0_41] : memref<72x256xf32, #tpu.memory_space<vmem>>, vector<72x256xf32>
    %73 = arith.truncf %72 : vector<72x256xf32> to vector<72x256xbf16>
    %cst_42 = arith.constant dense<0.000000e+00> : vector<8x256xf32>
    %74 = tpu.matmul %71, %73, %cst_42 {dimension_numbers = #tpu.dot_dimension_numbers<[1], [0], [0], [1], [0, 0, 1, 1], [], []>} : vector<8x72xbf16>, vector<72x256xbf16>, vector<8x256xf32> -> vector<8x256xf32>
    %cst_43 = arith.constant dense<0.000000e+00> : vector<8xf32>
    %75 = vector.multi_reduction <add>, %74, %cst_43 [1] : vector<8x256xf32> to vector<8xf32>
    %76 = vector.shape_cast %75 : vector<8xf32> to vector<8x1xf32>
    %cst_44 = arith.constant 3.906250e-03 : f32
    %77 = vector.broadcast %cst_44 : f32 to vector<8x1xf32>
    %78 = arith.mulf %76, %77 : vector<8x1xf32>
    %79 = vector.broadcast %78 : vector<8x1xf32> to vector<8x256xf32>
    %80 = arith.subf %74, %79 : vector<8x256xf32>
    %81 = arith.mulf %80, %80 : vector<8x256xf32>
    %cst_45 = arith.constant dense<0.000000e+00> : vector<8xf32>
    %82 = vector.multi_reduction <add>, %81, %cst_45 [1] : vector<8x256xf32> to vector<8xf32>
    %83 = vector.shape_cast %82 : vector<8xf32> to vector<8x1xf32>
    %cst_46 = arith.constant 3.906250e-03 : f32
    %84 = vector.broadcast %cst_46 : f32 to vector<8x1xf32>
    %85 = arith.mulf %83, %84 : vector<8x1xf32>
    %cst_47 = arith.constant 9.99999974E-6 : f32
    %86 = vector.broadcast %cst_47 : f32 to vector<8x1xf32>
    %87 = arith.addf %85, %86 : vector<8x1xf32>
    %88 = math.rsqrt %87 : vector<8x1xf32>
    %89 = vector.broadcast %88 : vector<8x1xf32> to vector<8x256xf32>
    %90 = arith.mulf %80, %89 : vector<8x256xf32>
    %cst_48 = arith.constant 5.000000e-01 : f32
    %91 = vector.broadcast %cst_48 : f32 to vector<8x256xf32>
    %92 = arith.mulf %91, %90 : vector<8x256xf32>
    %cst_49 = arith.constant 0.707106769 : f32
    %93 = vector.broadcast %cst_49 : f32 to vector<8x256xf32>
    %94 = arith.mulf %90, %93 : vector<8x256xf32>
    %95 = math.absf %94 : vector<8x256xf32>
    %cst_50 = arith.constant 0.327591091 : f32
    %96 = vector.broadcast %cst_50 : f32 to vector<8x256xf32>
    %97 = arith.mulf %96, %95 : vector<8x256xf32>
    %cst_51 = arith.constant 1.000000e+00 : f32
    %98 = vector.broadcast %cst_51 : f32 to vector<8x256xf32>
    %99 = arith.addf %98, %97 : vector<8x256xf32>
    %cst_52 = arith.constant 1.000000e+00 : f32
    %100 = vector.broadcast %cst_52 : f32 to vector<8x256xf32>
    %101 = arith.divf %100, %99 : vector<8x256xf32>
    %cst_53 = arith.constant 1.06140542 : f32
    %102 = vector.broadcast %cst_53 : f32 to vector<8x256xf32>
    %103 = arith.mulf %102, %101 : vector<8x256xf32>
    %cst_54 = arith.constant -1.45315206 : f32
    %104 = vector.broadcast %cst_54 : f32 to vector<8x256xf32>
    %105 = arith.addf %103, %104 : vector<8x256xf32>
    %106 = arith.mulf %105, %101 : vector<8x256xf32>
    %cst_55 = arith.constant 1.42141378 : f32
    %107 = vector.broadcast %cst_55 : f32 to vector<8x256xf32>
    %108 = arith.addf %106, %107 : vector<8x256xf32>
    %109 = arith.mulf %108, %101 : vector<8x256xf32>
    %cst_56 = arith.constant -0.284496725 : f32
    %110 = vector.broadcast %cst_56 : f32 to vector<8x256xf32>
    %111 = arith.addf %109, %110 : vector<8x256xf32>
    %112 = arith.mulf %111, %101 : vector<8x256xf32>
    %cst_57 = arith.constant 0.254829586 : f32
    %113 = vector.broadcast %cst_57 : f32 to vector<8x256xf32>
    %114 = arith.addf %112, %113 : vector<8x256xf32>
    %115 = arith.mulf %114, %101 : vector<8x256xf32>
    %cst_58 = arith.constant 0.000000e+00 : f32
    %116 = vector.broadcast %cst_58 : f32 to vector<8x256xf32>
    %117 = arith.subf %116, %95 : vector<8x256xf32>
    %118 = arith.mulf %117, %95 : vector<8x256xf32>
    %119 = math.exp %118 : vector<8x256xf32>
    %120 = arith.mulf %115, %119 : vector<8x256xf32>
    %cst_59 = arith.constant 1.000000e+00 : f32
    %121 = vector.broadcast %cst_59 : f32 to vector<8x256xf32>
    %122 = arith.subf %121, %120 : vector<8x256xf32>
    %cst_60 = arith.constant 0.000000e+00 : f32
    %123 = vector.broadcast %cst_60 : f32 to vector<8x256xf32>
    %124 = arith.cmpf oge, %94, %123 : vector<8x256xf32>
    %cst_61 = arith.constant 0.000000e+00 : f32
    %125 = vector.broadcast %cst_61 : f32 to vector<8x256xf32>
    %126 = arith.subf %125, %122 : vector<8x256xf32>
    %127 = arith.select %124, %122, %126 : vector<8x256xi1>, vector<8x256xf32>
    %cst_62 = arith.constant 1.000000e+00 : f32
    %128 = vector.broadcast %cst_62 : f32 to vector<8x256xf32>
    %129 = arith.addf %128, %127 : vector<8x256xf32>
    %130 = arith.mulf %92, %129 : vector<8x256xf32>
    %131 = arith.truncf %130 : vector<8x256xf32> to vector<8x256xbf16>
    %c0_63 = arith.constant 0 : index
    %c0_64 = arith.constant 0 : index
    %c0_65 = arith.constant 0 : index
    %132 = vector.load %arg3[%c0_63, %c0_64, %c0_65] : memref<1x8x256xbf16, #tpu.memory_space<vmem>>, vector<1x8x256xbf16>
    %133 = vector.shape_cast %132 : vector<1x8x256xbf16> to vector<8x256xbf16>
    %134 = vector.shape_cast %131 : vector<8x256xbf16> to vector<1x8x256xbf16>
    tpu.vector_store %arg3[%c0_63, %c0_64, %c0_65], %134 {strides = array<i32>} : memref<1x8x256xbf16, #tpu.memory_space<vmem>>, vector<1x8x256xbf16>,
    return
  }
  func.func @transform_0(%arg0: i32) -> (i32, i32, i32) {
    %c0_i32 = arith.constant 0 : i32
    %c0_i32_0 = arith.constant 0 : i32
    %c0_i32_1 = arith.constant 0 : i32
    return %arg0, %c0_i32, %c0_i32_0 : i32, i32, i32
  }
  func.func @transform_1(%arg0: i32) -> (i32, i32) {
    %c0_i32 = arith.constant 0 : i32
    %c0_i32_0 = arith.constant 0 : i32
    %c0_i32_1 = arith.constant 0 : i32
    return %c0_i32, %c0_i32_0 : i32, i32
  }
  func.func @transform_2(%arg0: i32) -> (i32, i32, i32) {
    %c0_i32 = arith.constant 0 : i32
    %c0_i32_0 = arith.constant 0 : i32
    %c0_i32_1 = arith.constant 0 : i32
    return %arg0, %c0_i32, %c0_i32_0 : i32, i32, i32
  }
}

module attributes {stable_mosaic.version = 11 : i64} {
  func.func @_conv_block_kernel(%arg0: i32, %arg1: memref<1x8x64xbf16, #tpu.memory_space<vmem>>, %arg2: memref<16x72xbf16, #tpu.memory_space<vmem>>, %arg3: memref<1x16x64xbf16, #tpu.memory_space<vmem>>, %arg4: memref<8x320xf32, #tpu.memory_space<vmem>>, %arg5: memref<72x64xf32, #tpu.memory_space<vmem>>) attributes {dimension_semantics = [#tpu.dimension_semantics<parallel>], iteration_bounds = array<i64: 2>, scalar_prefetch = 0 : i64, scratch_operands = 2 : i64, tpu.core_type = #tpu.core_type<tc>, window_params = [{transform_indices = @transform_0, window_bounds = array<i64: 1, 8, 64>}, {pipeline_mode = #tpu.pipeline_mode<synchronous>, transform_indices = @transform_1, window_bounds = array<i64: 16, 72>}, {transform_indices = @transform_2, window_bounds = array<i64: 1, 16, 64>}]} {
    %cst = arith.constant 0.000000e+00 : f32
    %0 = vector.broadcast %cst : f32 to vector<8x320xf32>
    %c0 = arith.constant 0 : index
    %c0_0 = arith.constant 0 : index
    %1 = vector.load %arg4[%c0, %c0_0] : memref<8x320xf32, #tpu.memory_space<vmem>>, vector<8x320xf32>
    tpu.vector_store %arg4[%c0, %c0_0], %0 {strides = array<i32>} : memref<8x320xf32, #tpu.memory_space<vmem>>, vector<8x320xf32>,
    %c0_1 = arith.constant 0 : index
    %c0_2 = arith.constant 0 : index
    %c0_3 = arith.constant 0 : index
    %2 = vector.load %arg1[%c0_1, %c0_2, %c0_3] : memref<1x8x64xbf16, #tpu.memory_space<vmem>>, vector<1x8x64xbf16>
    %3 = vector.shape_cast %2 : vector<1x8x64xbf16> to vector<8x64xbf16>
    %4 = arith.extf %3 : vector<8x64xbf16> to vector<8x64xf32>
    %c0_4 = arith.constant 0 : index
    %c128 = arith.constant 128 : index
    %5 = vector.load %arg4[%c0_4, %c128] : memref<8x320xf32, #tpu.memory_space<vmem>>, vector<8x64xf32>
    tpu.vector_store %arg4[%c0_4, %c128], %4 {strides = array<i32>} : memref<8x320xf32, #tpu.memory_space<vmem>>, vector<8x64xf32>,
    %cst_5 = arith.constant 0.000000e+00 : f32
    %6 = vector.broadcast %cst_5 : f32 to vector<72x64xf32>
    %c0_6 = arith.constant 0 : index
    %c0_7 = arith.constant 0 : index
    %7 = vector.load %arg5[%c0_6, %c0_7] : memref<72x64xf32, #tpu.memory_space<vmem>>, vector<72x64xf32>
    tpu.vector_store %arg5[%c0_6, %c0_7], %6 {strides = array<i32>} : memref<72x64xf32, #tpu.memory_space<vmem>>, vector<72x64xf32>,
    %8 = tpu.iota {dimensions = array<i32: 1>} : vector<1x64xi32>
    %c8_i32 = arith.constant 8 : i32
    %c0_i32 = arith.constant 0 : i32
    %9 = arith.cmpi eq, %c8_i32, %c0_i32 : i32
    %c1_i32 = arith.constant 1 : i32
    %10 = arith.select %9, %c1_i32, %c8_i32 : i32
    %11 = vector.broadcast %10 : i32 to vector<1x64xi32>
    %12 = arith.remsi %8, %11 : vector<1x64xi32>
    %c0_i32_8 = arith.constant 0 : i32
    %13 = vector.broadcast %c0_i32_8 : i32 to vector<1x64xi32>
    %14 = arith.cmpi ne, %12, %13 : vector<1x64xi32>
    %c0_i32_9 = arith.constant 0 : i32
    %15 = vector.broadcast %c0_i32_9 : i32 to vector<1x64xi32>
    %16 = arith.cmpi slt, %12, %15 : vector<1x64xi32>
    %c0_i32_10 = arith.constant 0 : i32
    %17 = arith.cmpi slt, %10, %c0_i32_10 : i32
    %18 = vector.broadcast %17 : i1 to vector<1x64xi1>
    %19 = vector.broadcast %18 : vector<1x64xi1> to vector<1x64xi1>
    %20 = arith.xori %16, %19 : vector<1x64xi1>
    %21 = arith.andi %20, %14 : vector<1x64xi1>
    %22 = vector.broadcast %10 : i32 to vector<1x64xi32>
    %23 = arith.addi %12, %22 : vector<1x64xi32>
    %24 = arith.select %21, %23, %12 : vector<1x64xi1>, vector<1x64xi32>
    %c0_i32_11 = arith.constant 0 : i32
    %25 = vector.broadcast %c0_i32_11 : i32 to vector<1x64xi32>
    %26 = arith.cmpi ne, %24, %25 : vector<1x64xi32>
    %c7_i32 = arith.constant 7 : i32
    %27 = vector.broadcast %c7_i32 : i32 to vector<1x64xi32>
    %28 = arith.cmpi ne, %24, %27 : vector<1x64xi32>
    %c0_12 = arith.constant 0 : index
    %c119 = arith.constant 119 : index
    %29 = vector.load %arg4[%c0_12, %c119] : memref<8x320xf32, #tpu.memory_space<vmem>>, vector<8x64xf32>
    %cst_13 = arith.constant 0.000000e+00 : f32
    %30 = vector.broadcast %cst_13 : f32 to vector<8x64xf32>
    %31 = vector.shape_cast %26 : vector<1x64xi1> to vector<1x64xi1>
    %32 = vector.broadcast %31 : vector<1x64xi1> to vector<8x64xi1>
    %33 = arith.select %32, %29, %30 : vector<8x64xi1>, vector<8x64xf32>
    %c0_14 = arith.constant 0 : index
    %c0_15 = arith.constant 0 : index
    %34 = vector.load %arg5[%c0_14, %c0_15] : memref<72x64xf32, #tpu.memory_space<vmem>>, vector<8x64xf32>
    tpu.vector_store %arg5[%c0_14, %c0_15], %33 {strides = array<i32>} : memref<72x64xf32, #tpu.memory_space<vmem>>, vector<8x64xf32>,
    %c0_16 = arith.constant 0 : index
    %c120 = arith.constant 120 : index
    %35 = vector.load %arg4[%c0_16, %c120] : memref<8x320xf32, #tpu.memory_space<vmem>>, vector<8x64xf32>
    %c8 = arith.constant 8 : index
    %c0_17 = arith.constant 0 : index
    %36 = vector.load %arg5[%c8, %c0_17] : memref<72x64xf32, #tpu.memory_space<vmem>>, vector<8x64xf32>
    tpu.vector_store %arg5[%c8, %c0_17], %35 {strides = array<i32>} : memref<72x64xf32, #tpu.memory_space<vmem>>, vector<8x64xf32>,
    %c0_18 = arith.constant 0 : index
    %c121 = arith.constant 121 : index
    %37 = vector.load %arg4[%c0_18, %c121] : memref<8x320xf32, #tpu.memory_space<vmem>>, vector<8x64xf32>
    %cst_19 = arith.constant 0.000000e+00 : f32
    %38 = vector.broadcast %cst_19 : f32 to vector<8x64xf32>
    %39 = vector.shape_cast %28 : vector<1x64xi1> to vector<1x64xi1>
    %40 = vector.broadcast %39 : vector<1x64xi1> to vector<8x64xi1>
    %41 = arith.select %40, %37, %38 : vector<8x64xi1>, vector<8x64xf32>
    %c16 = arith.constant 16 : index
    %c0_20 = arith.constant 0 : index
    %42 = vector.load %arg5[%c16, %c0_20] : memref<72x64xf32, #tpu.memory_space<vmem>>, vector<8x64xf32>
    tpu.vector_store %arg5[%c16, %c0_20], %41 {strides = array<i32>} : memref<72x64xf32, #tpu.memory_space<vmem>>, vector<8x64xf32>,
    %c0_21 = arith.constant 0 : index
    %c127 = arith.constant 127 : index
    %43 = vector.load %arg4[%c0_21, %c127] : memref<8x320xf32, #tpu.memory_space<vmem>>, vector<8x64xf32>
    %cst_22 = arith.constant 0.000000e+00 : f32
    %44 = vector.broadcast %cst_22 : f32 to vector<8x64xf32>
    %45 = vector.shape_cast %26 : vector<1x64xi1> to vector<1x64xi1>
    %46 = vector.broadcast %45 : vector<1x64xi1> to vector<8x64xi1>
    %47 = arith.select %46, %43, %44 : vector<8x64xi1>, vector<8x64xf32>
    %c24 = arith.constant 24 : index
    %c0_23 = arith.constant 0 : index
    %48 = vector.load %arg5[%c24, %c0_23] : memref<72x64xf32, #tpu.memory_space<vmem>>, vector<8x64xf32>
    tpu.vector_store %arg5[%c24, %c0_23], %47 {strides = array<i32>} : memref<72x64xf32, #tpu.memory_space<vmem>>, vector<8x64xf32>,
    %c0_24 = arith.constant 0 : index
    %c128_25 = arith.constant 128 : index
    %49 = vector.load %arg4[%c0_24, %c128_25] : memref<8x320xf32, #tpu.memory_space<vmem>>, vector<8x64xf32>
    %c32 = arith.constant 32 : index
    %c0_26 = arith.constant 0 : index
    %50 = vector.load %arg5[%c32, %c0_26] : memref<72x64xf32, #tpu.memory_space<vmem>>, vector<8x64xf32>
    tpu.vector_store %arg5[%c32, %c0_26], %49 {strides = array<i32>} : memref<72x64xf32, #tpu.memory_space<vmem>>, vector<8x64xf32>,
    %c0_27 = arith.constant 0 : index
    %c129 = arith.constant 129 : index
    %51 = vector.load %arg4[%c0_27, %c129] : memref<8x320xf32, #tpu.memory_space<vmem>>, vector<8x64xf32>
    %cst_28 = arith.constant 0.000000e+00 : f32
    %52 = vector.broadcast %cst_28 : f32 to vector<8x64xf32>
    %53 = vector.shape_cast %28 : vector<1x64xi1> to vector<1x64xi1>
    %54 = vector.broadcast %53 : vector<1x64xi1> to vector<8x64xi1>
    %55 = arith.select %54, %51, %52 : vector<8x64xi1>, vector<8x64xf32>
    %c40 = arith.constant 40 : index
    %c0_29 = arith.constant 0 : index
    %56 = vector.load %arg5[%c40, %c0_29] : memref<72x64xf32, #tpu.memory_space<vmem>>, vector<8x64xf32>
    tpu.vector_store %arg5[%c40, %c0_29], %55 {strides = array<i32>} : memref<72x64xf32, #tpu.memory_space<vmem>>, vector<8x64xf32>,
    %c0_30 = arith.constant 0 : index
    %c135 = arith.constant 135 : index
    %57 = vector.load %arg4[%c0_30, %c135] : memref<8x320xf32, #tpu.memory_space<vmem>>, vector<8x64xf32>
    %cst_31 = arith.constant 0.000000e+00 : f32
    %58 = vector.broadcast %cst_31 : f32 to vector<8x64xf32>
    %59 = vector.shape_cast %26 : vector<1x64xi1> to vector<1x64xi1>
    %60 = vector.broadcast %59 : vector<1x64xi1> to vector<8x64xi1>
    %61 = arith.select %60, %57, %58 : vector<8x64xi1>, vector<8x64xf32>
    %c48 = arith.constant 48 : index
    %c0_32 = arith.constant 0 : index
    %62 = vector.load %arg5[%c48, %c0_32] : memref<72x64xf32, #tpu.memory_space<vmem>>, vector<8x64xf32>
    tpu.vector_store %arg5[%c48, %c0_32], %61 {strides = array<i32>} : memref<72x64xf32, #tpu.memory_space<vmem>>, vector<8x64xf32>,
    %c0_33 = arith.constant 0 : index
    %c136 = arith.constant 136 : index
    %63 = vector.load %arg4[%c0_33, %c136] : memref<8x320xf32, #tpu.memory_space<vmem>>, vector<8x64xf32>
    %c56 = arith.constant 56 : index
    %c0_34 = arith.constant 0 : index
    %64 = vector.load %arg5[%c56, %c0_34] : memref<72x64xf32, #tpu.memory_space<vmem>>, vector<8x64xf32>
    tpu.vector_store %arg5[%c56, %c0_34], %63 {strides = array<i32>} : memref<72x64xf32, #tpu.memory_space<vmem>>, vector<8x64xf32>,
    %c0_35 = arith.constant 0 : index
    %c137 = arith.constant 137 : index
    %65 = vector.load %arg4[%c0_35, %c137] : memref<8x320xf32, #tpu.memory_space<vmem>>, vector<8x64xf32>
    %cst_36 = arith.constant 0.000000e+00 : f32
    %66 = vector.broadcast %cst_36 : f32 to vector<8x64xf32>
    %67 = vector.shape_cast %28 : vector<1x64xi1> to vector<1x64xi1>
    %68 = vector.broadcast %67 : vector<1x64xi1> to vector<8x64xi1>
    %69 = arith.select %68, %65, %66 : vector<8x64xi1>, vector<8x64xf32>
    %c64 = arith.constant 64 : index
    %c0_37 = arith.constant 0 : index
    %70 = vector.load %arg5[%c64, %c0_37] : memref<72x64xf32, #tpu.memory_space<vmem>>, vector<8x64xf32>
    tpu.vector_store %arg5[%c64, %c0_37], %69 {strides = array<i32>} : memref<72x64xf32, #tpu.memory_space<vmem>>, vector<8x64xf32>,
    %c0_38 = arith.constant 0 : index
    %c0_39 = arith.constant 0 : index
    %71 = vector.load %arg2[%c0_38, %c0_39] : memref<16x72xbf16, #tpu.memory_space<vmem>>, vector<16x72xbf16>
    %c0_40 = arith.constant 0 : index
    %c0_41 = arith.constant 0 : index
    %72 = vector.load %arg5[%c0_40, %c0_41] : memref<72x64xf32, #tpu.memory_space<vmem>>, vector<72x64xf32>
    %73 = arith.truncf %72 : vector<72x64xf32> to vector<72x64xbf16>
    %cst_42 = arith.constant dense<0.000000e+00> : vector<16x64xf32>
    %74 = tpu.matmul %71, %73, %cst_42 {dimension_numbers = #tpu.dot_dimension_numbers<[1], [0], [0], [1], [0, 0, 1, 1], [], []>} : vector<16x72xbf16>, vector<72x64xbf16>, vector<16x64xf32> -> vector<16x64xf32>
    %cst_43 = arith.constant dense<0.000000e+00> : vector<16xf32>
    %75 = vector.multi_reduction <add>, %74, %cst_43 [1] : vector<16x64xf32> to vector<16xf32>
    %76 = vector.shape_cast %75 : vector<16xf32> to vector<16x1xf32>
    %cst_44 = arith.constant 1.562500e-02 : f32
    %77 = vector.broadcast %cst_44 : f32 to vector<16x1xf32>
    %78 = arith.mulf %76, %77 : vector<16x1xf32>
    %79 = vector.broadcast %78 : vector<16x1xf32> to vector<16x64xf32>
    %80 = arith.subf %74, %79 : vector<16x64xf32>
    %81 = arith.mulf %80, %80 : vector<16x64xf32>
    %cst_45 = arith.constant dense<0.000000e+00> : vector<16xf32>
    %82 = vector.multi_reduction <add>, %81, %cst_45 [1] : vector<16x64xf32> to vector<16xf32>
    %83 = vector.shape_cast %82 : vector<16xf32> to vector<16x1xf32>
    %cst_46 = arith.constant 1.562500e-02 : f32
    %84 = vector.broadcast %cst_46 : f32 to vector<16x1xf32>
    %85 = arith.mulf %83, %84 : vector<16x1xf32>
    %cst_47 = arith.constant 9.99999974E-6 : f32
    %86 = vector.broadcast %cst_47 : f32 to vector<16x1xf32>
    %87 = arith.addf %85, %86 : vector<16x1xf32>
    %88 = math.rsqrt %87 : vector<16x1xf32>
    %89 = vector.broadcast %88 : vector<16x1xf32> to vector<16x64xf32>
    %90 = arith.mulf %80, %89 : vector<16x64xf32>
    %cst_48 = arith.constant 5.000000e-01 : f32
    %91 = vector.broadcast %cst_48 : f32 to vector<16x64xf32>
    %92 = arith.mulf %91, %90 : vector<16x64xf32>
    %cst_49 = arith.constant 0.707106769 : f32
    %93 = vector.broadcast %cst_49 : f32 to vector<16x64xf32>
    %94 = arith.mulf %90, %93 : vector<16x64xf32>
    %95 = math.absf %94 : vector<16x64xf32>
    %cst_50 = arith.constant 0.327591091 : f32
    %96 = vector.broadcast %cst_50 : f32 to vector<16x64xf32>
    %97 = arith.mulf %96, %95 : vector<16x64xf32>
    %cst_51 = arith.constant 1.000000e+00 : f32
    %98 = vector.broadcast %cst_51 : f32 to vector<16x64xf32>
    %99 = arith.addf %98, %97 : vector<16x64xf32>
    %cst_52 = arith.constant 1.000000e+00 : f32
    %100 = vector.broadcast %cst_52 : f32 to vector<16x64xf32>
    %101 = arith.divf %100, %99 : vector<16x64xf32>
    %cst_53 = arith.constant 1.06140542 : f32
    %102 = vector.broadcast %cst_53 : f32 to vector<16x64xf32>
    %103 = arith.mulf %102, %101 : vector<16x64xf32>
    %cst_54 = arith.constant -1.45315206 : f32
    %104 = vector.broadcast %cst_54 : f32 to vector<16x64xf32>
    %105 = arith.addf %103, %104 : vector<16x64xf32>
    %106 = arith.mulf %105, %101 : vector<16x64xf32>
    %cst_55 = arith.constant 1.42141378 : f32
    %107 = vector.broadcast %cst_55 : f32 to vector<16x64xf32>
    %108 = arith.addf %106, %107 : vector<16x64xf32>
    %109 = arith.mulf %108, %101 : vector<16x64xf32>
    %cst_56 = arith.constant -0.284496725 : f32
    %110 = vector.broadcast %cst_56 : f32 to vector<16x64xf32>
    %111 = arith.addf %109, %110 : vector<16x64xf32>
    %112 = arith.mulf %111, %101 : vector<16x64xf32>
    %cst_57 = arith.constant 0.254829586 : f32
    %113 = vector.broadcast %cst_57 : f32 to vector<16x64xf32>
    %114 = arith.addf %112, %113 : vector<16x64xf32>
    %115 = arith.mulf %114, %101 : vector<16x64xf32>
    %cst_58 = arith.constant 0.000000e+00 : f32
    %116 = vector.broadcast %cst_58 : f32 to vector<16x64xf32>
    %117 = arith.subf %116, %95 : vector<16x64xf32>
    %118 = arith.mulf %117, %95 : vector<16x64xf32>
    %119 = math.exp %118 : vector<16x64xf32>
    %120 = arith.mulf %115, %119 : vector<16x64xf32>
    %cst_59 = arith.constant 1.000000e+00 : f32
    %121 = vector.broadcast %cst_59 : f32 to vector<16x64xf32>
    %122 = arith.subf %121, %120 : vector<16x64xf32>
    %cst_60 = arith.constant 0.000000e+00 : f32
    %123 = vector.broadcast %cst_60 : f32 to vector<16x64xf32>
    %124 = arith.cmpf oge, %94, %123 : vector<16x64xf32>
    %cst_61 = arith.constant 0.000000e+00 : f32
    %125 = vector.broadcast %cst_61 : f32 to vector<16x64xf32>
    %126 = arith.subf %125, %122 : vector<16x64xf32>
    %127 = arith.select %124, %122, %126 : vector<16x64xi1>, vector<16x64xf32>
    %cst_62 = arith.constant 1.000000e+00 : f32
    %128 = vector.broadcast %cst_62 : f32 to vector<16x64xf32>
    %129 = arith.addf %128, %127 : vector<16x64xf32>
    %130 = arith.mulf %92, %129 : vector<16x64xf32>
    %131 = arith.truncf %130 : vector<16x64xf32> to vector<16x64xbf16>
    %c0_63 = arith.constant 0 : index
    %c0_64 = arith.constant 0 : index
    %c0_65 = arith.constant 0 : index
    %132 = vector.load %arg3[%c0_63, %c0_64, %c0_65] : memref<1x16x64xbf16, #tpu.memory_space<vmem>>, vector<1x16x64xbf16>
    %133 = vector.shape_cast %132 : vector<1x16x64xbf16> to vector<16x64xbf16>
    %134 = vector.shape_cast %131 : vector<16x64xbf16> to vector<1x16x64xbf16>
    tpu.vector_store %arg3[%c0_63, %c0_64, %c0_65], %134 {strides = array<i32>} : memref<1x16x64xbf16, #tpu.memory_space<vmem>>, vector<1x16x64xbf16>,
    return
  }
  func.func @transform_0(%arg0: i32) -> (i32, i32, i32) {
    %c0_i32 = arith.constant 0 : i32
    %c0_i32_0 = arith.constant 0 : i32
    %c0_i32_1 = arith.constant 0 : i32
    return %arg0, %c0_i32, %c0_i32_0 : i32, i32, i32
  }
  func.func @transform_1(%arg0: i32) -> (i32, i32) {
    %c0_i32 = arith.constant 0 : i32
    %c0_i32_0 = arith.constant 0 : i32
    %c0_i32_1 = arith.constant 0 : i32
    return %c0_i32, %c0_i32_0 : i32, i32
  }
  func.func @transform_2(%arg0: i32) -> (i32, i32, i32) {
    %c0_i32 = arith.constant 0 : i32
    %c0_i32_0 = arith.constant 0 : i32
    %c0_i32_1 = arith.constant 0 : i32
    return %arg0, %c0_i32, %c0_i32_0 : i32, i32, i32
  }
}

module attributes {stable_mosaic.version = 11 : i64} {
  func.func @_conv_block_kernel(%arg0: i32, %arg1: memref<1x32x64xbf16, #tpu.memory_space<vmem>>, %arg2: memref<16x288xbf16, #tpu.memory_space<vmem>>, %arg3: memref<1x16x64xbf16, #tpu.memory_space<vmem>>, %arg4: memref<32x320xf32, #tpu.memory_space<vmem>>, %arg5: memref<288x64xf32, #tpu.memory_space<vmem>>) attributes {dimension_semantics = [#tpu.dimension_semantics<parallel>], iteration_bounds = array<i64: 2>, scalar_prefetch = 0 : i64, scratch_operands = 2 : i64, tpu.core_type = #tpu.core_type<tc>, window_params = [{transform_indices = @transform_0, window_bounds = array<i64: 1, 32, 64>}, {pipeline_mode = #tpu.pipeline_mode<synchronous>, transform_indices = @transform_1, window_bounds = array<i64: 16, 288>}, {transform_indices = @transform_2, window_bounds = array<i64: 1, 16, 64>}]} {
    %cst = arith.constant 0.000000e+00 : f32
    %0 = vector.broadcast %cst : f32 to vector<32x320xf32>
    %c0 = arith.constant 0 : index
    %c0_0 = arith.constant 0 : index
    %1 = vector.load %arg4[%c0, %c0_0] : memref<32x320xf32, #tpu.memory_space<vmem>>, vector<32x320xf32>
    tpu.vector_store %arg4[%c0, %c0_0], %0 {strides = array<i32>} : memref<32x320xf32, #tpu.memory_space<vmem>>, vector<32x320xf32>,
    %c0_1 = arith.constant 0 : index
    %c0_2 = arith.constant 0 : index
    %c0_3 = arith.constant 0 : index
    %2 = vector.load %arg1[%c0_1, %c0_2, %c0_3] : memref<1x32x64xbf16, #tpu.memory_space<vmem>>, vector<1x32x64xbf16>
    %3 = vector.shape_cast %2 : vector<1x32x64xbf16> to vector<32x64xbf16>
    %4 = arith.extf %3 : vector<32x64xbf16> to vector<32x64xf32>
    %c0_4 = arith.constant 0 : index
    %c128 = arith.constant 128 : index
    %5 = vector.load %arg4[%c0_4, %c128] : memref<32x320xf32, #tpu.memory_space<vmem>>, vector<32x64xf32>
    tpu.vector_store %arg4[%c0_4, %c128], %4 {strides = array<i32>} : memref<32x320xf32, #tpu.memory_space<vmem>>, vector<32x64xf32>,
    %cst_5 = arith.constant 0.000000e+00 : f32
    %6 = vector.broadcast %cst_5 : f32 to vector<288x64xf32>
    %c0_6 = arith.constant 0 : index
    %c0_7 = arith.constant 0 : index
    %7 = vector.load %arg5[%c0_6, %c0_7] : memref<288x64xf32, #tpu.memory_space<vmem>>, vector<288x64xf32>
    tpu.vector_store %arg5[%c0_6, %c0_7], %6 {strides = array<i32>} : memref<288x64xf32, #tpu.memory_space<vmem>>, vector<288x64xf32>,
    %8 = tpu.iota {dimensions = array<i32: 1>} : vector<1x64xi32>
    %c8_i32 = arith.constant 8 : i32
    %c0_i32 = arith.constant 0 : i32
    %9 = arith.cmpi eq, %c8_i32, %c0_i32 : i32
    %c1_i32 = arith.constant 1 : i32
    %10 = arith.select %9, %c1_i32, %c8_i32 : i32
    %11 = vector.broadcast %10 : i32 to vector<1x64xi32>
    %12 = arith.remsi %8, %11 : vector<1x64xi32>
    %c0_i32_8 = arith.constant 0 : i32
    %13 = vector.broadcast %c0_i32_8 : i32 to vector<1x64xi32>
    %14 = arith.cmpi ne, %12, %13 : vector<1x64xi32>
    %c0_i32_9 = arith.constant 0 : i32
    %15 = vector.broadcast %c0_i32_9 : i32 to vector<1x64xi32>
    %16 = arith.cmpi slt, %12, %15 : vector<1x64xi32>
    %c0_i32_10 = arith.constant 0 : i32
    %17 = arith.cmpi slt, %10, %c0_i32_10 : i32
    %18 = vector.broadcast %17 : i1 to vector<1x64xi1>
    %19 = vector.broadcast %18 : vector<1x64xi1> to vector<1x64xi1>
    %20 = arith.xori %16, %19 : vector<1x64xi1>
    %21 = arith.andi %20, %14 : vector<1x64xi1>
    %22 = vector.broadcast %10 : i32 to vector<1x64xi32>
    %23 = arith.addi %12, %22 : vector<1x64xi32>
    %24 = arith.select %21, %23, %12 : vector<1x64xi1>, vector<1x64xi32>
    %c0_i32_11 = arith.constant 0 : i32
    %25 = vector.broadcast %c0_i32_11 : i32 to vector<1x64xi32>
    %26 = arith.cmpi ne, %24, %25 : vector<1x64xi32>
    %c7_i32 = arith.constant 7 : i32
    %27 = vector.broadcast %c7_i32 : i32 to vector<1x64xi32>
    %28 = arith.cmpi ne, %24, %27 : vector<1x64xi32>
    %c0_12 = arith.constant 0 : index
    %c119 = arith.constant 119 : index
    %29 = vector.load %arg4[%c0_12, %c119] : memref<32x320xf32, #tpu.memory_space<vmem>>, vector<32x64xf32>
    %cst_13 = arith.constant 0.000000e+00 : f32
    %30 = vector.broadcast %cst_13 : f32 to vector<32x64xf32>
    %31 = vector.shape_cast %26 : vector<1x64xi1> to vector<1x64xi1>
    %32 = vector.broadcast %31 : vector<1x64xi1> to vector<32x64xi1>
    %33 = arith.select %32, %29, %30 : vector<32x64xi1>, vector<32x64xf32>
    %c0_14 = arith.constant 0 : index
    %c0_15 = arith.constant 0 : index
    %34 = vector.load %arg5[%c0_14, %c0_15] : memref<288x64xf32, #tpu.memory_space<vmem>>, vector<32x64xf32>
    tpu.vector_store %arg5[%c0_14, %c0_15], %33 {strides = array<i32>} : memref<288x64xf32, #tpu.memory_space<vmem>>, vector<32x64xf32>,
    %c0_16 = arith.constant 0 : index
    %c120 = arith.constant 120 : index
    %35 = vector.load %arg4[%c0_16, %c120] : memref<32x320xf32, #tpu.memory_space<vmem>>, vector<32x64xf32>
    %c32 = arith.constant 32 : index
    %c0_17 = arith.constant 0 : index
    %36 = vector.load %arg5[%c32, %c0_17] : memref<288x64xf32, #tpu.memory_space<vmem>>, vector<32x64xf32>
    tpu.vector_store %arg5[%c32, %c0_17], %35 {strides = array<i32>} : memref<288x64xf32, #tpu.memory_space<vmem>>, vector<32x64xf32>,
    %c0_18 = arith.constant 0 : index
    %c121 = arith.constant 121 : index
    %37 = vector.load %arg4[%c0_18, %c121] : memref<32x320xf32, #tpu.memory_space<vmem>>, vector<32x64xf32>
    %cst_19 = arith.constant 0.000000e+00 : f32
    %38 = vector.broadcast %cst_19 : f32 to vector<32x64xf32>
    %39 = vector.shape_cast %28 : vector<1x64xi1> to vector<1x64xi1>
    %40 = vector.broadcast %39 : vector<1x64xi1> to vector<32x64xi1>
    %41 = arith.select %40, %37, %38 : vector<32x64xi1>, vector<32x64xf32>
    %c64 = arith.constant 64 : index
    %c0_20 = arith.constant 0 : index
    %42 = vector.load %arg5[%c64, %c0_20] : memref<288x64xf32, #tpu.memory_space<vmem>>, vector<32x64xf32>
    tpu.vector_store %arg5[%c64, %c0_20], %41 {strides = array<i32>} : memref<288x64xf32, #tpu.memory_space<vmem>>, vector<32x64xf32>,
    %c0_21 = arith.constant 0 : index
    %c127 = arith.constant 127 : index
    %43 = vector.load %arg4[%c0_21, %c127] : memref<32x320xf32, #tpu.memory_space<vmem>>, vector<32x64xf32>
    %cst_22 = arith.constant 0.000000e+00 : f32
    %44 = vector.broadcast %cst_22 : f32 to vector<32x64xf32>
    %45 = vector.shape_cast %26 : vector<1x64xi1> to vector<1x64xi1>
    %46 = vector.broadcast %45 : vector<1x64xi1> to vector<32x64xi1>
    %47 = arith.select %46, %43, %44 : vector<32x64xi1>, vector<32x64xf32>
    %c96 = arith.constant 96 : index
    %c0_23 = arith.constant 0 : index
    %48 = vector.load %arg5[%c96, %c0_23] : memref<288x64xf32, #tpu.memory_space<vmem>>, vector<32x64xf32>
    tpu.vector_store %arg5[%c96, %c0_23], %47 {strides = array<i32>} : memref<288x64xf32, #tpu.memory_space<vmem>>, vector<32x64xf32>,
    %c0_24 = arith.constant 0 : index
    %c128_25 = arith.constant 128 : index
    %49 = vector.load %arg4[%c0_24, %c128_25] : memref<32x320xf32, #tpu.memory_space<vmem>>, vector<32x64xf32>
    %c128_26 = arith.constant 128 : index
    %c0_27 = arith.constant 0 : index
    %50 = vector.load %arg5[%c128_26, %c0_27] : memref<288x64xf32, #tpu.memory_space<vmem>>, vector<32x64xf32>
    tpu.vector_store %arg5[%c128_26, %c0_27], %49 {strides = array<i32>} : memref<288x64xf32, #tpu.memory_space<vmem>>, vector<32x64xf32>,
    %c0_28 = arith.constant 0 : index
    %c129 = arith.constant 129 : index
    %51 = vector.load %arg4[%c0_28, %c129] : memref<32x320xf32, #tpu.memory_space<vmem>>, vector<32x64xf32>
    %cst_29 = arith.constant 0.000000e+00 : f32
    %52 = vector.broadcast %cst_29 : f32 to vector<32x64xf32>
    %53 = vector.shape_cast %28 : vector<1x64xi1> to vector<1x64xi1>
    %54 = vector.broadcast %53 : vector<1x64xi1> to vector<32x64xi1>
    %55 = arith.select %54, %51, %52 : vector<32x64xi1>, vector<32x64xf32>
    %c160 = arith.constant 160 : index
    %c0_30 = arith.constant 0 : index
    %56 = vector.load %arg5[%c160, %c0_30] : memref<288x64xf32, #tpu.memory_space<vmem>>, vector<32x64xf32>
    tpu.vector_store %arg5[%c160, %c0_30], %55 {strides = array<i32>} : memref<288x64xf32, #tpu.memory_space<vmem>>, vector<32x64xf32>,
    %c0_31 = arith.constant 0 : index
    %c135 = arith.constant 135 : index
    %57 = vector.load %arg4[%c0_31, %c135] : memref<32x320xf32, #tpu.memory_space<vmem>>, vector<32x64xf32>
    %cst_32 = arith.constant 0.000000e+00 : f32
    %58 = vector.broadcast %cst_32 : f32 to vector<32x64xf32>
    %59 = vector.shape_cast %26 : vector<1x64xi1> to vector<1x64xi1>
    %60 = vector.broadcast %59 : vector<1x64xi1> to vector<32x64xi1>
    %61 = arith.select %60, %57, %58 : vector<32x64xi1>, vector<32x64xf32>
    %c192 = arith.constant 192 : index
    %c0_33 = arith.constant 0 : index
    %62 = vector.load %arg5[%c192, %c0_33] : memref<288x64xf32, #tpu.memory_space<vmem>>, vector<32x64xf32>
    tpu.vector_store %arg5[%c192, %c0_33], %61 {strides = array<i32>} : memref<288x64xf32, #tpu.memory_space<vmem>>, vector<32x64xf32>,
    %c0_34 = arith.constant 0 : index
    %c136 = arith.constant 136 : index
    %63 = vector.load %arg4[%c0_34, %c136] : memref<32x320xf32, #tpu.memory_space<vmem>>, vector<32x64xf32>
    %c224 = arith.constant 224 : index
    %c0_35 = arith.constant 0 : index
    %64 = vector.load %arg5[%c224, %c0_35] : memref<288x64xf32, #tpu.memory_space<vmem>>, vector<32x64xf32>
    tpu.vector_store %arg5[%c224, %c0_35], %63 {strides = array<i32>} : memref<288x64xf32, #tpu.memory_space<vmem>>, vector<32x64xf32>,
    %c0_36 = arith.constant 0 : index
    %c137 = arith.constant 137 : index
    %65 = vector.load %arg4[%c0_36, %c137] : memref<32x320xf32, #tpu.memory_space<vmem>>, vector<32x64xf32>
    %cst_37 = arith.constant 0.000000e+00 : f32
    %66 = vector.broadcast %cst_37 : f32 to vector<32x64xf32>
    %67 = vector.shape_cast %28 : vector<1x64xi1> to vector<1x64xi1>
    %68 = vector.broadcast %67 : vector<1x64xi1> to vector<32x64xi1>
    %69 = arith.select %68, %65, %66 : vector<32x64xi1>, vector<32x64xf32>
    %c256 = arith.constant 256 : index
    %c0_38 = arith.constant 0 : index
    %70 = vector.load %arg5[%c256, %c0_38] : memref<288x64xf32, #tpu.memory_space<vmem>>, vector<32x64xf32>
    tpu.vector_store %arg5[%c256, %c0_38], %69 {strides = array<i32>} : memref<288x64xf32, #tpu.memory_space<vmem>>, vector<32x64xf32>,
    %c0_39 = arith.constant 0 : index
    %c0_40 = arith.constant 0 : index
    %71 = vector.load %arg2[%c0_39, %c0_40] : memref<16x288xbf16, #tpu.memory_space<vmem>>, vector<16x288xbf16>
    %c0_41 = arith.constant 0 : index
    %c0_42 = arith.constant 0 : index
    %72 = vector.load %arg5[%c0_41, %c0_42] : memref<288x64xf32, #tpu.memory_space<vmem>>, vector<288x64xf32>
    %73 = arith.truncf %72 : vector<288x64xf32> to vector<288x64xbf16>
    %cst_43 = arith.constant dense<0.000000e+00> : vector<16x64xf32>
    %74 = tpu.matmul %71, %73, %cst_43 {dimension_numbers = #tpu.dot_dimension_numbers<[1], [0], [0], [1], [0, 0, 1, 1], [], []>} : vector<16x288xbf16>, vector<288x64xbf16>, vector<16x64xf32> -> vector<16x64xf32>
    %cst_44 = arith.constant dense<0.000000e+00> : vector<16xf32>
    %75 = vector.multi_reduction <add>, %74, %cst_44 [1] : vector<16x64xf32> to vector<16xf32>
    %76 = vector.shape_cast %75 : vector<16xf32> to vector<16x1xf32>
    %cst_45 = arith.constant 1.562500e-02 : f32
    %77 = vector.broadcast %cst_45 : f32 to vector<16x1xf32>
    %78 = arith.mulf %76, %77 : vector<16x1xf32>
    %79 = vector.broadcast %78 : vector<16x1xf32> to vector<16x64xf32>
    %80 = arith.subf %74, %79 : vector<16x64xf32>
    %81 = arith.mulf %80, %80 : vector<16x64xf32>
    %cst_46 = arith.constant dense<0.000000e+00> : vector<16xf32>
    %82 = vector.multi_reduction <add>, %81, %cst_46 [1] : vector<16x64xf32> to vector<16xf32>
    %83 = vector.shape_cast %82 : vector<16xf32> to vector<16x1xf32>
    %cst_47 = arith.constant 1.562500e-02 : f32
    %84 = vector.broadcast %cst_47 : f32 to vector<16x1xf32>
    %85 = arith.mulf %83, %84 : vector<16x1xf32>
    %cst_48 = arith.constant 9.99999974E-6 : f32
    %86 = vector.broadcast %cst_48 : f32 to vector<16x1xf32>
    %87 = arith.addf %85, %86 : vector<16x1xf32>
    %88 = math.rsqrt %87 : vector<16x1xf32>
    %89 = vector.broadcast %88 : vector<16x1xf32> to vector<16x64xf32>
    %90 = arith.mulf %80, %89 : vector<16x64xf32>
    %cst_49 = arith.constant 5.000000e-01 : f32
    %91 = vector.broadcast %cst_49 : f32 to vector<16x64xf32>
    %92 = arith.mulf %91, %90 : vector<16x64xf32>
    %cst_50 = arith.constant 0.707106769 : f32
    %93 = vector.broadcast %cst_50 : f32 to vector<16x64xf32>
    %94 = arith.mulf %90, %93 : vector<16x64xf32>
    %95 = math.absf %94 : vector<16x64xf32>
    %cst_51 = arith.constant 0.327591091 : f32
    %96 = vector.broadcast %cst_51 : f32 to vector<16x64xf32>
    %97 = arith.mulf %96, %95 : vector<16x64xf32>
    %cst_52 = arith.constant 1.000000e+00 : f32
    %98 = vector.broadcast %cst_52 : f32 to vector<16x64xf32>
    %99 = arith.addf %98, %97 : vector<16x64xf32>
    %cst_53 = arith.constant 1.000000e+00 : f32
    %100 = vector.broadcast %cst_53 : f32 to vector<16x64xf32>
    %101 = arith.divf %100, %99 : vector<16x64xf32>
    %cst_54 = arith.constant 1.06140542 : f32
    %102 = vector.broadcast %cst_54 : f32 to vector<16x64xf32>
    %103 = arith.mulf %102, %101 : vector<16x64xf32>
    %cst_55 = arith.constant -1.45315206 : f32
    %104 = vector.broadcast %cst_55 : f32 to vector<16x64xf32>
    %105 = arith.addf %103, %104 : vector<16x64xf32>
    %106 = arith.mulf %105, %101 : vector<16x64xf32>
    %cst_56 = arith.constant 1.42141378 : f32
    %107 = vector.broadcast %cst_56 : f32 to vector<16x64xf32>
    %108 = arith.addf %106, %107 : vector<16x64xf32>
    %109 = arith.mulf %108, %101 : vector<16x64xf32>
    %cst_57 = arith.constant -0.284496725 : f32
    %110 = vector.broadcast %cst_57 : f32 to vector<16x64xf32>
    %111 = arith.addf %109, %110 : vector<16x64xf32>
    %112 = arith.mulf %111, %101 : vector<16x64xf32>
    %cst_58 = arith.constant 0.254829586 : f32
    %113 = vector.broadcast %cst_58 : f32 to vector<16x64xf32>
    %114 = arith.addf %112, %113 : vector<16x64xf32>
    %115 = arith.mulf %114, %101 : vector<16x64xf32>
    %cst_59 = arith.constant 0.000000e+00 : f32
    %116 = vector.broadcast %cst_59 : f32 to vector<16x64xf32>
    %117 = arith.subf %116, %95 : vector<16x64xf32>
    %118 = arith.mulf %117, %95 : vector<16x64xf32>
    %119 = math.exp %118 : vector<16x64xf32>
    %120 = arith.mulf %115, %119 : vector<16x64xf32>
    %cst_60 = arith.constant 1.000000e+00 : f32
    %121 = vector.broadcast %cst_60 : f32 to vector<16x64xf32>
    %122 = arith.subf %121, %120 : vector<16x64xf32>
    %cst_61 = arith.constant 0.000000e+00 : f32
    %123 = vector.broadcast %cst_61 : f32 to vector<16x64xf32>
    %124 = arith.cmpf oge, %94, %123 : vector<16x64xf32>
    %cst_62 = arith.constant 0.000000e+00 : f32
    %125 = vector.broadcast %cst_62 : f32 to vector<16x64xf32>
    %126 = arith.subf %125, %122 : vector<16x64xf32>
    %127 = arith.select %124, %122, %126 : vector<16x64xi1>, vector<16x64xf32>
    %cst_63 = arith.constant 1.000000e+00 : f32
    %128 = vector.broadcast %cst_63 : f32 to vector<16x64xf32>
    %129 = arith.addf %128, %127 : vector<16x64xf32>
    %130 = arith.mulf %92, %129 : vector<16x64xf32>
    %131 = arith.truncf %130 : vector<16x64xf32> to vector<16x64xbf16>
    %c0_64 = arith.constant 0 : index
    %c0_65 = arith.constant 0 : index
    %c0_66 = arith.constant 0 : index
    %132 = vector.load %arg3[%c0_64, %c0_65, %c0_66] : memref<1x16x64xbf16, #tpu.memory_space<vmem>>, vector<1x16x64xbf16>
    %133 = vector.shape_cast %132 : vector<1x16x64xbf16> to vector<16x64xbf16>
    %134 = vector.shape_cast %131 : vector<16x64xbf16> to vector<1x16x64xbf16>
    tpu.vector_store %arg3[%c0_64, %c0_65, %c0_66], %134 {strides = array<i32>} : memref<1x16x64xbf16, #tpu.memory_space<vmem>>, vector<1x16x64xbf16>,
    return
  }
  func.func @transform_0(%arg0: i32) -> (i32, i32, i32) {
    %c0_i32 = arith.constant 0 : i32
    %c0_i32_0 = arith.constant 0 : i32
    %c0_i32_1 = arith.constant 0 : i32
    return %arg0, %c0_i32, %c0_i32_0 : i32, i32, i32
  }
  func.func @transform_1(%arg0: i32) -> (i32, i32) {
    %c0_i32 = arith.constant 0 : i32
    %c0_i32_0 = arith.constant 0 : i32
    %c0_i32_1 = arith.constant 0 : i32
    return %c0_i32, %c0_i32_0 : i32, i32
  }
  func.func @transform_2(%arg0: i32) -> (i32, i32, i32) {
    %c0_i32 = arith.constant 0 : i32
    %c0_i32_0 = arith.constant 0 : i32
    %c0_i32_1 = arith.constant 0 : i32
    return %arg0, %c0_i32, %c0_i32_0 : i32, i32, i32
  }
}

module attributes {stable_mosaic.version = 11 : i64} {
  func.func @_conv_block_kernel(%arg0: i32, %arg1: memref<1x16x16xbf16, #tpu.memory_space<vmem>>, %arg2: memref<16x144xbf16, #tpu.memory_space<vmem>>, %arg3: memref<1x16x16xbf16, #tpu.memory_space<vmem>>, %arg4: memref<16x272xf32, #tpu.memory_space<vmem>>, %arg5: memref<144x16xf32, #tpu.memory_space<vmem>>) attributes {dimension_semantics = [#tpu.dimension_semantics<parallel>], iteration_bounds = array<i64: 2>, scalar_prefetch = 0 : i64, scratch_operands = 2 : i64, tpu.core_type = #tpu.core_type<tc>, window_params = [{transform_indices = @transform_0, window_bounds = array<i64: 1, 16, 16>}, {pipeline_mode = #tpu.pipeline_mode<synchronous>, transform_indices = @transform_1, window_bounds = array<i64: 16, 144>}, {transform_indices = @transform_2, window_bounds = array<i64: 1, 16, 16>}]} {
    %cst = arith.constant 0.000000e+00 : f32
    %0 = vector.broadcast %cst : f32 to vector<16x272xf32>
    %c0 = arith.constant 0 : index
    %c0_0 = arith.constant 0 : index
    %1 = vector.load %arg4[%c0, %c0_0] : memref<16x272xf32, #tpu.memory_space<vmem>>, vector<16x272xf32>
    tpu.vector_store %arg4[%c0, %c0_0], %0 {strides = array<i32>} : memref<16x272xf32, #tpu.memory_space<vmem>>, vector<16x272xf32>,
    %c0_1 = arith.constant 0 : index
    %c0_2 = arith.constant 0 : index
    %c0_3 = arith.constant 0 : index
    %2 = vector.load %arg1[%c0_1, %c0_2, %c0_3] : memref<1x16x16xbf16, #tpu.memory_space<vmem>>, vector<1x16x16xbf16>
    %3 = vector.shape_cast %2 : vector<1x16x16xbf16> to vector<16x16xbf16>
    %4 = arith.extf %3 : vector<16x16xbf16> to vector<16x16xf32>
    %c0_4 = arith.constant 0 : index
    %c128 = arith.constant 128 : index
    %5 = vector.load %arg4[%c0_4, %c128] : memref<16x272xf32, #tpu.memory_space<vmem>>, vector<16x16xf32>
    tpu.vector_store %arg4[%c0_4, %c128], %4 {strides = array<i32>} : memref<16x272xf32, #tpu.memory_space<vmem>>, vector<16x16xf32>,
    %cst_5 = arith.constant 0.000000e+00 : f32
    %6 = vector.broadcast %cst_5 : f32 to vector<144x16xf32>
    %c0_6 = arith.constant 0 : index
    %c0_7 = arith.constant 0 : index
    %7 = vector.load %arg5[%c0_6, %c0_7] : memref<144x16xf32, #tpu.memory_space<vmem>>, vector<144x16xf32>
    tpu.vector_store %arg5[%c0_6, %c0_7], %6 {strides = array<i32>} : memref<144x16xf32, #tpu.memory_space<vmem>>, vector<144x16xf32>,
    %8 = tpu.iota {dimensions = array<i32: 1>} : vector<1x16xi32>
    %c4_i32 = arith.constant 4 : i32
    %c0_i32 = arith.constant 0 : i32
    %9 = arith.cmpi eq, %c4_i32, %c0_i32 : i32
    %c1_i32 = arith.constant 1 : i32
    %10 = arith.select %9, %c1_i32, %c4_i32 : i32
    %11 = vector.broadcast %10 : i32 to vector<1x16xi32>
    %12 = arith.remsi %8, %11 : vector<1x16xi32>
    %c0_i32_8 = arith.constant 0 : i32
    %13 = vector.broadcast %c0_i32_8 : i32 to vector<1x16xi32>
    %14 = arith.cmpi ne, %12, %13 : vector<1x16xi32>
    %c0_i32_9 = arith.constant 0 : i32
    %15 = vector.broadcast %c0_i32_9 : i32 to vector<1x16xi32>
    %16 = arith.cmpi slt, %12, %15 : vector<1x16xi32>
    %c0_i32_10 = arith.constant 0 : i32
    %17 = arith.cmpi slt, %10, %c0_i32_10 : i32
    %18 = vector.broadcast %17 : i1 to vector<1x16xi1>
    %19 = vector.broadcast %18 : vector<1x16xi1> to vector<1x16xi1>
    %20 = arith.xori %16, %19 : vector<1x16xi1>
    %21 = arith.andi %20, %14 : vector<1x16xi1>
    %22 = vector.broadcast %10 : i32 to vector<1x16xi32>
    %23 = arith.addi %12, %22 : vector<1x16xi32>
    %24 = arith.select %21, %23, %12 : vector<1x16xi1>, vector<1x16xi32>
    %c0_i32_11 = arith.constant 0 : i32
    %25 = vector.broadcast %c0_i32_11 : i32 to vector<1x16xi32>
    %26 = arith.cmpi ne, %24, %25 : vector<1x16xi32>
    %c3_i32 = arith.constant 3 : i32
    %27 = vector.broadcast %c3_i32 : i32 to vector<1x16xi32>
    %28 = arith.cmpi ne, %24, %27 : vector<1x16xi32>
    %c0_12 = arith.constant 0 : index
    %c123 = arith.constant 123 : index
    %29 = vector.load %arg4[%c0_12, %c123] : memref<16x272xf32, #tpu.memory_space<vmem>>, vector<16x16xf32>
    %cst_13 = arith.constant 0.000000e+00 : f32
    %30 = vector.broadcast %cst_13 : f32 to vector<16x16xf32>
    %31 = vector.shape_cast %26 : vector<1x16xi1> to vector<1x16xi1>
    %32 = vector.broadcast %31 : vector<1x16xi1> to vector<16x16xi1>
    %33 = arith.select %32, %29, %30 : vector<16x16xi1>, vector<16x16xf32>
    %c0_14 = arith.constant 0 : index
    %c0_15 = arith.constant 0 : index
    %34 = vector.load %arg5[%c0_14, %c0_15] : memref<144x16xf32, #tpu.memory_space<vmem>>, vector<16x16xf32>
    tpu.vector_store %arg5[%c0_14, %c0_15], %33 {strides = array<i32>} : memref<144x16xf32, #tpu.memory_space<vmem>>, vector<16x16xf32>,
    %c0_16 = arith.constant 0 : index
    %c124 = arith.constant 124 : index
    %35 = vector.load %arg4[%c0_16, %c124] : memref<16x272xf32, #tpu.memory_space<vmem>>, vector<16x16xf32>
    %c16 = arith.constant 16 : index
    %c0_17 = arith.constant 0 : index
    %36 = vector.load %arg5[%c16, %c0_17] : memref<144x16xf32, #tpu.memory_space<vmem>>, vector<16x16xf32>
    tpu.vector_store %arg5[%c16, %c0_17], %35 {strides = array<i32>} : memref<144x16xf32, #tpu.memory_space<vmem>>, vector<16x16xf32>,
    %c0_18 = arith.constant 0 : index
    %c125 = arith.constant 125 : index
    %37 = vector.load %arg4[%c0_18, %c125] : memref<16x272xf32, #tpu.memory_space<vmem>>, vector<16x16xf32>
    %cst_19 = arith.constant 0.000000e+00 : f32
    %38 = vector.broadcast %cst_19 : f32 to vector<16x16xf32>
    %39 = vector.shape_cast %28 : vector<1x16xi1> to vector<1x16xi1>
    %40 = vector.broadcast %39 : vector<1x16xi1> to vector<16x16xi1>
    %41 = arith.select %40, %37, %38 : vector<16x16xi1>, vector<16x16xf32>
    %c32 = arith.constant 32 : index
    %c0_20 = arith.constant 0 : index
    %42 = vector.load %arg5[%c32, %c0_20] : memref<144x16xf32, #tpu.memory_space<vmem>>, vector<16x16xf32>
    tpu.vector_store %arg5[%c32, %c0_20], %41 {strides = array<i32>} : memref<144x16xf32, #tpu.memory_space<vmem>>, vector<16x16xf32>,
    %c0_21 = arith.constant 0 : index
    %c127 = arith.constant 127 : index
    %43 = vector.load %arg4[%c0_21, %c127] : memref<16x272xf32, #tpu.memory_space<vmem>>, vector<16x16xf32>
    %cst_22 = arith.constant 0.000000e+00 : f32
    %44 = vector.broadcast %cst_22 : f32 to vector<16x16xf32>
    %45 = vector.shape_cast %26 : vector<1x16xi1> to vector<1x16xi1>
    %46 = vector.broadcast %45 : vector<1x16xi1> to vector<16x16xi1>
    %47 = arith.select %46, %43, %44 : vector<16x16xi1>, vector<16x16xf32>
    %c48 = arith.constant 48 : index
    %c0_23 = arith.constant 0 : index
    %48 = vector.load %arg5[%c48, %c0_23] : memref<144x16xf32, #tpu.memory_space<vmem>>, vector<16x16xf32>
    tpu.vector_store %arg5[%c48, %c0_23], %47 {strides = array<i32>} : memref<144x16xf32, #tpu.memory_space<vmem>>, vector<16x16xf32>,
    %c0_24 = arith.constant 0 : index
    %c128_25 = arith.constant 128 : index
    %49 = vector.load %arg4[%c0_24, %c128_25] : memref<16x272xf32, #tpu.memory_space<vmem>>, vector<16x16xf32>
    %c64 = arith.constant 64 : index
    %c0_26 = arith.constant 0 : index
    %50 = vector.load %arg5[%c64, %c0_26] : memref<144x16xf32, #tpu.memory_space<vmem>>, vector<16x16xf32>
    tpu.vector_store %arg5[%c64, %c0_26], %49 {strides = array<i32>} : memref<144x16xf32, #tpu.memory_space<vmem>>, vector<16x16xf32>,
    %c0_27 = arith.constant 0 : index
    %c129 = arith.constant 129 : index
    %51 = vector.load %arg4[%c0_27, %c129] : memref<16x272xf32, #tpu.memory_space<vmem>>, vector<16x16xf32>
    %cst_28 = arith.constant 0.000000e+00 : f32
    %52 = vector.broadcast %cst_28 : f32 to vector<16x16xf32>
    %53 = vector.shape_cast %28 : vector<1x16xi1> to vector<1x16xi1>
    %54 = vector.broadcast %53 : vector<1x16xi1> to vector<16x16xi1>
    %55 = arith.select %54, %51, %52 : vector<16x16xi1>, vector<16x16xf32>
    %c80 = arith.constant 80 : index
    %c0_29 = arith.constant 0 : index
    %56 = vector.load %arg5[%c80, %c0_29] : memref<144x16xf32, #tpu.memory_space<vmem>>, vector<16x16xf32>
    tpu.vector_store %arg5[%c80, %c0_29], %55 {strides = array<i32>} : memref<144x16xf32, #tpu.memory_space<vmem>>, vector<16x16xf32>,
    %c0_30 = arith.constant 0 : index
    %c131 = arith.constant 131 : index
    %57 = vector.load %arg4[%c0_30, %c131] : memref<16x272xf32, #tpu.memory_space<vmem>>, vector<16x16xf32>
    %cst_31 = arith.constant 0.000000e+00 : f32
    %58 = vector.broadcast %cst_31 : f32 to vector<16x16xf32>
    %59 = vector.shape_cast %26 : vector<1x16xi1> to vector<1x16xi1>
    %60 = vector.broadcast %59 : vector<1x16xi1> to vector<16x16xi1>
    %61 = arith.select %60, %57, %58 : vector<16x16xi1>, vector<16x16xf32>
    %c96 = arith.constant 96 : index
    %c0_32 = arith.constant 0 : index
    %62 = vector.load %arg5[%c96, %c0_32] : memref<144x16xf32, #tpu.memory_space<vmem>>, vector<16x16xf32>
    tpu.vector_store %arg5[%c96, %c0_32], %61 {strides = array<i32>} : memref<144x16xf32, #tpu.memory_space<vmem>>, vector<16x16xf32>,
    %c0_33 = arith.constant 0 : index
    %c132 = arith.constant 132 : index
    %63 = vector.load %arg4[%c0_33, %c132] : memref<16x272xf32, #tpu.memory_space<vmem>>, vector<16x16xf32>
    %c112 = arith.constant 112 : index
    %c0_34 = arith.constant 0 : index
    %64 = vector.load %arg5[%c112, %c0_34] : memref<144x16xf32, #tpu.memory_space<vmem>>, vector<16x16xf32>
    tpu.vector_store %arg5[%c112, %c0_34], %63 {strides = array<i32>} : memref<144x16xf32, #tpu.memory_space<vmem>>, vector<16x16xf32>,
    %c0_35 = arith.constant 0 : index
    %c133 = arith.constant 133 : index
    %65 = vector.load %arg4[%c0_35, %c133] : memref<16x272xf32, #tpu.memory_space<vmem>>, vector<16x16xf32>
    %cst_36 = arith.constant 0.000000e+00 : f32
    %66 = vector.broadcast %cst_36 : f32 to vector<16x16xf32>
    %67 = vector.shape_cast %28 : vector<1x16xi1> to vector<1x16xi1>
    %68 = vector.broadcast %67 : vector<1x16xi1> to vector<16x16xi1>
    %69 = arith.select %68, %65, %66 : vector<16x16xi1>, vector<16x16xf32>
    %c128_37 = arith.constant 128 : index
    %c0_38 = arith.constant 0 : index
    %70 = vector.load %arg5[%c128_37, %c0_38] : memref<144x16xf32, #tpu.memory_space<vmem>>, vector<16x16xf32>
    tpu.vector_store %arg5[%c128_37, %c0_38], %69 {strides = array<i32>} : memref<144x16xf32, #tpu.memory_space<vmem>>, vector<16x16xf32>,
    %c0_39 = arith.constant 0 : index
    %c0_40 = arith.constant 0 : index
    %71 = vector.load %arg2[%c0_39, %c0_40] : memref<16x144xbf16, #tpu.memory_space<vmem>>, vector<16x144xbf16>
    %c0_41 = arith.constant 0 : index
    %c0_42 = arith.constant 0 : index
    %72 = vector.load %arg5[%c0_41, %c0_42] : memref<144x16xf32, #tpu.memory_space<vmem>>, vector<144x16xf32>
    %73 = arith.truncf %72 : vector<144x16xf32> to vector<144x16xbf16>
    %cst_43 = arith.constant dense<0.000000e+00> : vector<16x16xf32>
    %74 = tpu.matmul %71, %73, %cst_43 {dimension_numbers = #tpu.dot_dimension_numbers<[1], [0], [0], [1], [0, 0, 1, 1], [], []>} : vector<16x144xbf16>, vector<144x16xbf16>, vector<16x16xf32> -> vector<16x16xf32>
    %cst_44 = arith.constant dense<0.000000e+00> : vector<16xf32>
    %75 = vector.multi_reduction <add>, %74, %cst_44 [1] : vector<16x16xf32> to vector<16xf32>
    %76 = vector.shape_cast %75 : vector<16xf32> to vector<16x1xf32>
    %cst_45 = arith.constant 6.250000e-02 : f32
    %77 = vector.broadcast %cst_45 : f32 to vector<16x1xf32>
    %78 = arith.mulf %76, %77 : vector<16x1xf32>
    %79 = vector.broadcast %78 : vector<16x1xf32> to vector<16x16xf32>
    %80 = arith.subf %74, %79 : vector<16x16xf32>
    %81 = arith.mulf %80, %80 : vector<16x16xf32>
    %cst_46 = arith.constant dense<0.000000e+00> : vector<16xf32>
    %82 = vector.multi_reduction <add>, %81, %cst_46 [1] : vector<16x16xf32> to vector<16xf32>
    %83 = vector.shape_cast %82 : vector<16xf32> to vector<16x1xf32>
    %cst_47 = arith.constant 6.250000e-02 : f32
    %84 = vector.broadcast %cst_47 : f32 to vector<16x1xf32>
    %85 = arith.mulf %83, %84 : vector<16x1xf32>
    %cst_48 = arith.constant 9.99999974E-6 : f32
    %86 = vector.broadcast %cst_48 : f32 to vector<16x1xf32>
    %87 = arith.addf %85, %86 : vector<16x1xf32>
    %88 = math.rsqrt %87 : vector<16x1xf32>
    %89 = vector.broadcast %88 : vector<16x1xf32> to vector<16x16xf32>
    %90 = arith.mulf %80, %89 : vector<16x16xf32>
    %cst_49 = arith.constant 5.000000e-01 : f32
    %91 = vector.broadcast %cst_49 : f32 to vector<16x16xf32>
    %92 = arith.mulf %91, %90 : vector<16x16xf32>
    %cst_50 = arith.constant 0.707106769 : f32
    %93 = vector.broadcast %cst_50 : f32 to vector<16x16xf32>
    %94 = arith.mulf %90, %93 : vector<16x16xf32>
    %95 = math.absf %94 : vector<16x16xf32>
    %cst_51 = arith.constant 0.327591091 : f32
    %96 = vector.broadcast %cst_51 : f32 to vector<16x16xf32>
    %97 = arith.mulf %96, %95 : vector<16x16xf32>
    %cst_52 = arith.constant 1.000000e+00 : f32
    %98 = vector.broadcast %cst_52 : f32 to vector<16x16xf32>
    %99 = arith.addf %98, %97 : vector<16x16xf32>
    %cst_53 = arith.constant 1.000000e+00 : f32
    %100 = vector.broadcast %cst_53 : f32 to vector<16x16xf32>
    %101 = arith.divf %100, %99 : vector<16x16xf32>
    %cst_54 = arith.constant 1.06140542 : f32
    %102 = vector.broadcast %cst_54 : f32 to vector<16x16xf32>
    %103 = arith.mulf %102, %101 : vector<16x16xf32>
    %cst_55 = arith.constant -1.45315206 : f32
    %104 = vector.broadcast %cst_55 : f32 to vector<16x16xf32>
    %105 = arith.addf %103, %104 : vector<16x16xf32>
    %106 = arith.mulf %105, %101 : vector<16x16xf32>
    %cst_56 = arith.constant 1.42141378 : f32
    %107 = vector.broadcast %cst_56 : f32 to vector<16x16xf32>
    %108 = arith.addf %106, %107 : vector<16x16xf32>
    %109 = arith.mulf %108, %101 : vector<16x16xf32>
    %cst_57 = arith.constant -0.284496725 : f32
    %110 = vector.broadcast %cst_57 : f32 to vector<16x16xf32>
    %111 = arith.addf %109, %110 : vector<16x16xf32>
    %112 = arith.mulf %111, %101 : vector<16x16xf32>
    %cst_58 = arith.constant 0.254829586 : f32
    %113 = vector.broadcast %cst_58 : f32 to vector<16x16xf32>
    %114 = arith.addf %112, %113 : vector<16x16xf32>
    %115 = arith.mulf %114, %101 : vector<16x16xf32>
    %cst_59 = arith.constant 0.000000e+00 : f32
    %116 = vector.broadcast %cst_59 : f32 to vector<16x16xf32>
    %117 = arith.subf %116, %95 : vector<16x16xf32>
    %118 = arith.mulf %117, %95 : vector<16x16xf32>
    %119 = math.exp %118 : vector<16x16xf32>
    %120 = arith.mulf %115, %119 : vector<16x16xf32>
    %cst_60 = arith.constant 1.000000e+00 : f32
    %121 = vector.broadcast %cst_60 : f32 to vector<16x16xf32>
    %122 = arith.subf %121, %120 : vector<16x16xf32>
    %cst_61 = arith.constant 0.000000e+00 : f32
    %123 = vector.broadcast %cst_61 : f32 to vector<16x16xf32>
    %124 = arith.cmpf oge, %94, %123 : vector<16x16xf32>
    %cst_62 = arith.constant 0.000000e+00 : f32
    %125 = vector.broadcast %cst_62 : f32 to vector<16x16xf32>
    %126 = arith.subf %125, %122 : vector<16x16xf32>
    %127 = arith.select %124, %122, %126 : vector<16x16xi1>, vector<16x16xf32>
    %cst_63 = arith.constant 1.000000e+00 : f32
    %128 = vector.broadcast %cst_63 : f32 to vector<16x16xf32>
    %129 = arith.addf %128, %127 : vector<16x16xf32>
    %130 = arith.mulf %92, %129 : vector<16x16xf32>
    %131 = arith.truncf %130 : vector<16x16xf32> to vector<16x16xbf16>
    %c0_64 = arith.constant 0 : index
    %c0_65 = arith.constant 0 : index
    %c0_66 = arith.constant 0 : index
    %132 = vector.load %arg3[%c0_64, %c0_65, %c0_66] : memref<1x16x16xbf16, #tpu.memory_space<vmem>>, vector<1x16x16xbf16>
    %133 = vector.shape_cast %132 : vector<1x16x16xbf16> to vector<16x16xbf16>
    %134 = vector.shape_cast %131 : vector<16x16xbf16> to vector<1x16x16xbf16>
    tpu.vector_store %arg3[%c0_64, %c0_65, %c0_66], %134 {strides = array<i32>} : memref<1x16x16xbf16, #tpu.memory_space<vmem>>, vector<1x16x16xbf16>,
    return
  }
  func.func @transform_0(%arg0: i32) -> (i32, i32, i32) {
    %c0_i32 = arith.constant 0 : i32
    %c0_i32_0 = arith.constant 0 : i32
    %c0_i32_1 = arith.constant 0 : i32
    return %arg0, %c0_i32, %c0_i32_0 : i32, i32, i32
  }
  func.func @transform_1(%arg0: i32) -> (i32, i32) {
    %c0_i32 = arith.constant 0 : i32
    %c0_i32_0 = arith.constant 0 : i32
    %c0_i32_1 = arith.constant 0 : i32
    return %c0_i32, %c0_i32_0 : i32, i32
  }
  func.func @transform_2(%arg0: i32) -> (i32, i32, i32) {
    %c0_i32 = arith.constant 0 : i32
    %c0_i32_0 = arith.constant 0 : i32
    %c0_i32_1 = arith.constant 0 : i32
    return %arg0, %c0_i32, %c0_i32_0 : i32, i32, i32
  }
}

module attributes {stable_mosaic.version = 11 : i64} {
  func.func @_conv_block_kernel(%arg0: i32, %arg1: memref<1x24x256xbf16, #tpu.memory_space<vmem>>, %arg2: memref<8x216xbf16, #tpu.memory_space<vmem>>, %arg3: memref<1x8x256xbf16, #tpu.memory_space<vmem>>, %arg4: memref<24x512xf32, #tpu.memory_space<vmem>>, %arg5: memref<216x256xf32, #tpu.memory_space<vmem>>) attributes {dimension_semantics = [#tpu.dimension_semantics<parallel>], iteration_bounds = array<i64: 2>, scalar_prefetch = 0 : i64, scratch_operands = 2 : i64, tpu.core_type = #tpu.core_type<tc>, window_params = [{transform_indices = @transform_0, window_bounds = array<i64: 1, 24, 256>}, {pipeline_mode = #tpu.pipeline_mode<synchronous>, transform_indices = @transform_1, window_bounds = array<i64: 8, 216>}, {transform_indices = @transform_2, window_bounds = array<i64: 1, 8, 256>}]} {
    %cst = arith.constant 0.000000e+00 : f32
    %0 = vector.broadcast %cst : f32 to vector<24x512xf32>
    %c0 = arith.constant 0 : index
    %c0_0 = arith.constant 0 : index
    %1 = vector.load %arg4[%c0, %c0_0] : memref<24x512xf32, #tpu.memory_space<vmem>>, vector<24x512xf32>
    tpu.vector_store %arg4[%c0, %c0_0], %0 {strides = array<i32>} : memref<24x512xf32, #tpu.memory_space<vmem>>, vector<24x512xf32>,
    %c0_1 = arith.constant 0 : index
    %c0_2 = arith.constant 0 : index
    %c0_3 = arith.constant 0 : index
    %2 = vector.load %arg1[%c0_1, %c0_2, %c0_3] : memref<1x24x256xbf16, #tpu.memory_space<vmem>>, vector<1x24x256xbf16>
    %3 = vector.shape_cast %2 : vector<1x24x256xbf16> to vector<24x256xbf16>
    %4 = arith.extf %3 : vector<24x256xbf16> to vector<24x256xf32>
    %c0_4 = arith.constant 0 : index
    %c128 = arith.constant 128 : index
    %5 = vector.load %arg4[%c0_4, %c128] : memref<24x512xf32, #tpu.memory_space<vmem>>, vector<24x256xf32>
    tpu.vector_store %arg4[%c0_4, %c128], %4 {strides = array<i32>} : memref<24x512xf32, #tpu.memory_space<vmem>>, vector<24x256xf32>,
    %cst_5 = arith.constant 0.000000e+00 : f32
    %6 = vector.broadcast %cst_5 : f32 to vector<216x256xf32>
    %c0_6 = arith.constant 0 : index
    %c0_7 = arith.constant 0 : index
    %7 = vector.load %arg5[%c0_6, %c0_7] : memref<216x256xf32, #tpu.memory_space<vmem>>, vector<216x256xf32>
    tpu.vector_store %arg5[%c0_6, %c0_7], %6 {strides = array<i32>} : memref<216x256xf32, #tpu.memory_space<vmem>>, vector<216x256xf32>,
    %8 = tpu.iota {dimensions = array<i32: 1>} : vector<1x256xi32>
    %c16_i32 = arith.constant 16 : i32
    %c0_i32 = arith.constant 0 : i32
    %9 = arith.cmpi eq, %c16_i32, %c0_i32 : i32
    %c1_i32 = arith.constant 1 : i32
    %10 = arith.select %9, %c1_i32, %c16_i32 : i32
    %11 = vector.broadcast %10 : i32 to vector<1x256xi32>
    %12 = arith.remsi %8, %11 : vector<1x256xi32>
    %c0_i32_8 = arith.constant 0 : i32
    %13 = vector.broadcast %c0_i32_8 : i32 to vector<1x256xi32>
    %14 = arith.cmpi ne, %12, %13 : vector<1x256xi32>
    %c0_i32_9 = arith.constant 0 : i32
    %15 = vector.broadcast %c0_i32_9 : i32 to vector<1x256xi32>
    %16 = arith.cmpi slt, %12, %15 : vector<1x256xi32>
    %c0_i32_10 = arith.constant 0 : i32
    %17 = arith.cmpi slt, %10, %c0_i32_10 : i32
    %18 = vector.broadcast %17 : i1 to vector<1x256xi1>
    %19 = vector.broadcast %18 : vector<1x256xi1> to vector<1x256xi1>
    %20 = arith.xori %16, %19 : vector<1x256xi1>
    %21 = arith.andi %20, %14 : vector<1x256xi1>
    %22 = vector.broadcast %10 : i32 to vector<1x256xi32>
    %23 = arith.addi %12, %22 : vector<1x256xi32>
    %24 = arith.select %21, %23, %12 : vector<1x256xi1>, vector<1x256xi32>
    %c0_i32_11 = arith.constant 0 : i32
    %25 = vector.broadcast %c0_i32_11 : i32 to vector<1x256xi32>
    %26 = arith.cmpi ne, %24, %25 : vector<1x256xi32>
    %c15_i32 = arith.constant 15 : i32
    %27 = vector.broadcast %c15_i32 : i32 to vector<1x256xi32>
    %28 = arith.cmpi ne, %24, %27 : vector<1x256xi32>
    %c0_12 = arith.constant 0 : index
    %c111 = arith.constant 111 : index
    %29 = vector.load %arg4[%c0_12, %c111] : memref<24x512xf32, #tpu.memory_space<vmem>>, vector<24x256xf32>
    %cst_13 = arith.constant 0.000000e+00 : f32
    %30 = vector.broadcast %cst_13 : f32 to vector<24x256xf32>
    %31 = vector.shape_cast %26 : vector<1x256xi1> to vector<1x256xi1>
    %32 = vector.broadcast %31 : vector<1x256xi1> to vector<24x256xi1>
    %33 = arith.select %32, %29, %30 : vector<24x256xi1>, vector<24x256xf32>
    %c0_14 = arith.constant 0 : index
    %c0_15 = arith.constant 0 : index
    %34 = vector.load %arg5[%c0_14, %c0_15] : memref<216x256xf32, #tpu.memory_space<vmem>>, vector<24x256xf32>
    tpu.vector_store %arg5[%c0_14, %c0_15], %33 {strides = array<i32>} : memref<216x256xf32, #tpu.memory_space<vmem>>, vector<24x256xf32>,
    %c0_16 = arith.constant 0 : index
    %c112 = arith.constant 112 : index
    %35 = vector.load %arg4[%c0_16, %c112] : memref<24x512xf32, #tpu.memory_space<vmem>>, vector<24x256xf32>
    %c24 = arith.constant 24 : index
    %c0_17 = arith.constant 0 : index
    %36 = vector.load %arg5[%c24, %c0_17] : memref<216x256xf32, #tpu.memory_space<vmem>>, vector<24x256xf32>
    tpu.vector_store %arg5[%c24, %c0_17], %35 {strides = array<i32>} : memref<216x256xf32, #tpu.memory_space<vmem>>, vector<24x256xf32>,
    %c0_18 = arith.constant 0 : index
    %c113 = arith.constant 113 : index
    %37 = vector.load %arg4[%c0_18, %c113] : memref<24x512xf32, #tpu.memory_space<vmem>>, vector<24x256xf32>
    %cst_19 = arith.constant 0.000000e+00 : f32
    %38 = vector.broadcast %cst_19 : f32 to vector<24x256xf32>
    %39 = vector.shape_cast %28 : vector<1x256xi1> to vector<1x256xi1>
    %40 = vector.broadcast %39 : vector<1x256xi1> to vector<24x256xi1>
    %41 = arith.select %40, %37, %38 : vector<24x256xi1>, vector<24x256xf32>
    %c48 = arith.constant 48 : index
    %c0_20 = arith.constant 0 : index
    %42 = vector.load %arg5[%c48, %c0_20] : memref<216x256xf32, #tpu.memory_space<vmem>>, vector<24x256xf32>
    tpu.vector_store %arg5[%c48, %c0_20], %41 {strides = array<i32>} : memref<216x256xf32, #tpu.memory_space<vmem>>, vector<24x256xf32>,
    %c0_21 = arith.constant 0 : index
    %c127 = arith.constant 127 : index
    %43 = vector.load %arg4[%c0_21, %c127] : memref<24x512xf32, #tpu.memory_space<vmem>>, vector<24x256xf32>
    %cst_22 = arith.constant 0.000000e+00 : f32
    %44 = vector.broadcast %cst_22 : f32 to vector<24x256xf32>
    %45 = vector.shape_cast %26 : vector<1x256xi1> to vector<1x256xi1>
    %46 = vector.broadcast %45 : vector<1x256xi1> to vector<24x256xi1>
    %47 = arith.select %46, %43, %44 : vector<24x256xi1>, vector<24x256xf32>
    %c72 = arith.constant 72 : index
    %c0_23 = arith.constant 0 : index
    %48 = vector.load %arg5[%c72, %c0_23] : memref<216x256xf32, #tpu.memory_space<vmem>>, vector<24x256xf32>
    tpu.vector_store %arg5[%c72, %c0_23], %47 {strides = array<i32>} : memref<216x256xf32, #tpu.memory_space<vmem>>, vector<24x256xf32>,
    %c0_24 = arith.constant 0 : index
    %c128_25 = arith.constant 128 : index
    %49 = vector.load %arg4[%c0_24, %c128_25] : memref<24x512xf32, #tpu.memory_space<vmem>>, vector<24x256xf32>
    %c96 = arith.constant 96 : index
    %c0_26 = arith.constant 0 : index
    %50 = vector.load %arg5[%c96, %c0_26] : memref<216x256xf32, #tpu.memory_space<vmem>>, vector<24x256xf32>
    tpu.vector_store %arg5[%c96, %c0_26], %49 {strides = array<i32>} : memref<216x256xf32, #tpu.memory_space<vmem>>, vector<24x256xf32>,
    %c0_27 = arith.constant 0 : index
    %c129 = arith.constant 129 : index
    %51 = vector.load %arg4[%c0_27, %c129] : memref<24x512xf32, #tpu.memory_space<vmem>>, vector<24x256xf32>
    %cst_28 = arith.constant 0.000000e+00 : f32
    %52 = vector.broadcast %cst_28 : f32 to vector<24x256xf32>
    %53 = vector.shape_cast %28 : vector<1x256xi1> to vector<1x256xi1>
    %54 = vector.broadcast %53 : vector<1x256xi1> to vector<24x256xi1>
    %55 = arith.select %54, %51, %52 : vector<24x256xi1>, vector<24x256xf32>
    %c120 = arith.constant 120 : index
    %c0_29 = arith.constant 0 : index
    %56 = vector.load %arg5[%c120, %c0_29] : memref<216x256xf32, #tpu.memory_space<vmem>>, vector<24x256xf32>
    tpu.vector_store %arg5[%c120, %c0_29], %55 {strides = array<i32>} : memref<216x256xf32, #tpu.memory_space<vmem>>, vector<24x256xf32>,
    %c0_30 = arith.constant 0 : index
    %c143 = arith.constant 143 : index
    %57 = vector.load %arg4[%c0_30, %c143] : memref<24x512xf32, #tpu.memory_space<vmem>>, vector<24x256xf32>
    %cst_31 = arith.constant 0.000000e+00 : f32
    %58 = vector.broadcast %cst_31 : f32 to vector<24x256xf32>
    %59 = vector.shape_cast %26 : vector<1x256xi1> to vector<1x256xi1>
    %60 = vector.broadcast %59 : vector<1x256xi1> to vector<24x256xi1>
    %61 = arith.select %60, %57, %58 : vector<24x256xi1>, vector<24x256xf32>
    %c144 = arith.constant 144 : index
    %c0_32 = arith.constant 0 : index
    %62 = vector.load %arg5[%c144, %c0_32] : memref<216x256xf32, #tpu.memory_space<vmem>>, vector<24x256xf32>
    tpu.vector_store %arg5[%c144, %c0_32], %61 {strides = array<i32>} : memref<216x256xf32, #tpu.memory_space<vmem>>, vector<24x256xf32>,
    %c0_33 = arith.constant 0 : index
    %c144_34 = arith.constant 144 : index
    %63 = vector.load %arg4[%c0_33, %c144_34] : memref<24x512xf32, #tpu.memory_space<vmem>>, vector<24x256xf32>
    %c168 = arith.constant 168 : index
    %c0_35 = arith.constant 0 : index
    %64 = vector.load %arg5[%c168, %c0_35] : memref<216x256xf32, #tpu.memory_space<vmem>>, vector<24x256xf32>
    tpu.vector_store %arg5[%c168, %c0_35], %63 {strides = array<i32>} : memref<216x256xf32, #tpu.memory_space<vmem>>, vector<24x256xf32>,
    %c0_36 = arith.constant 0 : index
    %c145 = arith.constant 145 : index
    %65 = vector.load %arg4[%c0_36, %c145] : memref<24x512xf32, #tpu.memory_space<vmem>>, vector<24x256xf32>
    %cst_37 = arith.constant 0.000000e+00 : f32
    %66 = vector.broadcast %cst_37 : f32 to vector<24x256xf32>
    %67 = vector.shape_cast %28 : vector<1x256xi1> to vector<1x256xi1>
    %68 = vector.broadcast %67 : vector<1x256xi1> to vector<24x256xi1>
    %69 = arith.select %68, %65, %66 : vector<24x256xi1>, vector<24x256xf32>
    %c192 = arith.constant 192 : index
    %c0_38 = arith.constant 0 : index
    %70 = vector.load %arg5[%c192, %c0_38] : memref<216x256xf32, #tpu.memory_space<vmem>>, vector<24x256xf32>
    tpu.vector_store %arg5[%c192, %c0_38], %69 {strides = array<i32>} : memref<216x256xf32, #tpu.memory_space<vmem>>, vector<24x256xf32>,
    %c0_39 = arith.constant 0 : index
    %c0_40 = arith.constant 0 : index
    %71 = vector.load %arg2[%c0_39, %c0_40] : memref<8x216xbf16, #tpu.memory_space<vmem>>, vector<8x216xbf16>
    %c0_41 = arith.constant 0 : index
    %c0_42 = arith.constant 0 : index
    %72 = vector.load %arg5[%c0_41, %c0_42] : memref<216x256xf32, #tpu.memory_space<vmem>>, vector<216x256xf32>
    %73 = arith.truncf %72 : vector<216x256xf32> to vector<216x256xbf16>
    %cst_43 = arith.constant dense<0.000000e+00> : vector<8x256xf32>
    %74 = tpu.matmul %71, %73, %cst_43 {dimension_numbers = #tpu.dot_dimension_numbers<[1], [0], [0], [1], [0, 0, 1, 1], [], []>} : vector<8x216xbf16>, vector<216x256xbf16>, vector<8x256xf32> -> vector<8x256xf32>
    %cst_44 = arith.constant dense<0.000000e+00> : vector<8xf32>
    %75 = vector.multi_reduction <add>, %74, %cst_44 [1] : vector<8x256xf32> to vector<8xf32>
    %76 = vector.shape_cast %75 : vector<8xf32> to vector<8x1xf32>
    %cst_45 = arith.constant 3.906250e-03 : f32
    %77 = vector.broadcast %cst_45 : f32 to vector<8x1xf32>
    %78 = arith.mulf %76, %77 : vector<8x1xf32>
    %79 = vector.broadcast %78 : vector<8x1xf32> to vector<8x256xf32>
    %80 = arith.subf %74, %79 : vector<8x256xf32>
    %81 = arith.mulf %80, %80 : vector<8x256xf32>
    %cst_46 = arith.constant dense<0.000000e+00> : vector<8xf32>
    %82 = vector.multi_reduction <add>, %81, %cst_46 [1] : vector<8x256xf32> to vector<8xf32>
    %83 = vector.shape_cast %82 : vector<8xf32> to vector<8x1xf32>
    %cst_47 = arith.constant 3.906250e-03 : f32
    %84 = vector.broadcast %cst_47 : f32 to vector<8x1xf32>
    %85 = arith.mulf %83, %84 : vector<8x1xf32>
    %cst_48 = arith.constant 9.99999974E-6 : f32
    %86 = vector.broadcast %cst_48 : f32 to vector<8x1xf32>
    %87 = arith.addf %85, %86 : vector<8x1xf32>
    %88 = math.rsqrt %87 : vector<8x1xf32>
    %89 = vector.broadcast %88 : vector<8x1xf32> to vector<8x256xf32>
    %90 = arith.mulf %80, %89 : vector<8x256xf32>
    %cst_49 = arith.constant 5.000000e-01 : f32
    %91 = vector.broadcast %cst_49 : f32 to vector<8x256xf32>
    %92 = arith.mulf %91, %90 : vector<8x256xf32>
    %cst_50 = arith.constant 0.707106769 : f32
    %93 = vector.broadcast %cst_50 : f32 to vector<8x256xf32>
    %94 = arith.mulf %90, %93 : vector<8x256xf32>
    %95 = math.absf %94 : vector<8x256xf32>
    %cst_51 = arith.constant 0.327591091 : f32
    %96 = vector.broadcast %cst_51 : f32 to vector<8x256xf32>
    %97 = arith.mulf %96, %95 : vector<8x256xf32>
    %cst_52 = arith.constant 1.000000e+00 : f32
    %98 = vector.broadcast %cst_52 : f32 to vector<8x256xf32>
    %99 = arith.addf %98, %97 : vector<8x256xf32>
    %cst_53 = arith.constant 1.000000e+00 : f32
    %100 = vector.broadcast %cst_53 : f32 to vector<8x256xf32>
    %101 = arith.divf %100, %99 : vector<8x256xf32>
    %cst_54 = arith.constant 1.06140542 : f32
    %102 = vector.broadcast %cst_54 : f32 to vector<8x256xf32>
    %103 = arith.mulf %102, %101 : vector<8x256xf32>
    %cst_55 = arith.constant -1.45315206 : f32
    %104 = vector.broadcast %cst_55 : f32 to vector<8x256xf32>
    %105 = arith.addf %103, %104 : vector<8x256xf32>
    %106 = arith.mulf %105, %101 : vector<8x256xf32>
    %cst_56 = arith.constant 1.42141378 : f32
    %107 = vector.broadcast %cst_56 : f32 to vector<8x256xf32>
    %108 = arith.addf %106, %107 : vector<8x256xf32>
    %109 = arith.mulf %108, %101 : vector<8x256xf32>
    %cst_57 = arith.constant -0.284496725 : f32
    %110 = vector.broadcast %cst_57 : f32 to vector<8x256xf32>
    %111 = arith.addf %109, %110 : vector<8x256xf32>
    %112 = arith.mulf %111, %101 : vector<8x256xf32>
    %cst_58 = arith.constant 0.254829586 : f32
    %113 = vector.broadcast %cst_58 : f32 to vector<8x256xf32>
    %114 = arith.addf %112, %113 : vector<8x256xf32>
    %115 = arith.mulf %114, %101 : vector<8x256xf32>
    %cst_59 = arith.constant 0.000000e+00 : f32
    %116 = vector.broadcast %cst_59 : f32 to vector<8x256xf32>
    %117 = arith.subf %116, %95 : vector<8x256xf32>
    %118 = arith.mulf %117, %95 : vector<8x256xf32>
    %119 = math.exp %118 : vector<8x256xf32>
    %120 = arith.mulf %115, %119 : vector<8x256xf32>
    %cst_60 = arith.constant 1.000000e+00 : f32
    %121 = vector.broadcast %cst_60 : f32 to vector<8x256xf32>
    %122 = arith.subf %121, %120 : vector<8x256xf32>
    %cst_61 = arith.constant 0.000000e+00 : f32
    %123 = vector.broadcast %cst_61 : f32 to vector<8x256xf32>
    %124 = arith.cmpf oge, %94, %123 : vector<8x256xf32>
    %cst_62 = arith.constant 0.000000e+00 : f32
    %125 = vector.broadcast %cst_62 : f32 to vector<8x256xf32>
    %126 = arith.subf %125, %122 : vector<8x256xf32>
    %127 = arith.select %124, %122, %126 : vector<8x256xi1>, vector<8x256xf32>
    %cst_63 = arith.constant 1.000000e+00 : f32
    %128 = vector.broadcast %cst_63 : f32 to vector<8x256xf32>
    %129 = arith.addf %128, %127 : vector<8x256xf32>
    %130 = arith.mulf %92, %129 : vector<8x256xf32>
    %131 = arith.truncf %130 : vector<8x256xf32> to vector<8x256xbf16>
    %c0_64 = arith.constant 0 : index
    %c0_65 = arith.constant 0 : index
    %c0_66 = arith.constant 0 : index
    %132 = vector.load %arg3[%c0_64, %c0_65, %c0_66] : memref<1x8x256xbf16, #tpu.memory_space<vmem>>, vector<1x8x256xbf16>
    %133 = vector.shape_cast %132 : vector<1x8x256xbf16> to vector<8x256xbf16>
    %134 = vector.shape_cast %131 : vector<8x256xbf16> to vector<1x8x256xbf16>
    tpu.vector_store %arg3[%c0_64, %c0_65, %c0_66], %134 {strides = array<i32>} : memref<1x8x256xbf16, #tpu.memory_space<vmem>>, vector<1x8x256xbf16>,
    return
  }
  func.func @transform_0(%arg0: i32) -> (i32, i32, i32) {
    %c0_i32 = arith.constant 0 : i32
    %c0_i32_0 = arith.constant 0 : i32
    %c0_i32_1 = arith.constant 0 : i32
    return %arg0, %c0_i32, %c0_i32_0 : i32, i32, i32
  }
  func.func @transform_1(%arg0: i32) -> (i32, i32) {
    %c0_i32 = arith.constant 0 : i32
    %c0_i32_0 = arith.constant 0 : i32
    %c0_i32_1 = arith.constant 0 : i32
    return %c0_i32, %c0_i32_0 : i32, i32
  }
  func.func @transform_2(%arg0: i32) -> (i32, i32, i32) {
    %c0_i32 = arith.constant 0 : i32
    %c0_i32_0 = arith.constant 0 : i32
    %c0_i32_1 = arith.constant 0 : i32
    return %arg0, %c0_i32, %c0_i32_0 : i32, i32, i32
  }
}

</mosaic_0001>

<bundles_post_ra>
// kernel: unet_forward.6
= control target key start
LH: loop header
LB: loop body
LE: loop exit
PB: predicated region body
PF: predicated region fallthrough
CT: control target
= control target key end

     0   :  { %s563_s9 = smov 0   ;;  %s646_s0 = inlined_call_operand.vmem [shape: bf16[2,8,64], index: 0, kind: input, shape index: {}]   ;;  %s647_s1 = inlined_call_operand.vmem [shape: bf16[16,72], index: 1, kind: input, shape index: {}]   ;;  %s648_s2 = inlined_call_operand.vmem [shape: bf16[2,16,64], index: 2, kind: output, shape index: {}]  }
   0x1 LB: > { %s485_s10 = sadd.s32 4294967295, %s537_s9   ;;  %p489_p0 = scmp.ge.s32.totalorder %s537_s9, 1  ;;  %s537_s9 = sphi %s563_s9, %s12_s9  }
   0x2   : > { %p111_p1 = scmp.lt.s32.totalorder %s537_s9, 3 }
   0x4   : > { %p112_p2 = pnand %p489_p0, %p111_p1 }
   0x5   : > { %p132_p3 = scmp.lt.s32.totalorder (!%p112_p2), %s485_s10, 1  ;;  %s540_s12 = smov (!%p112_p2), 7  }
   0x6   : > { %115 = sbr.rel (%p112_p2) target bundleno = 635 (0x27b), region = 28  ;;  %s541_s16 = smov (!%p112_p2), 9  }
   0x7   : > { %s542_s17 = smov (!%p112_p2), 119   ;;  %s543_s18 = smov (!%p112_p2), 120  }
   0x8   : > { %s544_s19 = smov (!%p112_p2), 121   ;;  %s545_s20 = smov (!%p112_p2), 127  }
   0x9   : > { %s546_s21 = smov (!%p112_p2), 8   ;;  %s547_s22 = smov (!%p112_p2), 1  }
   0xb   : > { %v539_v0 = vmov 0.0   ;;  %vm144_vm0 = vcmask 523264   ;;  %s654_s10 = smov (!%p132_p3, %s485_s10), 1  ;;  %v158_v5 = vlaneseq  ;;  %vm211_vm1 = vcmask 56320   ;;  %v501_v46 = vld [vmem:[%s647_s1] sm:$0xff] }
   0xc   : > { %143 = vst [vmem:[#allocation2 + $0x8] sm:$0xff] %v539_v0  ;;  %s490_s11 = sshll.u32 %s654_s10, 2  ;;  %207 = vrot.lane.b32.xlu2 %v539_v0, %s540_s12  ;;  %vm283_vm4 = vcmask 1043456   ;;  %vm224_vm5 = vcmask 7168   ;;  %vm184_vm6 = vcmask 72704   ;;  %vm197_vm7 = vcmask 64512  }
   0xd   : > { %149 = vst.msk [vmem:[#allocation3] sm:$0xff] %vm144_vm0, %v539_v0  ;;  %s135_s15 = scalar_lea.vmem %s646_s0, %s490_s11  ;;  %v159_v7 = vand.u32 127, %v158_v5  ;;  %vm279_vm8 = vcmask 588800   ;;  %s500_s25 = sshll.u32 %s654_s10, 3 }
   0xe   : > { %150 = vst.msk [vmem:[#allocation3 + $0x8] sm:$0xff] %vm144_vm0, %v539_v0  ;;  %v146_v1 = vld [vmem:[%s135_s15] sm:$0xf]  ;;  %s140_s28 = scalar_lea.vmem %s648_s2, %s500_s25 }
   0xf   : > { %151 = vst.msk [vmem:[#allocation3 + $0x10] sm:$0xff] %vm144_vm0, %v539_v0  ;;  %v147_v2 = vunpack.c.l.bf16 %v146_v1  ;;  %v164_v8 = vand.u32 7, %v159_v7 }
  0x10   : > { %152 = vst.msk [vmem:[#allocation3 + $0x18] sm:$0xff] %vm144_vm0, %v539_v0 }
  0x11   : > { %153 = vst.msk [vmem:[#allocation3 + $0x20] sm:$0xff] %vm144_vm0, %v539_v0  ;;  %vm588_vm2 = vcmp.ne.s32.totalorder %v164_v8, 7  ;;  %vm599_vm3 = vcmp.ne.s32.totalorder %v164_v8, 0 }
  0x12   : > { %148 = vst.msk [vmem:[#allocation2 + $0x8] sm:$0xff] %vm144_vm0, %v147_v2 }
  0x13   : > { %154 = vst.msk [vmem:[#allocation3 + $0x28] sm:$0xff] %vm144_vm0, %v539_v0 }
  0x14   : > { %155 = vst.msk [vmem:[#allocation3 + $0x30] sm:$0xff] %vm144_vm0, %v539_v0  ;;  %180 = vrot.lane.b32.xlu2 %v539_v0, %s541_s16 }
  0x15   : > { %156 = vst.msk [vmem:[#allocation3 + $0x38] sm:$0xff] %vm144_vm0, %v539_v0 }
  0x16   : > { %157 = vst.msk [vmem:[#allocation3 + $0x40] sm:$0xff] %vm144_vm0, %v539_v0 }
  0x19   : > { %v251_v3 = vld [vmem:[#allocation2 + $0x8] sm:$0xff] }
  0x1a   : > { %253 = vrot.lane.b32.xlu0 %v251_v3, %s542_s17  ;;  %247 = vrot.lane.b32.xlu1 %v251_v3, %s543_s18  ;;  %230 = vst.msk [vmem:[#allocation3 + $0x20] sm:$0xff] %vm144_vm0, %v251_v3 }
  0x1c   : > { %209 = vrot.lane.b32.xlu2 %v251_v3, %s540_s12 }
  0x21   : > { %v264_v31 = vld [vmem:[#allocation3 + $0x20] sm:$0xff] }
  0x22   : > { %240 = vrot.lane.b32.xlu0 %v251_v3, %s544_s19  ;;  %233 = vrot.lane.b32.xlu1 %v251_v3, %s545_s20 }
  0x24   : > { %195 = vrot.lane.b32.xlu2 %v251_v3, %s546_s21 }
  0x2a   : > { %220 = vrot.lane.b32.xlu0 %v539_v0, %s547_s22  ;;  %222 = vrot.lane.b32.xlu1 %v251_v3, %s547_s22 }
  0x32   : > { %182 = vrot.lane.b32.xlu0 %v251_v3, %s541_s16  ;;  %193 = vrot.lane.b32.xlu1 %v539_v0, %s546_s21 }
  0x66   : > { %v208_v4 = vpop.permute.xlu2 %207 }
  0x6e   : > { %v181_v6 = vpop.permute.xlu2 %180 }
  0x76   : > { %v210_v9 = vpop.permute.xlu2 %209 }
  0x77   : > { %v212_v11 = vsel %vm211_vm1, %v208_v4, %v210_v9 }
  0x78   : > { %v214_v12 = vsel %vm588_vm2, %v212_v11, 0.0 }
  0x79   : > { %215 = vst.msk [vmem:[#allocation3 + $0x10] sm:$0xff] %vm144_vm0, %v214_v12 }
  0x7e   : > { %v196_v34 = vpop.permute.xlu2 %195 }
  0x80   : > { %v262_v40 = vld [vmem:[#allocation3 + $0x10] sm:$0xff] }
  0x8c   : > { %v254_v13 = vpop.permute.xlu0 %253  ;;  %v248_v14 = vpop.permute.xlu1 %247 }
  0x8d   : > { %v256_v15 = vsel %vm588_vm2, %v254_v13, 0.0  ;;  %250 = vst.msk [vmem:[#allocation3 + $0x38] sm:$0xff] %vm144_vm0, %v248_v14 }
  0x8e   : > { %257 = vst.msk [vmem:[#allocation3 + $0x40] sm:$0xff] %vm144_vm0, %v256_v15 }
  0x94   : > { %v241_v17 = vpop.permute.xlu0 %240  ;;  %v234_v18 = vpop.permute.xlu1 %233  ;;  %v267_v28 = vld [vmem:[#allocation3 + $0x38] sm:$0xff] }
  0x95   : > { %v243_v19 = vsel %vm599_vm3, %v241_v17, 0.0  ;;  %v236_v20 = vsel %vm588_vm2, %v234_v18, 0.0  ;;  %v268_v21 = vld [vmem:[#allocation3 + $0x40] sm:$0xff] }
  0x96   : > { %244 = vst.msk [vmem:[#allocation3 + $0x30] sm:$0xff] %vm144_vm0, %v243_v19  ;;  %v273_v22 = vpack.c.bf16 %v268_v21, %v268_v21 }
  0x97   : > { %237 = vst.msk [vmem:[#allocation3 + $0x28] sm:$0xff] %vm144_vm0, %v236_v20 }
  0x98   : > { %v285_v23 = vsel %vm283_vm4, %v273_v22, 0 }
  0x99   : > { %290 = vmatpush.bf16.msra.mxu0 %v285_v23 }
  0x9c   : > { %v221_v24 = vpop.permute.xlu0 %220  ;;  %v223_v25 = vpop.permute.xlu1 %222 }
  0x9d   : > { %v225_v26 = vsel %vm224_vm5, %v221_v24, %v223_v25  ;;  %v266_v27 = vld [vmem:[#allocation3 + $0x30] sm:$0xff] }
  0x9e   : > { %v227_v29 = vsel %vm599_vm3, %v225_v26, 0.0  ;;  %v272_v30 = vpack.c.bf16 %v267_v28, %v266_v27  ;;  %v265_v32 = vld [vmem:[#allocation3 + $0x28] sm:$0xff] }
  0x9f   : > { %228 = vst.msk [vmem:[#allocation3 + $0x18] sm:$0xff] %vm144_vm0, %v227_v29  ;;  %v271_v33 = vpack.c.bf16 %v265_v32, %v264_v31 }
  0xa0   : > { %291 = vmatpush.bf16.msra.mxu0 %v272_v30 }
  0xa4   : > { %292 = vmatpush.bf16.msra.mxu0 %v271_v33  ;;  %v183_v35 = vpop.permute.xlu0 %182  ;;  %v194_v36 = vpop.permute.xlu1 %193 }
  0xa5   : > { %v185_v37 = vsel %vm184_vm6, %v181_v6, %v183_v35  ;;  %v198_v38 = vsel %vm197_vm7, %v194_v36, %v196_v34 }
  0xa6   : > { %v187_v39 = vsel %vm599_vm3, %v185_v37, 0.0  ;;  %200 = vst.msk [vmem:[#allocation3 + $0x8] sm:$0xff] %vm144_vm0, %v198_v38  ;;  %v263_v41 = vld [vmem:[#allocation3 + $0x18] sm:$0xff] }
  0xa7   : > { %188 = vst.msk [vmem:[#allocation3] sm:$0xff] %vm144_vm0, %v187_v39  ;;  %v270_v42 = vpack.c.bf16 %v263_v41, %v262_v40 }
  0xa9   : > { %293 = vmatpush.bf16.msra.mxu0 %v270_v42 }
  0xad   : > { %v261_v43 = vld [vmem:[#allocation3 + $0x8] sm:$0xff] }
  0xae   : > { %v260_v44 = vld [vmem:[#allocation3] sm:$0xff] }
  0xaf   : > { %v269_v45 = vpack.c.bf16 %v261_v43, %v260_v44 }
  0xb1   : > { %294 = vmatpush.bf16.msra.mxu0 %v269_v45 }
  0xb4   : > { %497 = vmatmul.msk.bf16.vlgmr.msra.gmra.mxu0 %vm279_vm8, %v501_v46  ;;  %vm427_vm8 = vcmask 519168  }
 0x131   : > { %v296_v47 = vpop.f32.mrf.mxu0 }
 0x132   : > { %v301_v48 = vsel %vm144_vm0, %v296_v47, 0.0 }
 0x133   : > { %302 = vadd.xlane.f32.xlu0 %v301_v48 }
 0x139   : > { %v298_v49 = vpop.f32.mrf.mxu0 }
 0x13a   : > { %v304_v50 = vsel %vm144_vm0, %v298_v49, 0.0 }
 0x13b   : > { %305 = vadd.xlane.f32.xlu1 %v304_v50 }
 0x1a6   : > { %v303_v51 = vpop.xlane.xlu0 %302 }
 0x1a7   : > { %v307_v52 = vmul.f32 0.015625, %v303_v51 }
 0x1a9   : > { %v309_v53 = vsub.f32 %v296_v47, %v307_v52 }
 0x1ab   : > { %v311_v54 = vmul.f32 %v309_v53, %v309_v53 }
 0x1ad   : > { %v313_v55 = vsel %vm144_vm0, %v311_v54, 0.0 }
 0x1ae   : > { %314 = vadd.xlane.f32.xlu2 %v313_v55  ;;  %v306_v56 = vpop.xlane.xlu1 %305 }
 0x1af   : > { %v308_v57 = vmul.f32 0.015625, %v306_v56 }
 0x1b1   : > { %v310_v58 = vsub.f32 %v298_v49, %v308_v57 }
 0x1b3   : > { %v312_v59 = vmul.f32 %v310_v58, %v310_v58 }
 0x1b5   : > { %v316_v60 = vsel %vm144_vm0, %v312_v59, 0.0 }
 0x1b6   : > { %317 = vadd.xlane.f32.xlu2 %v316_v60 }
 0x221   : > { %v315_v61 = vpop.xlane.xlu2 %314 }
 0x222   : > { %v319_v62 = vmul.f32 0.015625, %v315_v61 }
 0x224   : > { %v321_v63 = vadd.f32 1e-05, %v319_v62 }
 0x226   : > { %519 = vrsqrt.f32 %v321_v63  ;;  %vm329_vm10 = vweird.f32 %v321_v63 }
 0x229   : > { %v318_v0 = vpop.xlane.xlu2 %317 }
 0x22a   : > { %v320_v1 = vmul.f32 0.015625, %v318_v0 }
 0x22c   : > { %v520_v2 = vpop.eup %519  ;;  %v322_v3 = vadd.f32 1e-05, %v320_v1 }
 0x22d   : > { %v324_v4 = vmul.f32 %v520_v2, %v321_v63  ;;  %vm330_vm9 = vweird.f32 %v520_v2 }
 0x22e   : > { %521 = vrsqrt.f32 %v322_v3  ;;  %vm331_vm11 = vmor %vm329_vm10, %vm330_vm9  ;;  %vm339_vm13 = vweird.f32 %v322_v3 }
 0x22f   : > { %v325_v5 = vmul.f32 %v520_v2, %v324_v4 }
 0x231   : > { %v326_v6 = vmul.f32 0.5, %v325_v5 }
 0x233   : > { %v327_v7 = vsub.f32 1.5, %v326_v6 }
 0x234   : > { %v522_v8 = vpop.eup %521 }
 0x235   : > { %v328_v9 = vmul.f32 %v520_v2, %v327_v7  ;;  %v334_v10 = vmul.f32 %v522_v8, %v322_v3  ;;  %vm340_vm12 = vweird.f32 %v522_v8 }
 0x236   : > { %vm341_vm14 = vmor %vm339_vm13, %vm340_vm12 }
 0x237   : > { %v332_v11 = vsel %vm331_vm11, %v520_v2, %v328_v9  ;;  %v335_v12 = vmul.f32 %v522_v8, %v334_v10 }
 0x238   : > { %v623_v13 = vmul.f32 %v332_v11, %v309_v53 }
 0x239   : > { %v336_v14 = vmul.f32 0.5, %v335_v12 }
 0x23a   : > { %v626_v15 = vmul.f32 0.70710677, %v623_v13  ;;  %v345_v11 = vmul.f32 0.5, %v623_v13 }
 0x23b   : > { %v337_v16 = vsub.f32 1.5, %v336_v14 }
 0x23c   : > { %v349_v17 = vand.u32 2147483647, %v626_v15  ;;  %vm415_vm7 = vcmp.ge.f32.partialorder %v626_v15, 0.0 }
 0x23d   : > { %v338_v18 = vmul.f32 %v522_v8, %v337_v16 }
 0x23e   : > { %v351_v19 = vmul.f32 0.3275911, %v349_v17  ;;  %v403_v38 = vsub.f32 0.0, %v349_v17 }
 0x23f   : > { %v342_v20 = vsel %vm341_vm14, %v522_v8, %v338_v18 }
 0x240   : > { %v353_v21 = vadd.f32 1.0, %v351_v19  ;;  %v629_v22 = vmul.f32 %v342_v20, %v310_v58  ;;  %v405_v44 = vmul.f32 %v403_v38, %v349_v17 }
 0x242   : > { %523 = vrcp.f32 %v353_v21  ;;  %v632_v23 = vmul.f32 0.70710677, %v629_v22  ;;  %v366_v30 = vand.u32 2147483648, %v353_v21  ;;  %v364_v32 = vand.u32 2147483647, %v353_v21 }
 0x243   : > { %vm360_vm0 = vweird.f32 %v353_v21  ;;  %v407_v51 = vmul.f32 1.442695, %v405_v44 }
 0x244   : > { %v350_v24 = vand.u32 2147483647, %v632_v23  ;;  %v367_v34 = vor.u32 1.1754944e-38, %v366_v30  ;;  %vm365_vm2 = vcmp.eq.f32.partialorder %v364_v32, 8.507059e+37  ;;  %vm416_vm9 = vcmp.ge.f32.partialorder %v632_v23, 0.0 }
 0x246   : > { %v352_v25 = vmul.f32 0.3275911, %v350_v24  ;;  %v404_v55 = vsub.f32 0.0, %v350_v24 }
 0x248   : > { %v524_v26 = vpop.eup %523  ;;  %v354_v28 = vadd.f32 1.0, %v352_v25  ;;  %v406_v60 = vmul.f32 %v404_v55, %v350_v24  ;;  %v346_v24 = vmul.f32 0.5, %v629_v22 }
 0x249   : > { %v356_v27 = vmul.f32 %v524_v26, %v353_v21  ;;  %vm361_vm15 = vweird.f32 %v524_v26 }
 0x24a   : > { %525 = vrcp.f32 %v354_v28  ;;  %vm362_vm1 = vmor %vm360_vm0, %vm361_vm15  ;;  %v381_v43 = vand.u32 2147483648, %v354_v28  ;;  %v379_v46 = vand.u32 2147483647, %v354_v28  ;;  %vm375_vm4 = vweird.f32 %v354_v28 }
 0x24b   : > { %v357_v29 = vsub.f32 1.0, %v356_v27  ;;  %527 = vpow2.f32 %v407_v51  ;;  %v409_v1 = vmul.f32 1.442695, %v406_v60 }
 0x24c   : > { %v382_v50 = vor.u32 1.1754944e-38, %v381_v43  ;;  %vm380_vm6 = vcmp.eq.f32.partialorder %v379_v46, 8.507059e+37 }
 0x24d   : > { %v358_v31 = vmul.f32 %v524_v26, %v357_v29  ;;  %529 = vpow2.f32 %v409_v1 }
 0x24f   : > { %v359_v33 = vadd.f32 %v524_v26, %v358_v31 }
 0x250   : > { %v526_v35 = vpop.eup %525 }
 0x251   : > { %v363_v36 = vsel %vm362_vm1, %v524_v26, %v359_v33  ;;  %v371_v39 = vmul.f32 %v526_v35, %v354_v28  ;;  %vm376_vm3 = vweird.f32 %v526_v35  ;;  %v528_v2 = vpop.eup %527 }
 0x252   : > { %v368_v37 = vsel %vm365_vm2, %v367_v34, %v363_v36  ;;  %vm377_vm5 = vmor %vm375_vm4, %vm376_vm3 }
 0x253   : > { %v385_v40 = vmul.f32 1.0614054, %v368_v37  ;;  %v372_v41 = vsub.f32 1.0, %v371_v39  ;;  %v530_v16 = vpop.eup %529 }
 0x255   : > { %v387_v42 = vadd.f32 -1.4531521, %v385_v40  ;;  %v373_v45 = vmul.f32 %v526_v35, %v372_v41 }
 0x257   : > { %v389_v47 = vmul.f32 %v387_v42, %v368_v37  ;;  %v374_v48 = vadd.f32 %v526_v35, %v373_v45 }
 0x259   : > { %v391_v49 = vadd.f32 1.4214138, %v389_v47  ;;  %v378_v52 = vsel %vm377_vm5, %v526_v35, %v374_v48 }
 0x25a   : > { %v383_v54 = vsel %vm380_vm6, %v382_v50, %v378_v52 }
 0x25b   : > { %v393_v53 = vmul.f32 %v391_v49, %v368_v37  ;;  %v386_v56 = vmul.f32 1.0614054, %v383_v54 }
 0x25d   : > { %v395_v57 = vadd.f32 -0.28449672, %v393_v53  ;;  %v388_v58 = vadd.f32 -1.4531521, %v386_v56 }
 0x25f   : > { %v397_v59 = vmul.f32 %v395_v57, %v368_v37  ;;  %v390_v61 = vmul.f32 %v388_v58, %v383_v54 }
 0x261   : > { %v399_v62 = vadd.f32 0.2548296, %v397_v59  ;;  %v392_v63 = vadd.f32 1.4214138, %v390_v61 }
 0x263   : > { %v401_v0 = vmul.f32 %v399_v62, %v368_v37  ;;  %v394_v3 = vmul.f32 %v392_v63, %v383_v54 }
 0x265   : > { %v411_v4 = vmul.f32 %v528_v2, %v401_v0  ;;  %v396_v5 = vadd.f32 -0.28449672, %v394_v3 }
 0x267   : > { %v413_v6 = vsub.f32 1.0, %v411_v4  ;;  %v398_v7 = vmul.f32 %v396_v5, %v383_v54 }
 0x269   : > { %v417_v8 = vsub.f32 0.0, %v413_v6  ;;  %v400_v9 = vadd.f32 0.2548296, %v398_v7 }
 0x26b   : > { %v419_v10 = vsel %vm415_vm7, %v413_v6, %v417_v8  ;;  %v402_v14 = vmul.f32 %v400_v9, %v383_v54 }
 0x26c   : > { %v421_v12 = vadd.f32 1.0, %v419_v10 }
 0x26d   : > { %v412_v18 = vmul.f32 %v530_v16, %v402_v14 }
 0x26e   : > { %v423_v17 = vmul.f32 %v421_v12, %v345_v11 }
 0x26f   : > { %v414_v20 = vsub.f32 1.0, %v412_v18 }
 0x270   : > { %v425_v19 = vpack.c.bf16 %v423_v17, %v423_v17 }
 0x271   : > { %v418_v21 = vsub.f32 0.0, %v414_v20 }
 0x272   : > { %428 = vst.msk [vmem:[%s140_s28] sm:$0xf] %vm427_vm8, %v425_v19 }
 0x273   : > { %v420_v15 = vsel %vm416_vm9, %v414_v20, %v418_v21 }
 0x274   : > { %v422_v13 = vadd.f32 1.0, %v420_v15 }
 0x276   : > { %v424_v25 = vmul.f32 %v422_v13, %v346_v24 }
 0x278   : > { %v426_v26 = vpack.c.bf16 %v424_v25, %v424_v25 }
 0x27a   : > { %429 = vst.msk [vmem:[%s140_s28 + $0x4] sm:$0xf] %vm427_vm8, %v426_v26 }
 0x27b PF: > { %s12_s9 = sadd.s32 1, %s537_s9  }
 0x27c   : > { %p9_p4 = scmp.ge.s32.totalorder %s12_s9, 4  }
 0x27e   :  { %11 = sbr.rel (!%p9_p4) target bundleno = 1 (0x1), region = 58 }

// kernel: unet_forward.5
= control target key start
LH: loop header
LB: loop body
LE: loop exit
PB: predicated region body
PF: predicated region fallthrough
CT: control target
= control target key end

     0   :  { %s714_s9 = smov 0   ;;  %s826_s0 = inlined_call_operand.vmem [shape: bf16[2,4,256], index: 0, kind: input, shape index: {}]   ;;  %s827_s1 = inlined_call_operand.vmem [shape: bf16[8,72], index: 1, kind: input, shape index: {}]   ;;  %s828_s2 = inlined_call_operand.vmem [shape: bf16[2,8,256], index: 2, kind: output, shape index: {}]  }
   0x1 LB: > { %s640_s10 = sadd.s32 4294967295, %s688_s9   ;;  %p644_p0 = scmp.ge.s32.totalorder %s688_s9, 1  ;;  %s688_s9 = sphi %s714_s9, %s12_s9  }
   0x2   : > { %p112_p1 = scmp.lt.s32.totalorder %s688_s9, 3 }
   0x4   : > { %p113_p2 = pnand %p644_p0, %p112_p1 }
   0x5   : > { %p134_p3 = scmp.lt.s32.totalorder (!%p113_p2), %s640_s10, 1  ;;  %s691_s15 = smov (!%p113_p2), 15  }
   0x6   : > { %116 = sbr.rel (%p113_p2) target bundleno = 713 (0x2c9), region = 28  ;;  %s692_s16 = smov (!%p113_p2), 127  }
   0x7   : > { %s693_s17 = smov (!%p113_p2), 113   ;;  %s694_s18 = smov (!%p113_p2), 112  }
   0x8   : > { %s695_s19 = smov (!%p113_p2), 111   ;;  %s696_s20 = smov (!%p113_p2), 1  }
   0x9   : > { %s697_s21 = smov (!%p113_p2), 17   ;;  %s698_s22 = smov (!%p113_p2), 16  }
   0xb   : > { %v690_v0 = vmov 0.0   ;;  %s838_s10 = smov (!%p134_p3, %s640_s10), 1  ;;  %v168_v38 = vlaneseq  ;;  %vm271_vm0 = vcmask 121856   ;;  %vm355_vm3 = vcmask 924672  }
   0xc   : > { %145 = vst [vmem:[#allocation2] sm:$0xff] %v690_v0  ;;  %s653_s11 = sshll.u32 %s838_s10, 2  ;;  %vm330_vm5 = vcmask 1039360   ;;  %vm380_vm7 = vcmask 916480   ;;  %vm403_vm8 = vcmask 908288   ;;  %vm296_vm9 = vcmask 7168  }
   0xd   : > { %146 = vst [vmem:[#allocation2 + $0x8] sm:$0xff] %v690_v0  ;;  %s138_s14 = scalar_lea.vmem %s826_s0, %s653_s11  ;;  %v169_v39 = vand.u32 127, %v168_v38  ;;  %vm219_vm10 = vcmask 138240   ;;  %vm445_vm11 = vcmask 1043456   ;;  %vm244_vm12 = vcmask 130048   ;;  %s654_s25 = sshll.u32 %s838_s10, 3 }
   0xe   : > { %150 = vst [vmem:[#allocation3] sm:$0xff] %v690_v0  ;;  %v147_v1 = vld [vmem:[%s138_s14] sm:$0xf]  ;;  %vm441_vm13 = vcmask 588800   ;;  %s143_s28 = scalar_lea.vmem %s828_s2, %s654_s25 }
   0xf   : > { %151 = vst [vmem:[#allocation3 + $0x38] sm:$0xff] %v690_v0  ;;  %v728_v2 = vunpack.c.l.bf16 %v147_v1  ;;  %v170_v41 = vadd.s32 128, %v169_v39  ;;  %v175_v43 = vand.u32 15, %v169_v39 }
  0x10   : > { %152 = vst [vmem:[#allocation3 + $0x78] sm:$0xff] %v690_v0 }
  0x11   : > { %153 = vst [vmem:[#allocation3 + $0x58] sm:$0xff] %v690_v0  ;;  %v182_v42 = vand.u32 15, %v170_v41  ;;  %vm758_vm2 = vcmp.ne.s32.totalorder %v175_v43, 15  ;;  %vm777_vm6 = vcmp.ne.s32.totalorder %v175_v43, 0 }
  0x12   : > { %154 = vst [vmem:[#allocation3 + $0x20] sm:$0xff] %v690_v0 }
  0x13   : > { %155 = vst [vmem:[#allocation3 + $0x8] sm:$0xff] %v690_v0  ;;  %vm754_vm1 = vcmp.ne.s32.totalorder %v182_v42, 15  ;;  %vm766_vm4 = vcmp.ne.s32.totalorder %v182_v42, 0 }
  0x14   : > { %149 = vst [vmem:[#allocation2 + $0x4] sm:$0xff] %v728_v2  ;;  %v315_v19 = vld [vmem:[#allocation2 + $0xc] sm:$0xf] }
  0x15   : > { %156 = vst [vmem:[#allocation3 + $0x70] sm:$0xff] %v690_v0  ;;  %v340_v23 = vld [vmem:[#allocation2 + $0xc] sm:$0xf] }
  0x16   : > { %157 = vst [vmem:[#allocation3 + $0x80] sm:$0xff] %v690_v0  ;;  %v365_v27 = vld [vmem:[#allocation2 + $0xc] sm:$0xf] }
  0x17   : > { %158 = vst [vmem:[#allocation3 + $0x88] sm:$0xff] %v690_v0  ;;  %v388_v31 = vld [vmem:[#allocation2 + $0xc] sm:$0xf] }
  0x18   : > { %159 = vst [vmem:[#allocation3 + $0x40] sm:$0xff] %v690_v0 }
  0x19   : > { %160 = vst [vmem:[#allocation3 + $0x50] sm:$0xff] %v690_v0 }
  0x1a   : > { %161 = vst [vmem:[#allocation3 + $0x28] sm:$0xff] %v690_v0 }
  0x1b   : > { %v199_v3 = vld [vmem:[#allocation2] sm:$0xff]  ;;  %162 = vst [vmem:[#allocation3 + $0x10] sm:$0xff] %v690_v0  ;;  %v200_v4 = vld [vmem:[#allocation2 + $0x8] sm:$0xf] }
  0x1c   : > { %207 = vst [vmem:[#allocation1] ss:$2 sm:$0xff] %v199_v3  ;;  %v229_v7 = vld [vmem:[#allocation2 + $0x8] sm:$0xf] }
  0x1d   : > { %163 = vst [vmem:[#allocation3 + $0x48] sm:$0xff] %v690_v0  ;;  %v252_v11 = vld [vmem:[#allocation2 + $0x8] sm:$0xf] }
  0x1e   : > { %164 = vst [vmem:[#allocation3 + $0x30] sm:$0xff] %v690_v0  ;;  %v281_v15 = vld [vmem:[#allocation2 + $0x8] sm:$0xf] }
  0x1f   : > { %165 = vst [vmem:[#allocation3 + $0x18] sm:$0xff] %v690_v0 }
  0x20   : > { %166 = vst [vmem:[#allocation3 + $0x68] sm:$0xff] %v690_v0 }
  0x21   : > { %167 = vst [vmem:[#allocation3 + $0x60] sm:$0xff] %v690_v0 }
  0x22   : > { %209 = vst [vmem:[#allocation1 + $0x10] ss:$2 sm:$0xff] %v200_v4 }
  0x23   : > { %v731_v5 = vld.sshfl [vmem:[#allocation1] sm:$0xff pattern:$0x75316420]  ;;  %v733_v6 = vld.sshfl [vmem:[#allocation1 + $0x8] sm:$0xff pattern:$0x75316420] }
  0x24   : > { %232 = vst [vmem:[#allocation1] ss:$2 sm:$0xff] %v199_v3 }
  0x29   : > { %v735_v8 = vld.sshfl [vmem:[#allocation1 + $0x10] sm:$0xff pattern:$0x75316420] }
  0x2a   : > { %234 = vst [vmem:[#allocation1 + $0x10] ss:$2 sm:$0xff] %v229_v7 }
  0x2b   : > { %v737_v9 = vld.sshfl [vmem:[#allocation1] sm:$0xff pattern:$0x75316420]  ;;  %v739_v10 = vld.sshfl [vmem:[#allocation1 + $0x8] sm:$0xff pattern:$0x75316420] }
  0x2c   : > { %259 = vst [vmem:[#allocation1] ss:$2 sm:$0xff] %v199_v3 }
  0x31   : > { %v741_v12 = vld.sshfl [vmem:[#allocation1 + $0x10] sm:$0xff pattern:$0x75316420] }
  0x32   : > { %261 = vst [vmem:[#allocation1 + $0x10] ss:$2 sm:$0xff] %v252_v11 }
  0x33   : > { %v263_v13 = vld.sshfl [vmem:[#allocation1 + $0x8] sm:$0xff pattern:$0x75316420]  ;;  %v262_v14 = vld.sshfl [vmem:[#allocation1] sm:$0xff pattern:$0x75316420] }
  0x34   : > { %267 = vrot.lane.b32.xlu1 %v263_v13, %s691_s15  ;;  %265 = vrot.lane.b32.xlu0 %v262_v14, %s691_s15  ;;  %284 = vst [vmem:[#allocation1] ss:$2 sm:$0xff] %v199_v3 }
  0x39   : > { %v264_v16 = vld.sshfl [vmem:[#allocation1 + $0x10] sm:$0xff pattern:$0x75316420] }
  0x3a   : > { %269 = vrot.lane.b32.xlu2 %v264_v16, %s691_s15  ;;  %286 = vst [vmem:[#allocation1 + $0x10] ss:$2 sm:$0xff] %v281_v15 }
  0x3b   : > { %v287_v17 = vld.sshfl [vmem:[#allocation1] sm:$0xff pattern:$0x75316420]  ;;  %v288_v18 = vld.sshfl [vmem:[#allocation1 + $0x8] sm:$0xff pattern:$0x75316420] }
  0x3c   : > { %307 = vst [vmem:[#allocation1] ss:$2 sm:$0xff] %v728_v2 }
  0x41   : > { %v289_v20 = vld.sshfl [vmem:[#allocation1 + $0x10] sm:$0xff pattern:$0x75316420] }
  0x42   : > { %320 = vst [vmem:[#allocation1 + $0x10] ss:$2 sm:$0xff] %v315_v19 }
  0x43   : > { %v308_v21 = vld.sshfl [vmem:[#allocation1] sm:$0xff pattern:$0x75316420]  ;;  %v309_v22 = vld.sshfl [vmem:[#allocation1 + $0x8] sm:$0xff pattern:$0x75316420] }
  0x44   : > { %312 = vst [vmem:[#allocation3 + $0x88] sm:$0xf] %v308_v21 }
  0x45   : > { %313 = vst [vmem:[#allocation3 + $0x40] sm:$0xf] %v309_v22 }
  0x46   : > { %318 = vst [vmem:[#allocation1] ss:$2 sm:$0xff] %v728_v2 }
  0x49   : > { %v323_v24 = vld.sshfl [vmem:[#allocation1 + $0x10] sm:$0xff pattern:$0x75316420] }
  0x4a   : > { %345 = vst [vmem:[#allocation1 + $0x10] ss:$2 sm:$0xff] %v340_v23  ;;  %328 = vrot.lane.b32.xlu2 %v323_v24, %s692_s16 }
  0x4b   : > { %v421_v41 = vld [vmem:[#allocation3 + $0x88] sm:$0xff] }
  0x4c   : > { %v422_v45 = vld [vmem:[#allocation3 + $0x40] sm:$0xff] }
  0x4d   : > { %v322_v25 = vld.sshfl [vmem:[#allocation1 + $0x8] sm:$0xff pattern:$0x75316420]  ;;  %v321_v26 = vld.sshfl [vmem:[#allocation1] sm:$0xff pattern:$0x75316420] }
  0x4e   : > { %326 = vrot.lane.b32.xlu1 %v322_v25, %s692_s16  ;;  %324 = vrot.lane.b32.xlu0 %v321_v26, %s692_s16  ;;  %343 = vst [vmem:[#allocation1] ss:$2 sm:$0xff] %v728_v2 }
  0x51   : > { %v348_v28 = vld.sshfl [vmem:[#allocation1 + $0x10] sm:$0xff pattern:$0x75316420] }
  0x52   : > { %370 = vst [vmem:[#allocation1 + $0x10] ss:$2 sm:$0xff] %v365_v27  ;;  %353 = vrot.lane.b32.xlu2 %v348_v28, %s693_s17 }
  0x55   : > { %v346_v29 = vld.sshfl [vmem:[#allocation1] sm:$0xff pattern:$0x75316420]  ;;  %v347_v30 = vld.sshfl [vmem:[#allocation1 + $0x8] sm:$0xff pattern:$0x75316420] }
  0x56   : > { %349 = vrot.lane.b32.xlu1 %v346_v29, %s693_s17  ;;  %368 = vst [vmem:[#allocation1] ss:$2 sm:$0xff] %v728_v2 }
  0x59   : > { %v373_v32 = vld.sshfl [vmem:[#allocation1 + $0x10] sm:$0xff pattern:$0x75316420] }
  0x5a   : > { %393 = vst [vmem:[#allocation1 + $0x10] ss:$2 sm:$0xff] %v388_v31  ;;  %351 = vrot.lane.b32.xlu2 %v347_v30, %s693_s17 }
  0x5d   : > { %v371_v33 = vld.sshfl [vmem:[#allocation1] sm:$0xff pattern:$0x75316420]  ;;  %v372_v34 = vld.sshfl [vmem:[#allocation1 + $0x8] sm:$0xff pattern:$0x75316420] }
  0x5e   : > { %374 = vrot.lane.b32.xlu0 %v371_v33, %s694_s18  ;;  %391 = vst [vmem:[#allocation1] ss:$2 sm:$0xff] %v728_v2 }
  0x61   : > { %v396_v35 = vld.sshfl [vmem:[#allocation1 + $0x10] sm:$0xff pattern:$0x75316420] }
  0x62   : > { %401 = vrot.lane.b32.xlu1 %v396_v35, %s695_s19  ;;  %378 = vrot.lane.b32.xlu2 %v373_v32, %s694_s18 }
  0x65   : > { %v394_v36 = vld.sshfl [vmem:[#allocation1] sm:$0xff pattern:$0x75316420]  ;;  %v395_v37 = vld.sshfl [vmem:[#allocation1 + $0x8] sm:$0xff pattern:$0x75316420] }
  0x66   : > { %397 = vrot.lane.b32.xlu0 %v394_v36, %s695_s19 }
  0x6a   : > { %376 = vrot.lane.b32.xlu1 %v372_v34, %s694_s18  ;;  %294 = vrot.lane.b32.xlu2 %v289_v20, %s696_s20 }
  0x6e   : > { %399 = vrot.lane.b32.xlu0 %v395_v37, %s695_s19 }
  0x72   : > { %292 = vrot.lane.b32.xlu1 %v288_v18, %s696_s20  ;;  %217 = vrot.lane.b32.xlu2 %v735_v8, %s697_s21 }
  0x76   : > { %290 = vrot.lane.b32.xlu0 %v287_v17, %s696_s20 }
  0x7a   : > { %215 = vrot.lane.b32.xlu1 %v733_v6, %s697_s21  ;;  %242 = vrot.lane.b32.xlu2 %v741_v12, %s698_s22 }
  0x7e   : > { %213 = vrot.lane.b32.xlu0 %v731_v5, %s697_s21 }
  0x82   : > { %240 = vrot.lane.b32.xlu1 %v739_v10, %s698_s22 }
  0x86   : > { %238 = vrot.lane.b32.xlu0 %v737_v9, %s698_s22 }
  0x94   : > { %v270_v40 = vpop.permute.xlu2 %269 }
  0xa4   : > { %v329_v44 = vpop.permute.xlu2 %328 }
  0xa6   : > { %v268_v47 = vpop.permute.xlu1 %267  ;;  %v266_v48 = vpop.permute.xlu0 %265 }
  0xa7   : > { %v273_v49 = vsel %vm271_vm0, %v268_v47, %v270_v40  ;;  %v272_v50 = vsel %vm271_vm0, %v266_v48, %v268_v47 }
  0xa8   : > { %v277_v51 = vsel %vm754_vm1, %v273_v49, 0.0  ;;  %v276_v52 = vsel %vm758_vm2, %v272_v50, 0.0 }
  0xa9   : > { %279 = vst [vmem:[#allocation3 + $0x8] sm:$0xf] %v277_v51 }
  0xaa   : > { %278 = vst [vmem:[#allocation3 + $0x20] sm:$0xf] %v276_v52 }
  0xac   : > { %v354_v53 = vpop.permute.xlu2 %353 }
  0xb4   : > { %v352_v55 = vpop.permute.xlu2 %351 }
  0xb5   : > { %v357_v56 = vsel %vm355_vm3, %v352_v55, %v354_v53  ;;  %v417_v53 = vld [vmem:[#allocation3 + $0x20] sm:$0xff] }
  0xb6   : > { %v361_v57 = vsel %vm766_vm4, %v357_v56, 0.0  ;;  %v418_v56 = vld [vmem:[#allocation3 + $0x8] sm:$0xff] }
  0xb7   : > { %363 = vst [vmem:[#allocation3 + $0x48] sm:$0xf] %v361_v57 }
  0xbc   : > { %v379_v6 = vpop.permute.xlu2 %378 }
  0xbe   : > { %v426_v38 = vld [vmem:[#allocation3 + $0x48] sm:$0xff] }
  0xc0   : > { %v327_v58 = vpop.permute.xlu1 %326  ;;  %v325_v59 = vpop.permute.xlu0 %324 }
  0xc1   : > { %v332_v60 = vsel %vm330_vm5, %v327_v58, %v329_v44  ;;  %v331_v61 = vsel %vm330_vm5, %v325_v59, %v327_v58 }
  0xc2   : > { %v336_v62 = vsel %vm754_vm1, %v332_v60, 0.0  ;;  %v335_v63 = vsel %vm758_vm2, %v331_v61, 0.0 }
  0xc3   : > { %338 = vst [vmem:[#allocation3 + $0x28] sm:$0xf] %v336_v62  ;;  %v412_v62 = vld [vmem:[%s827_s1] sm:$0xf] }
  0xc4   : > { %337 = vst [vmem:[#allocation3 + $0x50] sm:$0xf] %v335_v63  ;;  %v295_v11 = vpop.permute.xlu2 %294 }
  0xc8   : > { %v350_v1 = vpop.permute.xlu1 %349 }
  0xc9   : > { %v356_v2 = vsel %vm355_vm3, %v350_v1, %v352_v55 }
  0xca   : > { %v360_v3 = vsel %vm777_vm6, %v356_v2, 0.0  ;;  %v424_v46 = vld [vmem:[#allocation3 + $0x28] sm:$0xff] }
  0xcb   : > { %362 = vst [vmem:[#allocation3 + $0x10] sm:$0xf] %v360_v3  ;;  %v423_v42 = vld [vmem:[#allocation3 + $0x50] sm:$0xff]  ;;  %v436_v50 = vpack.c.bf16 %v424_v46, %v422_v45 }
  0xcc   : > { %v218_v21 = vpop.permute.xlu2 %217  ;;  %v435_v48 = vpack.c.bf16 %v423_v42, %v421_v41 }
  0xd0   : > { %v375_v4 = vpop.permute.xlu0 %374 }
  0xd2   : > { %v425_v35 = vld [vmem:[#allocation3 + $0x10] sm:$0xff] }
  0xd4   : > { %v402_v5 = vpop.permute.xlu1 %401  ;;  %v243_v44 = vpop.permute.xlu2 %242 }
  0xd8   : > { %v398_v7 = vpop.permute.xlu0 %397 }
  0xdc   : > { %v377_v8 = vpop.permute.xlu1 %376 }
  0xdd   : > { %v381_v9 = vsel %vm380_vm7, %v375_v4, %v377_v8  ;;  %v382_v10 = vsel %vm380_vm7, %v377_v8, %v379_v6 }
  0xde   : > { %385 = vst [vmem:[#allocation3 + $0x30] sm:$0xf] %v381_v9 }
  0xdf   : > { %386 = vst [vmem:[#allocation3 + $0x18] sm:$0xf] %v382_v10 }
  0xe0   : > { %v400_v12 = vpop.permute.xlu0 %399 }
  0xe1   : > { %v404_v13 = vsel %vm403_vm8, %v398_v7, %v400_v12  ;;  %v405_v14 = vsel %vm403_vm8, %v400_v12, %v402_v5 }
  0xe2   : > { %v408_v15 = vsel %vm758_vm2, %v404_v13, 0.0  ;;  %v409_v16 = vsel %vm754_vm1, %v405_v14, 0.0 }
  0xe3   : > { %410 = vst [vmem:[#allocation3 + $0x68] sm:$0xf] %v408_v15 }
  0xe4   : > { %v293_v17 = vpop.permute.xlu1 %292  ;;  %411 = vst [vmem:[#allocation3 + $0x60] sm:$0xf] %v409_v16 }
  0xe5   : > { %v298_v18 = vsel %vm296_vm9, %v293_v17, %v295_v11  ;;  %v427_v31 = vld [vmem:[#allocation3 + $0x30] sm:$0xff] }
  0xe6   : > { %v302_v19 = vsel %vm766_vm4, %v298_v18, 0.0  ;;  %v428_v34 = vld [vmem:[#allocation3 + $0x18] sm:$0xff]  ;;  %v437_v37 = vpack.c.bf16 %v427_v31, %v425_v35 }
  0xe7   : > { %304 = vst [vmem:[#allocation3 + $0x80] sm:$0xf] %v302_v19  ;;  %v438_v40 = vpack.c.bf16 %v428_v34, %v426_v38 }
  0xe8   : > { %v291_v20 = vpop.permute.xlu0 %290 }
  0xe9   : > { %v297_v22 = vsel %vm296_vm9, %v291_v20, %v293_v17 }
  0xea   : > { %v301_v23 = vsel %vm777_vm6, %v297_v22, 0.0  ;;  %v429_v24 = vld [vmem:[#allocation3 + $0x68] sm:$0xff] }
  0xeb   : > { %303 = vst [vmem:[#allocation3 + $0x70] sm:$0xf] %v301_v23  ;;  %v439_v25 = vpack.c.bf16 %v429_v24, %v429_v24  ;;  %v430_v26 = vld [vmem:[#allocation3 + $0x60] sm:$0xff] }
  0xec   : > { %v216_v27 = vpop.permute.xlu1 %215  ;;  %v440_v28 = vpack.c.bf16 %v430_v26, %v430_v26 }
  0xed   : > { %v221_v29 = vsel %vm219_vm10, %v216_v27, %v218_v21  ;;  %v447_v30 = vsel %vm445_vm11, %v439_v25, 0 }
  0xee   : > { %v225_v32 = vsel %vm766_vm4, %v221_v29, 0.0  ;;  %455 = vmatpush.bf16.msra.mxu0 %v447_v30  ;;  %v450_v33 = vsel %vm445_vm11, %v440_v28, 0  ;;  %v420_v52 = vld [vmem:[#allocation3 + $0x80] sm:$0xff] }
  0xef   : > { %227 = vst [vmem:[#allocation3 + $0x38] sm:$0xf] %v225_v32  ;;  %468 = vmatpush.bf16.msra.mxu1 %v450_v33  ;;  %v434_v58 = vpack.c.bf16 %v420_v52, %v418_v56 }
  0xf0   : > { %v214_v36 = vpop.permute.xlu0 %213 }
  0xf1   : > { %v220_v39 = vsel %vm219_vm10, %v214_v36, %v216_v27 }
  0xf2   : > { %v224_v43 = vsel %vm777_vm6, %v220_v39, 0.0  ;;  %456 = vmatpush.bf16.msra.mxu0 %v437_v37  ;;  %v419_v51 = vld [vmem:[#allocation3 + $0x70] sm:$0xff] }
  0xf3   : > { %226 = vst [vmem:[#allocation3] sm:$0xf] %v224_v43  ;;  %469 = vmatpush.bf16.msra.mxu1 %v438_v40  ;;  %v433_v55 = vpack.c.bf16 %v419_v51, %v417_v53 }
  0xf4   : > { %v241_v47 = vpop.permute.xlu1 %240 }
  0xf5   : > { %v246_v49 = vsel %vm244_vm12, %v241_v47, %v243_v44 }
  0xf6   : > { %250 = vst [vmem:[#allocation3 + $0x58] sm:$0xf] %v246_v49  ;;  %457 = vmatpush.bf16.msra.mxu0 %v435_v48  ;;  %v414_v59 = vld [vmem:[#allocation3 + $0x38] sm:$0xff] }
  0xf7   : > { %470 = vmatpush.bf16.msra.mxu1 %v436_v50 }
  0xf8   : > { %v239_v54 = vpop.permute.xlu0 %238 }
  0xf9   : > { %v245_v57 = vsel %vm244_vm12, %v239_v54, %v241_v47 }
  0xfa   : > { %249 = vst [vmem:[#allocation3 + $0x78] sm:$0xf] %v245_v57  ;;  %458 = vmatpush.bf16.msra.mxu0 %v433_v55  ;;  %v413_v63 = vld [vmem:[#allocation3] sm:$0xff] }
  0xfb   : > { %471 = vmatpush.bf16.msra.mxu1 %v434_v58 }
  0xfd   : > { %v416_v60 = vld [vmem:[#allocation3 + $0x58] sm:$0xff] }
  0xfe   : > { %v432_v61 = vpack.c.bf16 %v416_v60, %v414_v59 }
 0x100   : > { %472 = vmatpush.bf16.msra.mxu1 %v432_v61 }
 0x101   : > { %v415_v0 = vld [vmem:[#allocation3 + $0x78] sm:$0xff] }
 0x102   : > { %v431_v1 = vpack.c.bf16 %v415_v0, %v413_v63 }
 0x103   : > { %650 = vmatmul.msk.bf16.vlgmr.msra.gmra.mxu1 %vm441_vm13, %v412_v62 }
 0x104   : > { %459 = vmatpush.bf16.msra.mxu0 %v431_v1 }
 0x107   : > { %649 = vmatmul.msk.bf16.vlgmr.msra.gmra.mxu0 %vm441_vm13, %v412_v62 }
 0x180   : > { %v474_v2 = vpop.f32.mrf.mxu1 }
 0x184   : > { %v461_v3 = vpop.f32.mrf.mxu0 }
 0x185   : > { %v478_v4 = vadd.f32 %v474_v2, %v461_v3 }
 0x187   : > { %479 = vadd.xlane.f32.xlu0 %v478_v4 }
 0x188   : > { %v476_v5 = vpop.f32.mrf.mxu1 }
 0x18c   : > { %v463_v6 = vpop.f32.mrf.mxu0 }
 0x1fa   : > { %v480_v7 = vpop.xlane.xlu0 %479 }
 0x1fb   : > { %v481_v8 = vmul.f32 0.00390625, %v480_v7 }
 0x1fd   : > { %v482_v9 = vsub.f32 %v461_v3, %v481_v8  ;;  %v483_v10 = vsub.f32 %v474_v2, %v481_v8 }
 0x1ff   : > { %v484_v11 = vmul.f32 %v482_v9, %v482_v9  ;;  %v485_v12 = vmul.f32 %v483_v10, %v483_v10 }
 0x201   : > { %v486_v13 = vadd.f32 %v485_v12, %v484_v11 }
 0x203   : > { %487 = vadd.xlane.f32.xlu1 %v486_v13 }
 0x276   : > { %v488_v14 = vpop.xlane.xlu1 %487 }
 0x277   : > { %v489_v15 = vmul.f32 0.00390625, %v488_v14 }
 0x279   : > { %v490_v16 = vadd.f32 1e-05, %v489_v15 }
 0x27b   : > { %672 = vrsqrt.f32 %v490_v16  ;;  %vm497_vm15 = vweird.f32 %v490_v16 }
 0x281   : > { %v673_v17 = vpop.eup %672 }
 0x282   : > { %v492_v18 = vmul.f32 %v673_v17, %v490_v16  ;;  %vm498_vm14 = vweird.f32 %v673_v17 }
 0x283   : > { %vm499_vm0 = vmor %vm497_vm15, %vm498_vm14 }
 0x284   : > { %v493_v19 = vmul.f32 %v673_v17, %v492_v18 }
 0x286   : > { %v494_v20 = vmul.f32 0.5, %v493_v19 }
 0x288   : > { %v495_v21 = vsub.f32 1.5, %v494_v20 }
 0x28a   : > { %v496_v22 = vmul.f32 %v673_v17, %v495_v21 }
 0x28c   : > { %v500_v23 = vsel %vm499_vm0, %v673_v17, %v496_v22 }
 0x28d   : > { %v803_v24 = vmul.f32 %v500_v23, %v482_v9  ;;  %v805_v25 = vmul.f32 %v500_v23, %v483_v10 }
 0x28f   : > { %v808_v26 = vmul.f32 0.70710677, %v803_v24  ;;  %v811_v27 = vmul.f32 0.70710677, %v805_v25  ;;  %v503_v23 = vmul.f32 0.5, %v803_v24 }
 0x291   : > { %v507_v28 = vand.u32 2147483647, %v808_v26  ;;  %v508_v29 = vand.u32 2147483647, %v811_v27  ;;  %vm573_vm9 = vcmp.ge.f32.partialorder %v808_v26, 0.0  ;;  %vm574_vm10 = vcmp.ge.f32.partialorder %v811_v27, 0.0 }
 0x293   : > { %v509_v30 = vmul.f32 0.3275911, %v507_v28  ;;  %v510_v31 = vmul.f32 0.3275911, %v508_v29  ;;  %v561_v53 = vsub.f32 0.0, %v507_v28  ;;  %v562_v56 = vsub.f32 0.0, %v508_v29 }
 0x295   : > { %v511_v32 = vadd.f32 1.0, %v509_v30  ;;  %v512_v33 = vadd.f32 1.0, %v510_v31  ;;  %v563_v60 = vmul.f32 %v561_v53, %v507_v28  ;;  %v564_v62 = vmul.f32 %v562_v56, %v508_v29 }
 0x296   : > { %v504_v30 = vmul.f32 0.5, %v805_v25 }
 0x297   : > { %674 = vrcp.f32 %v511_v32  ;;  %v524_v39 = vand.u32 2147483648, %v511_v32  ;;  %v522_v42 = vand.u32 2147483647, %v511_v32  ;;  %v539_v43 = vand.u32 2147483648, %v512_v33 }
 0x298   : > { %676 = vrcp.f32 %v512_v33  ;;  %v537_v45 = vand.u32 2147483647, %v512_v33  ;;  %vm518_vm3 = vweird.f32 %v511_v32  ;;  %vm533_vm5 = vweird.f32 %v512_v33 }
 0x299   : > { %v525_v47 = vor.u32 1.1754944e-38, %v524_v39  ;;  %vm523_vm6 = vcmp.eq.f32.partialorder %v522_v42, 8.507059e+37  ;;  %v540_v50 = vor.u32 1.1754944e-38, %v539_v43  ;;  %v565_v2 = vmul.f32 1.442695, %v563_v60 }
 0x29a   : > { %vm538_vm8 = vcmp.eq.f32.partialorder %v537_v45, 8.507059e+37  ;;  %v567_v4 = vmul.f32 1.442695, %v564_v62 }
 0x29b   : > { %678 = vpow2.f32 %v565_v2 }
 0x29c   : > { %680 = vpow2.f32 %v567_v4 }
 0x29d   : > { %v675_v34 = vpop.eup %674 }
 0x29e   : > { %v677_v35 = vpop.eup %676  ;;  %v514_v36 = vmul.f32 %v675_v34, %v511_v32  ;;  %vm519_vm1 = vweird.f32 %v675_v34 }
 0x29f   : > { %v529_v37 = vmul.f32 %v677_v35, %v512_v33  ;;  %vm534_vm2 = vweird.f32 %v677_v35  ;;  %vm520_vm4 = vmor %vm518_vm3, %vm519_vm1 }
 0x2a0   : > { %v515_v38 = vsub.f32 1.0, %v514_v36  ;;  %vm535_vm7 = vmor %vm533_vm5, %vm534_vm2 }
 0x2a1   : > { %v530_v40 = vsub.f32 1.0, %v529_v37  ;;  %v679_v13 = vpop.eup %678 }
 0x2a2   : > { %v516_v41 = vmul.f32 %v675_v34, %v515_v38  ;;  %v681_v15 = vpop.eup %680 }
 0x2a3   : > { %v531_v44 = vmul.f32 %v677_v35, %v530_v40 }
 0x2a4   : > { %v517_v46 = vadd.f32 %v675_v34, %v516_v41 }
 0x2a5   : > { %v532_v48 = vadd.f32 %v677_v35, %v531_v44 }
 0x2a6   : > { %v521_v49 = vsel %vm520_vm4, %v675_v34, %v517_v46 }
 0x2a7   : > { %v526_v51 = vsel %vm523_vm6, %v525_v47, %v521_v49  ;;  %v536_v52 = vsel %vm535_vm7, %v677_v35, %v532_v48 }
 0x2a8   : > { %v541_v54 = vsel %vm538_vm8, %v540_v50, %v536_v52  ;;  %v543_v55 = vmul.f32 1.0614054, %v526_v51 }
 0x2a9   : > { %v544_v57 = vmul.f32 1.0614054, %v541_v54 }
 0x2aa   : > { %v545_v58 = vadd.f32 -1.4531521, %v543_v55 }
 0x2ab   : > { %v546_v59 = vadd.f32 -1.4531521, %v544_v57 }
 0x2ac   : > { %v547_v61 = vmul.f32 %v545_v58, %v526_v51 }
 0x2ad   : > { %v548_v63 = vmul.f32 %v546_v59, %v541_v54 }
 0x2ae   : > { %v549_v0 = vadd.f32 1.4214138, %v547_v61 }
 0x2af   : > { %v550_v1 = vadd.f32 1.4214138, %v548_v63 }
 0x2b0   : > { %v551_v3 = vmul.f32 %v549_v0, %v526_v51 }
 0x2b1   : > { %v552_v5 = vmul.f32 %v550_v1, %v541_v54 }
 0x2b2   : > { %v553_v6 = vadd.f32 -0.28449672, %v551_v3 }
 0x2b3   : > { %v554_v7 = vadd.f32 -0.28449672, %v552_v5 }
 0x2b4   : > { %v555_v8 = vmul.f32 %v553_v6, %v526_v51 }
 0x2b5   : > { %v556_v9 = vmul.f32 %v554_v7, %v541_v54 }
 0x2b6   : > { %v557_v10 = vadd.f32 0.2548296, %v555_v8 }
 0x2b7   : > { %v558_v11 = vadd.f32 0.2548296, %v556_v9 }
 0x2b8   : > { %v559_v12 = vmul.f32 %v557_v10, %v526_v51 }
 0x2b9   : > { %v560_v14 = vmul.f32 %v558_v11, %v541_v54 }
 0x2ba   : > { %v569_v16 = vmul.f32 %v679_v13, %v559_v12 }
 0x2bb   : > { %v570_v17 = vmul.f32 %v681_v15, %v560_v14 }
 0x2bc   : > { %v571_v18 = vsub.f32 1.0, %v569_v16 }
 0x2bd   : > { %v572_v19 = vsub.f32 1.0, %v570_v17 }
 0x2be   : > { %v575_v20 = vsub.f32 0.0, %v571_v18 }
 0x2bf   : > { %v576_v21 = vsub.f32 0.0, %v572_v19 }
 0x2c0   : > { %v577_v22 = vsel %vm573_vm9, %v571_v18, %v575_v20 }
 0x2c1   : > { %v578_v28 = vsel %vm574_vm10, %v572_v19, %v576_v21  ;;  %v579_v29 = vadd.f32 1.0, %v577_v22 }
 0x2c2   : > { %v580_v31 = vadd.f32 1.0, %v578_v28 }
 0x2c3   : > { %v581_v32 = vmul.f32 %v579_v29, %v503_v23 }
 0x2c4   : > { %v582_v33 = vmul.f32 %v580_v31, %v504_v30 }
 0x2c6   : > { %v583_v34 = vpack.c.bf16 %v582_v33, %v581_v32 }
 0x2c8   : > { %584 = vst [vmem:[%s143_s28] sm:$0xff] %v583_v34 }
 0x2c9 PF: > { %s12_s9 = sadd.s32 1, %s688_s9  }
 0x2ca   : > { %p9_p4 = scmp.ge.s32.totalorder %s12_s9, 4  }
 0x2cc   :  { %11 = sbr.rel (!%p9_p4) target bundleno = 1 (0x1), region = 66 }

// kernel: unet_forward.7
= control target key start
LH: loop header
LB: loop body
LE: loop exit
PB: predicated region body
PF: predicated region fallthrough
CT: control target
= control target key end

     0   :  { %s714_s9 = smov 0   ;;  %s852_s0 = inlined_call_operand.vmem [shape: bf16[2,16,16], index: 0, kind: input, shape index: {}]   ;;  %s853_s1 = inlined_call_operand.vmem [shape: bf16[16,144], index: 1, kind: input, shape index: {}]   ;;  %s854_s2 = inlined_call_operand.vmem [shape: bf16[2,16,16], index: 2, kind: output, shape index: {}]  }
   0x1 LB: > { %s605_s10 = sadd.s32 4294967295, %s688_s9   ;;  %p609_p0 = scmp.ge.s32.totalorder %s688_s9, 1  ;;  %s688_s9 = sphi %s714_s9, %s12_s9  }
   0x2   : > { %p112_p1 = scmp.lt.s32.totalorder %s688_s9, 3 }
   0x4   : > { %p113_p2 = pnand %p609_p0, %p112_p1 }
   0x5   : > { %p134_p3 = scmp.lt.s32.totalorder (!%p113_p2), %s605_s10, 1  ;;  %s691_s11 = smov (!%p113_p2), 1  }
   0x6   : > { %116 = sbr.rel (%p113_p2) target bundleno = 667 (0x29b), region = 28  ;;  %s692_s16 = smov (!%p113_p2), 125  }
   0x7   : > { %s693_s17 = smov (!%p113_p2), 124   ;;  %s694_s18 = smov (!%p113_p2), 127  }
   0x8   : > { %s695_s19 = smov (!%p113_p2), 3   ;;  %s696_s20 = smov (!%p113_p2), 4  }
   0x9   : > { %s697_s21 = smov (!%p113_p2), 5   ;;  %s698_s22 = smov (!%p113_p2), 123  }
   0xb   : > { %s860_s10 = smov (!%p134_p3, %s605_s10), 1  ;;  %v690_v0 = vmov 0.0   ;;  %vm147_vm0 = vcmask 130048   ;;  %v176_v6 = vlaneseq  ;;  %vm285_vm3 = vcmask 7168   ;;  %v628_v15 = vld [vmem:[%s853_s1 + $0x4] sm:$0xf0] }
   0xc   : > { %651 = vrot.lane.b32.xlu0 %v690_v0, %s691_s11  ;;  %146 = vst [vmem:[#allocation2 + $0x8] sm:$0xff] %v690_v0  ;;  %s625_s12 = sshll.u32 %s860_s10, 3  ;;  %vm260_vm4 = vcmask 23552   ;;  %vm235_vm5 = vcmask 31744   ;;  %vm210_vm6 = vcmask 39936  }
   0xd   : > { %150 = vst [vmem:[#allocation2 + $0x20] sm:$0xff] %v690_v0  ;;  %s138_s15 = scalar_lea.vmem %s852_s0, %s625_s12  ;;  %v177_v7 = vand.u32 127, %v176_v6  ;;  %v627_v9 = vld [vmem:[%s853_s1 + $0x4] sm:$0xf]  ;;  %s143_s5 = scalar_lea.vmem %s854_s2, %s625_s12 }
   0xe   : > { %v630_v1 = vld [vmem:[%s138_s15] sm:$0xff]   ;;  %158 = vst.msk [vmem:[#allocation3] sm:$0xff] %vm147_vm0, %v690_v0 }
   0xf   : > { %v631_v2 = vunpack.c.l.bf16 %v630_v1  ;;  %159 = vst.msk [vmem:[#allocation3 + $0x8] sm:$0xff] %vm147_vm0, %v690_v0  ;;  %v632_v4 = vunpack.c.h.bf16 %v630_v1  ;;  %v182_v8 = vand.u32 3, %v177_v7 }
  0x10   : > { %160 = vst.msk [vmem:[#allocation3 + $0x10] sm:$0xff] %vm147_vm0, %v690_v0 }
  0x11   : > { %156 = vst.msk [vmem:[#allocation2 + $0x8] sm:$0xff] %vm147_vm0, %v631_v2  ;;  %vm755_vm1 = vcmp.ne.s32.totalorder %v182_v8, 3  ;;  %vm765_vm2 = vcmp.ne.s32.totalorder %v182_v8, 0 }
  0x12   : > { %161 = vst.msk [vmem:[#allocation3 + $0x18] sm:$0xff] %vm147_vm0, %v690_v0 }
  0x13   : > { %162 = vst.msk [vmem:[#allocation3 + $0x20] sm:$0xff] %vm147_vm0, %v690_v0 }
  0x14   : > { %163 = vst.msk [vmem:[#allocation3 + $0x28] sm:$0xff] %vm147_vm0, %v690_v0 }
  0x15   : > { %164 = vst.msk [vmem:[#allocation3 + $0x30] sm:$0xff] %vm147_vm0, %v690_v0 }
  0x16   : > { %165 = vst.msk [vmem:[#allocation3 + $0x38] sm:$0xff] %vm147_vm0, %v690_v0 }
  0x17   : > { %166 = vst.msk [vmem:[#allocation3 + $0x40] sm:$0xff] %vm147_vm0, %v690_v0 }
  0x18   : > { %v312_v3 = vld [vmem:[#allocation2 + $0x8] sm:$0xff]  ;;  %167 = vst.msk [vmem:[#allocation3 + $0x48] sm:$0xff] %vm147_vm0, %v690_v0 }
  0x19   : > { %316 = vrot.lane.b32.xlu1 %v312_v3, %s692_s16  ;;  %330 = vrot.lane.b32.xlu0 %v312_v3, %s693_s17  ;;  %168 = vst.msk [vmem:[#allocation3 + $0x50] sm:$0xff] %vm147_vm0, %v690_v0 }
  0x1a   : > { %302 = vrot.lane.b32.xlu2 %v312_v3, %s694_s18  ;;  %169 = vst.msk [vmem:[#allocation3 + $0x58] sm:$0xff] %vm147_vm0, %v690_v0 }
  0x1b   : > { %170 = vst.msk [vmem:[#allocation3 + $0x60] sm:$0xff] %vm147_vm0, %v690_v0 }
  0x1c   : > { %171 = vst.msk [vmem:[#allocation3 + $0x68] sm:$0xff] %vm147_vm0, %v690_v0 }
  0x1d   : > { %172 = vst.msk [vmem:[#allocation3 + $0x70] sm:$0xff] %vm147_vm0, %v690_v0 }
  0x1e   : > { %173 = vst.msk [vmem:[#allocation3 + $0x78] sm:$0xff] %vm147_vm0, %v690_v0 }
  0x1f   : > { %174 = vst.msk [vmem:[#allocation3 + $0x80] sm:$0xff] %vm147_vm0, %v690_v0 }
  0x20   : > { %175 = vst.msk [vmem:[#allocation3 + $0x88] sm:$0xff] %vm147_vm0, %v690_v0 }
  0x21   : > { %157 = vst.msk [vmem:[#allocation2 + $0x20] sm:$0xff] %vm147_vm0, %v632_v4 }
  0x22   : > { %296 = vst.msk [vmem:[#allocation3 + $0x40] sm:$0xff] %vm147_vm0, %v312_v3 }
  0x28   : > { %v313_v5 = vld [vmem:[#allocation2 + $0x20] sm:$0xff] }
  0x29   : > { %318 = vrot.lane.b32.xlu1 %v313_v5, %s692_s16  ;;  %332 = vrot.lane.b32.xlu0 %v313_v5, %s693_s17  ;;  %297 = vst.msk [vmem:[#allocation3 + $0x48] sm:$0xff] %vm147_vm0, %v313_v5  ;;  %v362_v47 = vld [vmem:[#allocation3 + $0x40] sm:$0xff] }
  0x2a   : > { %304 = vrot.lane.b32.xlu2 %v313_v5, %s694_s18 }
  0x30   : > { %v363_v48 = vld [vmem:[#allocation3 + $0x48] sm:$0xff] }
  0x31   : > { %279 = vrot.lane.b32.xlu1 %v312_v3, %s691_s11  ;;  %656 = vrot.lane.b32.xlu0 %v690_v0, %s695_s19  ;;  %v376_v54 = vpack.c.bf16 %v363_v48, %v362_v47 }
  0x32   : > { %283 = vrot.lane.b32.xlu2 %v313_v5, %s691_s11 }
  0x39   : > { %254 = vrot.lane.b32.xlu1 %v312_v3, %s695_s19  ;;  %661 = vrot.lane.b32.xlu0 %v690_v0, %s696_s20 }
  0x3a   : > { %258 = vrot.lane.b32.xlu2 %v313_v5, %s695_s19 }
  0x41   : > { %229 = vrot.lane.b32.xlu1 %v312_v3, %s696_s20  ;;  %666 = vrot.lane.b32.xlu0 %v690_v0, %s697_s21 }
  0x42   : > { %233 = vrot.lane.b32.xlu2 %v313_v5, %s696_s20 }
  0x49   : > { %204 = vrot.lane.b32.xlu1 %v312_v3, %s697_s21  ;;  %342 = vrot.lane.b32.xlu0 %v312_v3, %s698_s22 }
  0x4a   : > { %208 = vrot.lane.b32.xlu2 %v313_v5, %s697_s21 }
  0x51   : > { %344 = vrot.lane.b32.xlu1 %v313_v5, %s698_s22 }
  0x74   : > { %v303_v10 = vpop.permute.xlu2 %302 }
  0x75   : > { %v308_v11 = vsel %vm755_vm1, %v303_v10, 0.0 }
  0x76   : > { %310 = vst.msk [vmem:[#allocation3 + $0x50] sm:$0xff] %vm147_vm0, %v308_v11 }
  0x7d   : > { %v364_v43 = vld [vmem:[#allocation3 + $0x50] sm:$0xff] }
  0x7e   : > { %v652_v12 = vpop.permute.xlu0 %651 }
  0x7f   : > { %v654_v16 = vunpack.i.h.bf16 %v652_v12  ;;  %v653_v28 = vunpack.i.l.bf16 %v652_v12 }
  0x84   : > { %v305_v13 = vpop.permute.xlu2 %304 }
  0x85   : > { %v309_v14 = vsel %vm755_vm1, %v305_v13, 0.0 }
  0x86   : > { %311 = vst.msk [vmem:[#allocation3 + $0x58] sm:$0xff] %vm147_vm0, %v309_v14 }
  0x8b   : > { %v317_v17 = vpop.permute.xlu1 %316  ;;  %v331_v18 = vpop.permute.xlu0 %330 }
  0x8c   : > { %v322_v19 = vsel %vm765_vm2, %v317_v17, 0.0  ;;  %336 = vst.msk [vmem:[#allocation3 + $0x70] sm:$0xff] %vm147_vm0, %v331_v18  ;;  %v284_v20 = vpop.permute.xlu2 %283 }
  0x8d   : > { %324 = vst.msk [vmem:[#allocation3 + $0x60] sm:$0xff] %vm147_vm0, %v322_v19  ;;  %v287_v21 = vsel %vm285_vm3, %v654_v16, %v284_v20  ;;  %v365_v44 = vld [vmem:[#allocation3 + $0x58] sm:$0xff]  ;;  %v616_v19 = vld [vmem:[%s853_s1] sm:$0xf] }
  0x8e   : > { %v291_v22 = vsel %vm765_vm2, %v287_v21, 0.0  ;;  %v377_v50 = vpack.c.bf16 %v365_v44, %v364_v43 }
  0x8f   : > { %293 = vst.msk [vmem:[#allocation3 + $0x38] sm:$0xff] %vm147_vm0, %v291_v22  ;;  %v617_v22 = vor.u32 %v628_v15, %v616_v19 }
  0x93   : > { %v368_v27 = vld [vmem:[#allocation3 + $0x70] sm:$0xff] }
  0x94   : > { %v259_v26 = vpop.permute.xlu2 %258  ;;  %v366_v39 = vld [vmem:[#allocation3 + $0x60] sm:$0xff] }
  0x96   : > { %v361_v59 = vld [vmem:[#allocation3 + $0x38] sm:$0xff] }
  0x9b   : > { %v319_v23 = vpop.permute.xlu1 %318  ;;  %v333_v24 = vpop.permute.xlu0 %332 }
  0x9c   : > { %v323_v25 = vsel %vm765_vm2, %v319_v23, 0.0  ;;  %337 = vst.msk [vmem:[#allocation3 + $0x78] sm:$0xff] %vm147_vm0, %v333_v24  ;;  %v234_v42 = vpop.permute.xlu2 %233  ;;  %v618_v24 = vld [vmem:[%s853_s1 + $0x8] sm:$0xf0] }
  0x9d   : > { %325 = vst.msk [vmem:[#allocation3 + $0x68] sm:$0xff] %vm147_vm0, %v323_v25 }
  0xa3   : > { %v280_v29 = vpop.permute.xlu1 %279  ;;  %v369_v30 = vld [vmem:[#allocation3 + $0x78] sm:$0xff]  ;;  %v657_v31 = vpop.permute.xlu0 %656 }
  0xa4   : > { %v286_v32 = vsel %vm285_vm3, %v653_v28, %v280_v29  ;;  %v379_v33 = vpack.c.bf16 %v369_v30, %v368_v27  ;;  %v659_v34 = vunpack.i.h.bf16 %v657_v31  ;;  %v367_v36 = vld [vmem:[#allocation3 + $0x68] sm:$0xff]  ;;  %v658_v40 = vunpack.i.l.bf16 %v657_v31  ;;  %v209_v57 = vpop.permute.xlu2 %208 }
  0xa5   : > { %v290_v35 = vsel %vm765_vm2, %v286_v32, 0.0  ;;  %v378_v41 = vpack.c.bf16 %v367_v36, %v366_v39  ;;  %v621_v27 = vor.u32 %v627_v9, %v618_v24 }
  0xa6   : > { %292 = vst.msk [vmem:[#allocation3 + $0x30] sm:$0xff] %vm147_vm0, %v290_v35  ;;  %393 = vmatpush.bf16.msra.mxu0 %v379_v33  ;;  %v262_v37 = vsel %vm260_vm4, %v659_v34, %v259_v26 }
  0xa7   : > { %v266_v38 = vsel %vm755_vm1, %v262_v37, 0.0 }
  0xa8   : > { %268 = vst.msk [vmem:[#allocation3 + $0x28] sm:$0xff] %vm147_vm0, %v266_v38 }
  0xaa   : > { %394 = vmatpush.bf16.msra.mxu0 %v378_v41 }
  0xab   : > { %v255_v45 = vpop.permute.xlu1 %254  ;;  %v662_v46 = vpop.permute.xlu0 %661 }
  0xac   : > { %v261_v49 = vsel %vm260_vm4, %v658_v40, %v255_v45  ;;  %v664_v51 = vunpack.i.h.bf16 %v662_v46  ;;  %v663_v55 = vunpack.i.l.bf16 %v662_v46 }
  0xad   : > { %v265_v52 = vsel %vm755_vm1, %v261_v49, 0.0  ;;  %v360_v56 = vld [vmem:[#allocation3 + $0x30] sm:$0xff] }
  0xae   : > { %267 = vst.msk [vmem:[#allocation3 + $0x20] sm:$0xff] %vm147_vm0, %v265_v52  ;;  %395 = vmatpush.bf16.msra.mxu0 %v377_v50  ;;  %v237_v53 = vsel %vm235_vm5, %v664_v51, %v234_v42  ;;  %v375_v62 = vpack.c.bf16 %v361_v59, %v360_v56 }
  0xaf   : > { %241 = vst.msk [vmem:[#allocation3 + $0x18] sm:$0xff] %vm147_vm0, %v237_v53  ;;  %v359_v1 = vld [vmem:[#allocation3 + $0x28] sm:$0xff] }
  0xb2   : > { %396 = vmatpush.bf16.msra.mxu0 %v376_v54 }
  0xb3   : > { %v230_v58 = vpop.permute.xlu1 %229  ;;  %v667_v60 = vpop.permute.xlu0 %666 }
  0xb4   : > { %v236_v61 = vsel %vm235_vm5, %v663_v55, %v230_v58  ;;  %v669_v63 = vunpack.i.h.bf16 %v667_v60  ;;  %v668_v4 = vunpack.i.l.bf16 %v667_v60 }
  0xb5   : > { %240 = vst.msk [vmem:[#allocation3 + $0x10] sm:$0xff] %vm147_vm0, %v236_v61  ;;  %v358_v0 = vld [vmem:[#allocation3 + $0x20] sm:$0xff] }
  0xb6   : > { %397 = vmatpush.bf16.msra.mxu0 %v375_v62  ;;  %v212_v2 = vsel %vm210_vm6, %v669_v63, %v209_v57  ;;  %v374_v5 = vpack.c.bf16 %v359_v1, %v358_v0  ;;  %v357_v6 = vld [vmem:[#allocation3 + $0x18] sm:$0xff] }
  0xb7   : > { %v216_v3 = vsel %vm765_vm2, %v212_v2, 0.0 }
  0xb8   : > { %218 = vst.msk [vmem:[#allocation3 + $0x8] sm:$0xff] %vm147_vm0, %v216_v3 }
  0xba   : > { %398 = vmatpush.bf16.msra.mxu0 %v374_v5 }
  0xbb   : > { %v205_v7 = vpop.permute.xlu1 %204  ;;  %v343_v8 = vpop.permute.xlu0 %342 }
  0xbc   : > { %v211_v10 = vsel %vm210_vm6, %v668_v4, %v205_v7  ;;  %v356_v11 = vld [vmem:[#allocation3 + $0x10] sm:$0xff]  ;;  %v348_v12 = vsel %vm755_vm1, %v343_v8, 0.0  ;;  %vm547_vm6 = vcmask 125952  }
  0xbd   : > { %v215_v13 = vsel %vm765_vm2, %v211_v10, 0.0  ;;  %v373_v14 = vpack.c.bf16 %v357_v6, %v356_v11  ;;  %350 = vst.msk [vmem:[#allocation3 + $0x80] sm:$0xff] %vm147_vm0, %v348_v12 }
  0xbe   : > { %217 = vst.msk [vmem:[#allocation3] sm:$0xff] %vm147_vm0, %v215_v13 }
  0xbf   : > { %399 = vmatpush.bf16.msra.mxu0 %v373_v14  ;;  %v355_v17 = vld [vmem:[#allocation3 + $0x8] sm:$0xff] }
  0xc3   : > { %v345_v16 = vpop.permute.xlu1 %344 }
  0xc4   : > { %v349_v18 = vsel %vm755_vm1, %v345_v16, 0.0  ;;  %v370_v23 = vld [vmem:[#allocation3 + $0x80] sm:$0xff] }
  0xc5   : > { %351 = vst.msk [vmem:[#allocation3 + $0x88] sm:$0xff] %vm147_vm0, %v349_v18  ;;  %v354_v20 = vld [vmem:[#allocation3] sm:$0xff] }
  0xc6   : > { %v372_v21 = vpack.c.bf16 %v355_v17, %v354_v20 }
  0xc8   : > { %400 = vmatpush.bf16.msra.mxu0 %v372_v21 }
  0xcb   : > { %401 = vmatmul.bf16.vlgmr.msra.gmra.mxu0 %v617_v22 }
  0xcc   : > { %v371_v25 = vld [vmem:[#allocation3 + $0x88] sm:$0xff] }
  0xcd   : > { %v380_v26 = vpack.c.bf16 %v371_v25, %v370_v23 }
  0xcf   : > { %414 = vmatpush.bf16.msra.mxu1 %v380_v26 }
  0xd2   : > { %622 = vmatmul.msk.bf16.vlgmr.msra.gmra.mxu1 %vm147_vm0, %v621_v27 }
 0x148   : > { %v402_v28 = vpop.f32.mrf.mxu0 }
 0x14f   : > { %v416_v29 = vpop.f32.mrf.mxu1 }
 0x150   : > { %v417_v30 = vadd.f32 %v416_v29, %v402_v28  ;;  %v404_v32 = vpop.f32.mrf.mxu0 }
 0x152   : > { %v421_v31 = vsel %vm147_vm0, %v417_v30, 0.0 }
 0x153   : > { %422 = vadd.xlane.f32.xlu2 %v421_v31 }
 0x157   : > { %v418_v33 = vpop.f32.mrf.mxu1 }
 0x158   : > { %v419_v34 = vadd.f32 %v418_v33, %v404_v32 }
 0x15a   : > { %v424_v35 = vsel %vm147_vm0, %v419_v34, 0.0 }
 0x15b   : > { %425 = vadd.xlane.f32.xlu0 %v424_v35 }
 0x1c6   : > { %v423_v36 = vpop.xlane.xlu2 %422 }
 0x1c7   : > { %v427_v37 = vmul.f32 0.0625, %v423_v36 }
 0x1c9   : > { %v429_v38 = vsub.f32 %v417_v30, %v427_v37 }
 0x1cb   : > { %v431_v39 = vmul.f32 %v429_v38, %v429_v38 }
 0x1cd   : > { %v433_v40 = vsel %vm147_vm0, %v431_v39, 0.0 }
 0x1ce   : > { %v426_v41 = vpop.xlane.xlu0 %425  ;;  %434 = vadd.xlane.f32.xlu1 %v433_v40 }
 0x1cf   : > { %v428_v42 = vmul.f32 0.0625, %v426_v41 }
 0x1d1   : > { %v430_v43 = vsub.f32 %v419_v34, %v428_v42 }
 0x1d3   : > { %v432_v44 = vmul.f32 %v430_v43, %v430_v43 }
 0x1d5   : > { %v436_v45 = vsel %vm147_vm0, %v432_v44, 0.0 }
 0x1d6   : > { %437 = vadd.xlane.f32.xlu2 %v436_v45 }
 0x241   : > { %v435_v46 = vpop.xlane.xlu1 %434 }
 0x242   : > { %v439_v47 = vmul.f32 0.0625, %v435_v46 }
 0x244   : > { %v441_v48 = vadd.f32 1e-05, %v439_v47 }
 0x246   : > { %670 = vrsqrt.f32 %v441_v48  ;;  %vm449_vm8 = vweird.f32 %v441_v48 }
 0x249   : > { %v438_v49 = vpop.xlane.xlu2 %437 }
 0x24a   : > { %v440_v50 = vmul.f32 0.0625, %v438_v49 }
 0x24c   : > { %v671_v51 = vpop.eup %670  ;;  %v442_v52 = vadd.f32 1e-05, %v440_v50 }
 0x24d   : > { %v444_v53 = vmul.f32 %v671_v51, %v441_v48  ;;  %vm450_vm7 = vweird.f32 %v671_v51 }
 0x24e   : > { %672 = vrsqrt.f32 %v442_v52  ;;  %vm451_vm9 = vmor %vm449_vm8, %vm450_vm7  ;;  %vm459_vm11 = vweird.f32 %v442_v52 }
 0x24f   : > { %v445_v54 = vmul.f32 %v671_v51, %v444_v53 }
 0x251   : > { %v446_v55 = vmul.f32 0.5, %v445_v54 }
 0x253   : > { %v447_v56 = vsub.f32 1.5, %v446_v55 }
 0x254   : > { %v673_v57 = vpop.eup %672 }
 0x255   : > { %v448_v58 = vmul.f32 %v671_v51, %v447_v56  ;;  %v454_v59 = vmul.f32 %v673_v57, %v442_v52  ;;  %vm460_vm10 = vweird.f32 %v673_v57 }
 0x256   : > { %vm461_vm12 = vmor %vm459_vm11, %vm460_vm10 }
 0x257   : > { %v452_v60 = vsel %vm451_vm9, %v671_v51, %v448_v58  ;;  %v455_v61 = vmul.f32 %v673_v57, %v454_v59 }
 0x258   : > { %v828_v62 = vmul.f32 %v452_v60, %v429_v38 }
 0x259   : > { %v456_v63 = vmul.f32 0.5, %v455_v61 }
 0x25a   : > { %v831_v0 = vmul.f32 0.70710677, %v828_v62  ;;  %v465_v60 = vmul.f32 0.5, %v828_v62 }
 0x25b   : > { %v457_v1 = vsub.f32 1.5, %v456_v63 }
 0x25c   : > { %v469_v2 = vand.u32 2147483647, %v831_v0  ;;  %vm535_vm5 = vcmp.ge.f32.partialorder %v831_v0, 0.0 }
 0x25d   : > { %v458_v3 = vmul.f32 %v673_v57, %v457_v1 }
 0x25e   : > { %v471_v4 = vmul.f32 0.3275911, %v469_v2  ;;  %v523_v9 = vsub.f32 0.0, %v469_v2 }
 0x25f   : > { %v462_v5 = vsel %vm461_vm12, %v673_v57, %v458_v3 }
 0x260   : > { %v473_v6 = vadd.f32 1.0, %v471_v4  ;;  %v834_v7 = vmul.f32 %v462_v5, %v430_v43  ;;  %v525_v29 = vmul.f32 %v523_v9, %v469_v2 }
 0x262   : > { %674 = vrcp.f32 %v473_v6  ;;  %v837_v8 = vmul.f32 0.70710677, %v834_v7  ;;  %v486_v17 = vand.u32 2147483648, %v473_v6  ;;  %v484_v19 = vand.u32 2147483647, %v473_v6 }
 0x263   : > { %vm480_vm14 = vweird.f32 %v473_v6  ;;  %v527_v36 = vmul.f32 1.442695, %v525_v29  ;;  %v466_v62 = vmul.f32 0.5, %v834_v7 }
 0x264   : > { %v470_v10 = vand.u32 2147483647, %v837_v8  ;;  %v487_v20 = vor.u32 1.1754944e-38, %v486_v17  ;;  %vm485_vm0 = vcmp.eq.f32.partialorder %v484_v19, 8.507059e+37  ;;  %vm536_vm7 = vcmp.ge.f32.partialorder %v837_v8, 0.0 }
 0x266   : > { %v472_v11 = vmul.f32 0.3275911, %v470_v10  ;;  %v524_v40 = vsub.f32 0.0, %v470_v10 }
 0x268   : > { %v675_v12 = vpop.eup %674  ;;  %v474_v14 = vadd.f32 1.0, %v472_v11  ;;  %v526_v45 = vmul.f32 %v524_v40, %v470_v10 }
 0x269   : > { %v476_v13 = vmul.f32 %v675_v12, %v473_v6  ;;  %vm481_vm13 = vweird.f32 %v675_v12 }
 0x26a   : > { %676 = vrcp.f32 %v474_v14  ;;  %vm482_vm15 = vmor %vm480_vm14, %vm481_vm13  ;;  %v501_v28 = vand.u32 2147483648, %v474_v14  ;;  %v499_v31 = vand.u32 2147483647, %v474_v14  ;;  %vm495_vm2 = vweird.f32 %v474_v14 }
 0x26b   : > { %v477_v16 = vsub.f32 1.0, %v476_v13  ;;  %678 = vpow2.f32 %v527_v36  ;;  %v529_v50 = vmul.f32 1.442695, %v526_v45 }
 0x26c   : > { %v502_v35 = vor.u32 1.1754944e-38, %v501_v28  ;;  %vm500_vm4 = vcmp.eq.f32.partialorder %v499_v31, 8.507059e+37 }
 0x26d   : > { %v478_v18 = vmul.f32 %v675_v12, %v477_v16  ;;  %680 = vpow2.f32 %v529_v50 }
 0x26f   : > { %v479_v15 = vadd.f32 %v675_v12, %v478_v18 }
 0x270   : > { %v677_v21 = vpop.eup %676 }
 0x271   : > { %v483_v22 = vsel %vm482_vm15, %v675_v12, %v479_v15  ;;  %v491_v24 = vmul.f32 %v677_v21, %v474_v14  ;;  %vm496_vm1 = vweird.f32 %v677_v21  ;;  %v679_v51 = vpop.eup %678 }
 0x272   : > { %v488_v23 = vsel %vm485_vm0, %v487_v20, %v483_v22  ;;  %vm497_vm3 = vmor %vm495_vm2, %vm496_vm1 }
 0x273   : > { %v505_v25 = vmul.f32 1.0614054, %v488_v23  ;;  %v492_v26 = vsub.f32 1.0, %v491_v24  ;;  %v681_v1 = vpop.eup %680 }
 0x275   : > { %v507_v27 = vadd.f32 -1.4531521, %v505_v25  ;;  %v493_v30 = vmul.f32 %v677_v21, %v492_v26 }
 0x277   : > { %v509_v32 = vmul.f32 %v507_v27, %v488_v23  ;;  %v494_v33 = vadd.f32 %v677_v21, %v493_v30 }
 0x279   : > { %v511_v34 = vadd.f32 1.4214138, %v509_v32  ;;  %v498_v37 = vsel %vm497_vm3, %v677_v21, %v494_v33 }
 0x27a   : > { %v503_v39 = vsel %vm500_vm4, %v502_v35, %v498_v37 }
 0x27b   : > { %v513_v38 = vmul.f32 %v511_v34, %v488_v23  ;;  %v506_v41 = vmul.f32 1.0614054, %v503_v39 }
 0x27d   : > { %v515_v42 = vadd.f32 -0.28449672, %v513_v38  ;;  %v508_v43 = vadd.f32 -1.4531521, %v506_v41 }
 0x27f   : > { %v517_v44 = vmul.f32 %v515_v42, %v488_v23  ;;  %v510_v46 = vmul.f32 %v508_v43, %v503_v39 }
 0x281   : > { %v519_v47 = vadd.f32 0.2548296, %v517_v44  ;;  %v512_v48 = vadd.f32 1.4214138, %v510_v46 }
 0x283   : > { %v521_v49 = vmul.f32 %v519_v47, %v488_v23  ;;  %v514_v52 = vmul.f32 %v512_v48, %v503_v39 }
 0x285   : > { %v531_v53 = vmul.f32 %v679_v51, %v521_v49  ;;  %v516_v54 = vadd.f32 -0.28449672, %v514_v52 }
 0x287   : > { %v533_v55 = vsub.f32 1.0, %v531_v53  ;;  %v518_v56 = vmul.f32 %v516_v54, %v503_v39 }
 0x289   : > { %v537_v57 = vsub.f32 0.0, %v533_v55  ;;  %v520_v58 = vadd.f32 0.2548296, %v518_v56 }
 0x28b   : > { %v539_v59 = vsel %vm535_vm5, %v533_v55, %v537_v57  ;;  %v522_v63 = vmul.f32 %v520_v58, %v503_v39 }
 0x28c   : > { %v541_v61 = vadd.f32 1.0, %v539_v59 }
 0x28d   : > { %v532_v3 = vmul.f32 %v681_v1, %v522_v63 }
 0x28e   : > { %v543_v2 = vmul.f32 %v541_v61, %v465_v60 }
 0x28f   : > { %v534_v5 = vsub.f32 1.0, %v532_v3 }
 0x290   : > { %v545_v4 = vpack.c.bf16 %v543_v2, %v543_v2 }
 0x291   : > { %v538_v6 = vsub.f32 0.0, %v534_v5 }
 0x292   : > { %548 = vst.msk [vmem:[%s143_s5] sm:$0xf] %vm547_vm6, %v545_v4 }
 0x293   : > { %v540_v0 = vsel %vm536_vm7, %v534_v5, %v538_v6 }
 0x294   : > { %v542_v10 = vadd.f32 1.0, %v540_v0 }
 0x296   : > { %v544_v11 = vmul.f32 %v542_v10, %v466_v62 }
 0x298   : > { %v546_v12 = vpack.c.bf16 %v544_v11, %v544_v11 }
 0x29a   : > { %549 = vst.msk [vmem:[%s143_s5 + $0x4] sm:$0xf] %vm547_vm6, %v546_v12 }
 0x29b PF: > { %s12_s9 = sadd.s32 1, %s688_s9  }
 0x29c   : > { %p9_p4 = scmp.ge.s32.totalorder %s12_s9, 4  }
 0x29e   :  { %11 = sbr.rel (!%p9_p4) target bundleno = 1 (0x1), region = 58 }

// kernel: unet_forward.8
= control target key start
LH: loop header
LB: loop body
LE: loop exit
PB: predicated region body
PF: predicated region fallthrough
CT: control target
= control target key end

     0   :  { %s976_s9 = smov 0   ;;  %s1264_s0 = inlined_call_operand.vmem [shape: bf16[2,32,64], index: 0, kind: input, shape index: {}]   ;;  %s1265_s1 = inlined_call_operand.vmem [shape: bf16[16,288], index: 1, kind: input, shape index: {}]   ;;  %s1266_s2 = inlined_call_operand.vmem [shape: bf16[2,16,64], index: 2, kind: output, shape index: {}]  }
   0x1 LB: > { %s837_s10 = sadd.s32 4294967295, %s950_s9   ;;  %p841_p0 = scmp.ge.s32.totalorder %s950_s9, 1  ;;  %s950_s9 = sphi %s976_s9, %s12_s9  }
   0x2   : > { %p112_p1 = scmp.lt.s32.totalorder %s950_s9, 3 }
   0x4   : > { %p113_p2 = pnand %p841_p0, %p112_p1 }
   0x5   : > { %p134_p3 = scmp.lt.s32.totalorder (!%p113_p2), %s837_s10, 1  ;;  %s953_s11 = smov (!%p113_p2), 1  }
   0x6   : > { %116 = sbr.rel (%p113_p2) target bundleno = 746 (0x2ea), region = 28  ;;  %s954_s16 = smov (!%p113_p2), 120  }
   0x7   : > { %s955_s17 = smov (!%p113_p2), 7   ;;  %s956_s18 = smov (!%p113_p2), 121  }
   0x8   : > { %s957_s19 = smov (!%p113_p2), 8   ;;  %s958_s20 = smov (!%p113_p2), 127  }
   0x9   : > { %s959_s21 = smov (!%p113_p2), 9   ;;  %s960_s22 = smov (!%p113_p2), 119  }
   0xb   : > { %s1272_s10 = smov (!%p134_p3, %s837_s10), 1  ;;  %v952_v0 = vmov 0.0   ;;  %vm147_vm0 = vcmask 523264   ;;  %v206_v11 = vlaneseq  ;;  %vm401_vm1 = vcmask 7168   ;;  %v856_v50 = vld [vmem:[%s1265_s1 + $0x8] sm:$0xf] }
   0xc   : > { %893 = vrot.lane.b32.xlu0 %v952_v0, %s953_s11  ;;  %898 = vrot.lane.b32.xlu2 %v952_v0, %s953_s11  ;;  %146 = vst [vmem:[#allocation2 + $0x8] sm:$0xff] %v952_v0  ;;  %s861_s12 = sshll.u32 %s1272_s10, 4  ;;  %vm352_vm3 = vcmask 56320   ;;  %vm305_vm5 = vcmask 64512   ;;  %vm256_vm6 = vcmask 72704   ;;  %vm607_vm7 = vcmask 261120  }
   0xd   : > { %s995_s15 = scalar_lea.vmem %s1264_s0, %s861_s12  ;;  %150 = vst [vmem:[#allocation2 + $0x20] sm:$0xff] %v952_v0  ;;  %v207_v12 = vand.u32 127, %v206_v11  ;;  %s862_s7 = sshll.u32 %s1272_s10, 3 }
   0xe   : > { %v874_v1 = vld [vmem:[%s995_s15 + $0x8] sm:$0xff]   ;;  %153 = vst [vmem:[#allocation2 + $0x38] sm:$0xff] %v952_v0  ;;  %v867_v4 = vld [vmem:[%s995_s15] sm:$0xff]   ;;  %s143_s12 = scalar_lea.vmem %s1266_s2, %s862_s7 }
   0xf   : > { %v873_v2 = vunpack.c.h.bf16 %v874_v1  ;;  %156 = vst [vmem:[#allocation2 + $0x50] sm:$0xff] %v952_v0  ;;  %v872_v5 = vunpack.c.l.bf16 %v874_v1  ;;  %v868_v6 = vunpack.c.l.bf16 %v867_v4  ;;  %v869_v7 = vunpack.c.h.bf16 %v867_v4 }
  0x10   : > { %170 = vst.msk [vmem:[#allocation3] sm:$0xff] %vm147_vm0, %v952_v0  ;;  %v212_v13 = vand.u32 7, %v207_v12 }
  0x11   : > { %169 = vst.msk [vmem:[#allocation2 + $0x50] sm:$0xff] %vm147_vm0, %v873_v2 }
  0x12   : > { %171 = vst.msk [vmem:[#allocation3 + $0x8] sm:$0xff] %vm147_vm0, %v952_v0  ;;  %vm1105_vm2 = vcmp.ne.s32.totalorder %v212_v13, 0  ;;  %vm1136_vm4 = vcmp.ne.s32.totalorder %v212_v13, 7 }
  0x13   : > { %172 = vst.msk [vmem:[#allocation3 + $0x10] sm:$0xff] %vm147_vm0, %v952_v0 }
  0x14   : > { %173 = vst.msk [vmem:[#allocation3 + $0x18] sm:$0xff] %vm147_vm0, %v952_v0 }
  0x15   : > { %174 = vst.msk [vmem:[#allocation3 + $0x20] sm:$0xff] %vm147_vm0, %v952_v0 }
  0x16   : > { %175 = vst.msk [vmem:[#allocation3 + $0x28] sm:$0xff] %vm147_vm0, %v952_v0 }
  0x17   : > { %176 = vst.msk [vmem:[#allocation3 + $0x30] sm:$0xff] %vm147_vm0, %v952_v0 }
  0x18   : > { %v1006_v3 = vld [vmem:[#allocation2 + $0x50] sm:$0xff]  ;;  %177 = vst.msk [vmem:[#allocation3 + $0x38] sm:$0xff] %vm147_vm0, %v952_v0 }
  0x19   : > { %399 = vrot.lane.b32.xlu1 %v1006_v3, %s953_s11  ;;  %496 = vrot.lane.b32.xlu2 %v1006_v3, %s954_s16  ;;  %178 = vst.msk [vmem:[#allocation3 + $0x40] sm:$0xff] %vm147_vm0, %v952_v0 }
  0x1a   : > { %179 = vst.msk [vmem:[#allocation3 + $0x48] sm:$0xff] %vm147_vm0, %v952_v0 }
  0x1b   : > { %180 = vst.msk [vmem:[#allocation3 + $0x50] sm:$0xff] %vm147_vm0, %v952_v0 }
  0x1c   : > { %181 = vst.msk [vmem:[#allocation3 + $0x58] sm:$0xff] %vm147_vm0, %v952_v0 }
  0x1d   : > { %182 = vst.msk [vmem:[#allocation3 + $0x60] sm:$0xff] %vm147_vm0, %v952_v0 }
  0x1e   : > { %183 = vst.msk [vmem:[#allocation3 + $0x68] sm:$0xff] %vm147_vm0, %v952_v0 }
  0x1f   : > { %184 = vst.msk [vmem:[#allocation3 + $0x70] sm:$0xff] %vm147_vm0, %v952_v0 }
  0x20   : > { %185 = vst.msk [vmem:[#allocation3 + $0x78] sm:$0xff] %vm147_vm0, %v952_v0 }
  0x21   : > { %186 = vst.msk [vmem:[#allocation3 + $0x80] sm:$0xff] %vm147_vm0, %v952_v0 }
  0x22   : > { %187 = vst.msk [vmem:[#allocation3 + $0x88] sm:$0xff] %vm147_vm0, %v952_v0 }
  0x23   : > { %188 = vst.msk [vmem:[#allocation3 + $0x90] sm:$0xff] %vm147_vm0, %v952_v0 }
  0x24   : > { %189 = vst.msk [vmem:[#allocation3 + $0x98] sm:$0xff] %vm147_vm0, %v952_v0 }
  0x25   : > { %190 = vst.msk [vmem:[#allocation3 + $0xa0] sm:$0xff] %vm147_vm0, %v952_v0 }
  0x26   : > { %191 = vst.msk [vmem:[#allocation3 + $0xa8] sm:$0xff] %vm147_vm0, %v952_v0 }
  0x27   : > { %192 = vst.msk [vmem:[#allocation3 + $0xb0] sm:$0xff] %vm147_vm0, %v952_v0 }
  0x28   : > { %193 = vst.msk [vmem:[#allocation3 + $0xb8] sm:$0xff] %vm147_vm0, %v952_v0 }
  0x29   : > { %194 = vst.msk [vmem:[#allocation3 + $0xc0] sm:$0xff] %vm147_vm0, %v952_v0 }
  0x2a   : > { %195 = vst.msk [vmem:[#allocation3 + $0xc8] sm:$0xff] %vm147_vm0, %v952_v0 }
  0x2b   : > { %196 = vst.msk [vmem:[#allocation3 + $0xd0] sm:$0xff] %vm147_vm0, %v952_v0 }
  0x2c   : > { %197 = vst.msk [vmem:[#allocation3 + $0xd8] sm:$0xff] %vm147_vm0, %v952_v0 }
  0x2d   : > { %198 = vst.msk [vmem:[#allocation3 + $0xe0] sm:$0xff] %vm147_vm0, %v952_v0 }
  0x2e   : > { %199 = vst.msk [vmem:[#allocation3 + $0xe8] sm:$0xff] %vm147_vm0, %v952_v0 }
  0x2f   : > { %200 = vst.msk [vmem:[#allocation3 + $0xf0] sm:$0xff] %vm147_vm0, %v952_v0 }
  0x30   : > { %201 = vst.msk [vmem:[#allocation3 + $0xf8] sm:$0xff] %vm147_vm0, %v952_v0 }
  0x31   : > { %202 = vst.msk [vmem:[#allocation3 + $0x100] sm:$0xff] %vm147_vm0, %v952_v0 }
  0x32   : > { %203 = vst.msk [vmem:[#allocation3 + $0x108] sm:$0xff] %vm147_vm0, %v952_v0 }
  0x33   : > { %204 = vst.msk [vmem:[#allocation3 + $0x110] sm:$0xff] %vm147_vm0, %v952_v0 }
  0x34   : > { %205 = vst.msk [vmem:[#allocation3 + $0x118] sm:$0xff] %vm147_vm0, %v952_v0 }
  0x35   : > { %168 = vst.msk [vmem:[#allocation2 + $0x38] sm:$0xff] %vm147_vm0, %v872_v5 }
  0x36   : > { %166 = vst.msk [vmem:[#allocation2 + $0x8] sm:$0xff] %vm147_vm0, %v868_v6 }
  0x37   : > { %167 = vst.msk [vmem:[#allocation2 + $0x20] sm:$0xff] %vm147_vm0, %v869_v7 }
  0x38   : > { %425 = vst.msk [vmem:[#allocation3 + $0x98] sm:$0xff] %vm147_vm0, %v1006_v3 }
  0x3c   : > { %v374_v8 = vld [vmem:[#allocation2 + $0x38] sm:$0xff] }
  0x3d   : > { %395 = vrot.lane.b32.xlu0 %v374_v8, %s953_s11  ;;  %494 = vrot.lane.b32.xlu1 %v374_v8, %s954_s16  ;;  %v370_v9 = vld [vmem:[#allocation2 + $0x8] sm:$0xff]  ;;  %424 = vst.msk [vmem:[#allocation3 + $0x90] sm:$0xff] %vm147_vm0, %v374_v8 }
  0x3e   : > { %v372_v10 = vld [vmem:[#allocation2 + $0x20] sm:$0xff]  ;;  %490 = vrot.lane.b32.xlu2 %v370_v9, %s954_s16  ;;  %422 = vst.msk [vmem:[#allocation3 + $0x80] sm:$0xff] %vm147_vm0, %v370_v9 }
  0x3f   : > { %423 = vst.msk [vmem:[#allocation3 + $0x88] sm:$0xff] %vm147_vm0, %v372_v10 }
  0x45   : > { %387 = vrot.lane.b32.xlu0 %v370_v9, %s953_s11  ;;  %391 = vrot.lane.b32.xlu1 %v372_v10, %s953_s11 }
  0x46   : > { %346 = vrot.lane.b32.xlu2 %v374_v8, %s955_s17 }
  0x4d   : > { %492 = vrot.lane.b32.xlu0 %v372_v10, %s954_s16  ;;  %903 = vrot.lane.b32.xlu1 %v952_v0, %s955_s17 }
  0x4e   : > { %468 = vrot.lane.b32.xlu2 %v1006_v3, %s956_s18 }
  0x55   : > { %350 = vrot.lane.b32.xlu0 %v1006_v3, %s955_s17  ;;  %466 = vrot.lane.b32.xlu1 %v374_v8, %s956_s18 }
  0x56   : > { %342 = vrot.lane.b32.xlu2 %v372_v10, %s955_s17 }
  0x5d   : > { %908 = vrot.lane.b32.xlu0 %v952_v0, %s955_s17  ;;  %338 = vrot.lane.b32.xlu1 %v370_v9, %s955_s17 }
  0x5e   : > { %913 = vrot.lane.b32.xlu2 %v952_v0, %s957_s19 }
  0x65   : > { %462 = vrot.lane.b32.xlu0 %v370_v9, %s956_s18  ;;  %464 = vrot.lane.b32.xlu1 %v372_v10, %s956_s18 }
  0x66   : > { %438 = vrot.lane.b32.xlu2 %v374_v8, %s958_s20  ;;  %v899_v19 = vpop.permute.xlu2 %898 }
  0x67   : > { %v901_v33 = vunpack.i.h.bf16 %v899_v19  ;;  %v900_v34 = vunpack.i.l.bf16 %v899_v19 }
  0x6d   : > { %299 = vrot.lane.b32.xlu0 %v374_v8, %s957_s19  ;;  %303 = vrot.lane.b32.xlu1 %v1006_v3, %s957_s19 }
  0x6e   : > { %291 = vrot.lane.b32.xlu2 %v370_v9, %s957_s19 }
  0x73   : > { %v497_v21 = vpop.permute.xlu2 %496 }
  0x74   : > { %505 = vst.msk [vmem:[#allocation3 + $0xf8] sm:$0xff] %vm147_vm0, %v497_v21 }
  0x75   : > { %440 = vrot.lane.b32.xlu0 %v1006_v3, %s958_s20  ;;  %918 = vrot.lane.b32.xlu1 %v952_v0, %s957_s19 }
  0x76   : > { %436 = vrot.lane.b32.xlu2 %v372_v10, %s958_s20 }
  0x7b   : > { %v569_v32 = vld [vmem:[#allocation3 + $0xf8] sm:$0xff] }
  0x7d   : > { %295 = vrot.lane.b32.xlu0 %v372_v10, %s957_s19  ;;  %434 = vrot.lane.b32.xlu1 %v370_v9, %s958_s20 }
  0x7e   : > { %923 = vrot.lane.b32.xlu2 %v952_v0, %s959_s21  ;;  %v894_v14 = vpop.permute.xlu0 %893 }
  0x7f   : > { %v896_v15 = vunpack.i.h.bf16 %v894_v14  ;;  %v895_v26 = vunpack.i.l.bf16 %v894_v14 }
  0x85   : > { %518 = vrot.lane.b32.xlu0 %v374_v8, %s960_s22  ;;  %520 = vrot.lane.b32.xlu1 %v1006_v3, %s960_s22 }
  0x86   : > { %514 = vrot.lane.b32.xlu2 %v370_v9, %s960_s22 }
  0x8b   : > { %v400_v17 = vpop.permute.xlu1 %399 }
  0x8c   : > { %v405_v18 = vsel %vm401_vm1, %v896_v15, %v400_v17 }
  0x8d   : > { %v413_v20 = vsel %vm1105_vm2, %v405_v18, 0.0  ;;  %250 = vrot.lane.b32.xlu0 %v374_v8, %s959_s21  ;;  %254 = vrot.lane.b32.xlu1 %v1006_v3, %s959_s21 }
  0x8e   : > { %417 = vst.msk [vmem:[#allocation3 + $0x78] sm:$0xff] %vm147_vm0, %v413_v20  ;;  %242 = vrot.lane.b32.xlu2 %v370_v9, %s959_s21 }
  0x95   : > { %516 = vrot.lane.b32.xlu0 %v372_v10, %s960_s22  ;;  %928 = vrot.lane.b32.xlu1 %v952_v0, %s959_s21  ;;  %v553_v36 = vld [vmem:[#allocation3 + $0x78] sm:$0xff] }
  0x98   : > { %v491_v22 = vpop.permute.xlu2 %490 }
  0x99   : > { %502 = vst.msk [vmem:[#allocation3 + $0xe0] sm:$0xff] %vm147_vm0, %v491_v22 }
  0x9d   : > { %246 = vrot.lane.b32.xlu0 %v372_v10, %s959_s21 }
  0xa0   : > { %v347_v23 = vpop.permute.xlu2 %346  ;;  %v566_v59 = vld [vmem:[#allocation3 + $0xe0] sm:$0xff] }
  0xa8   : > { %v469_v24 = vpop.permute.xlu2 %468 }
  0xa9   : > { %v477_v25 = vsel %vm1105_vm2, %v469_v24, 0.0 }
  0xaa   : > { %481 = vst.msk [vmem:[#allocation3 + $0xd8] sm:$0xff] %vm147_vm0, %v477_v25 }
  0xaf   : > { %v396_v27 = vpop.permute.xlu0 %395  ;;  %v495_v28 = vpop.permute.xlu1 %494 }
  0xb0   : > { %v404_v29 = vsel %vm401_vm1, %v895_v26, %v396_v27  ;;  %504 = vst.msk [vmem:[#allocation3 + $0xf0] sm:$0xff] %vm147_vm0, %v495_v28  ;;  %v343_v31 = vpop.permute.xlu2 %342 }
  0xb1   : > { %v412_v30 = vsel %vm1105_vm2, %v404_v29, 0.0  ;;  %v565_v4 = vld [vmem:[#allocation3 + $0xd8] sm:$0xff] }
  0xb2   : > { %416 = vst.msk [vmem:[#allocation3 + $0x70] sm:$0xff] %vm147_vm0, %v412_v30 }
  0xb7   : > { %v388_v35 = vpop.permute.xlu0 %387  ;;  %v392_v37 = vpop.permute.xlu1 %391  ;;  %v568_v38 = vld [vmem:[#allocation3 + $0xf0] sm:$0xff] }
  0xb8   : > { %v402_v39 = vsel %vm401_vm1, %v900_v34, %v388_v35  ;;  %v403_v40 = vsel %vm401_vm1, %v901_v33, %v392_v37  ;;  %v589_v41 = vpack.c.bf16 %v569_v32, %v568_v38  ;;  %v1132_v46 = vpop.permute.xlu2 %913 }
  0xb9   : > { %v410_v42 = vsel %vm1105_vm2, %v402_v39, 0.0  ;;  %v552_v43 = vld [vmem:[#allocation3 + $0x70] sm:$0xff]  ;;  %v411_v44 = vsel %vm1105_vm2, %v403_v40, 0.0  ;;  %v915_v25 = vunpack.i.l.bf16 %v1132_v46  ;;  %v916_v29 = vunpack.i.h.bf16 %v1132_v46 }
  0xba   : > { %414 = vst.msk [vmem:[#allocation3 + $0x60] sm:$0xff] %vm147_vm0, %v410_v42  ;;  %v581_v45 = vpack.c.bf16 %v553_v36, %v552_v43  ;;  %625 = vmatpush.bf16.msra.mxu1 %v589_v41 }
  0xbb   : > { %415 = vst.msk [vmem:[#allocation3 + $0x68] sm:$0xff] %vm147_vm0, %v411_v44 }
  0xbc   : > { %611 = vmatpush.bf16.msra.mxu0 %v581_v45 }
  0xbf   : > { %v493_v47 = vpop.permute.xlu0 %492  ;;  %v904_v48 = vpop.permute.xlu1 %903 }
  0xc0   : > { %503 = vst.msk [vmem:[#allocation3 + $0xe8] sm:$0xff] %vm147_vm0, %v493_v47  ;;  %v905_v49 = vunpack.i.l.bf16 %v904_v48  ;;  %v439_v54 = vpop.permute.xlu2 %438  ;;  %v906_v58 = vunpack.i.h.bf16 %v904_v48 }
  0xc1   : > { %v550_v52 = vld [vmem:[#allocation3 + $0x60] sm:$0xff]  ;;  %v448_v57 = vsel %vm1136_vm4, %v439_v54, 0.0 }
  0xc2   : > { %v355_v51 = vsel %vm352_vm3, %v905_v49, %v347_v23  ;;  %v551_v53 = vld [vmem:[#allocation3 + $0x68] sm:$0xff]  ;;  %452 = vst.msk [vmem:[#allocation3 + $0xb0] sm:$0xff] %vm147_vm0, %v448_v57 }
  0xc3   : > { %v363_v55 = vsel %vm1136_vm4, %v355_v51, 0.0  ;;  %v580_v56 = vpack.c.bf16 %v551_v53, %v550_v52 }
  0xc4   : > { %367 = vst.msk [vmem:[#allocation3 + $0x50] sm:$0xff] %vm147_vm0, %v363_v55 }
  0xc5   : > { %612 = vmatpush.bf16.msra.mxu0 %v580_v56 }
  0xc7   : > { %v351_v60 = vpop.permute.xlu0 %350  ;;  %v567_v61 = vld [vmem:[#allocation3 + $0xe8] sm:$0xff]  ;;  %v467_v62 = vpop.permute.xlu1 %466 }
  0xc8   : > { %v356_v63 = vsel %vm352_vm3, %v906_v58, %v351_v60  ;;  %v588_v0 = vpack.c.bf16 %v567_v61, %v566_v59  ;;  %v476_v1 = vsel %vm1105_vm2, %v467_v62, 0.0  ;;  %v292_v3 = vpop.permute.xlu2 %291 }
  0xc9   : > { %v364_v2 = vsel %vm1136_vm4, %v356_v63, 0.0  ;;  %480 = vst.msk [vmem:[#allocation3 + $0xd0] sm:$0xff] %vm147_vm0, %v476_v1  ;;  %v560_v49 = vld [vmem:[#allocation3 + $0xb0] sm:$0xff] }
  0xca   : > { %368 = vst.msk [vmem:[#allocation3 + $0x58] sm:$0xff] %vm147_vm0, %v364_v2  ;;  %626 = vmatpush.bf16.msra.mxu1 %v588_v0  ;;  %v556_v2 = vld [vmem:[#allocation3 + $0x90] sm:$0xff] }
  0xcb   : > { %v548_v6 = vld [vmem:[#allocation3 + $0x50] sm:$0xff] }
  0xcf   : > { %v909_v5 = vpop.permute.xlu0 %908  ;;  %v339_v7 = vpop.permute.xlu1 %338 }
  0xd0   : > { %v911_v8 = vunpack.i.h.bf16 %v909_v5  ;;  %v910_v9 = vunpack.i.l.bf16 %v909_v5  ;;  %v564_v10 = vld [vmem:[#allocation3 + $0xd0] sm:$0xff]  ;;  %v437_v19 = vpop.permute.xlu2 %436 }
  0xd1   : > { %v549_v11 = vld [vmem:[#allocation3 + $0x58] sm:$0xff]  ;;  %v587_v12 = vpack.c.bf16 %v565_v4, %v564_v10  ;;  %v447_v20 = vsel %vm1136_vm4, %v437_v19, 0.0 }
  0xd2   : > { %v354_v13 = vsel %vm352_vm3, %v911_v8, %v343_v31  ;;  %v579_v14 = vpack.c.bf16 %v549_v11, %v548_v6  ;;  %v353_v15 = vsel %vm352_vm3, %v910_v9, %v339_v7  ;;  %451 = vst.msk [vmem:[#allocation3 + $0xa8] sm:$0xff] %vm147_vm0, %v447_v20  ;;  %v554_v7 = vld [vmem:[#allocation3 + $0x80] sm:$0xff]  ;;  %v555_v8 = vld [vmem:[#allocation3 + $0x88] sm:$0xff] }
  0xd3   : > { %v362_v17 = vsel %vm1136_vm4, %v354_v13, 0.0  ;;  %v361_v18 = vsel %vm1136_vm4, %v353_v15, 0.0  ;;  %627 = vmatpush.bf16.msra.mxu1 %v587_v12  ;;  %v863_v15 = vld [vmem:[%s1265_s1 + $0x4] sm:$0xf] }
  0xd4   : > { %366 = vst.msk [vmem:[#allocation3 + $0x48] sm:$0xff] %vm147_vm0, %v362_v17  ;;  %613 = vmatpush.bf16.msra.mxu0 %v579_v14  ;;  %v582_v14 = vpack.c.bf16 %v555_v8, %v554_v7  ;;  %v850_v17 = vld [vmem:[%s1265_s1 + $0xc] sm:$0xf0] }
  0xd5   : > { %365 = vst.msk [vmem:[#allocation3 + $0x40] sm:$0xff] %vm147_vm0, %v361_v18 }
  0xd7   : > { %v463_v21 = vpop.permute.xlu0 %462  ;;  %v465_v22 = vpop.permute.xlu1 %464 }
  0xd8   : > { %v474_v23 = vsel %vm1105_vm2, %v463_v21, 0.0  ;;  %v475_v24 = vsel %vm1105_vm2, %v465_v22, 0.0  ;;  %v1173_v30 = vpop.permute.xlu2 %923 }
  0xd9   : > { %478 = vst.msk [vmem:[#allocation3 + $0xc0] sm:$0xff] %vm147_vm0, %v474_v23  ;;  %v559_v60 = vld [vmem:[#allocation3 + $0xa8] sm:$0xff]  ;;  %v925_v5 = vunpack.i.l.bf16 %v1173_v30  ;;  %v926_v9 = vunpack.i.h.bf16 %v1173_v30  ;;  %v853_v23 = vor.u32 %v863_v15, %v850_v17 }
  0xda   : > { %479 = vst.msk [vmem:[#allocation3 + $0xc8] sm:$0xff] %vm147_vm0, %v475_v24 }
  0xdb   : > { %v547_v27 = vld [vmem:[#allocation3 + $0x48] sm:$0xff] }
  0xdc   : > { %v546_v26 = vld [vmem:[#allocation3 + $0x40] sm:$0xff] }
  0xdd   : > { %v578_v28 = vpack.c.bf16 %v547_v27, %v546_v26 }
  0xdf   : > { %v300_v31 = vpop.permute.xlu0 %299  ;;  %614 = vmatpush.bf16.msra.mxu0 %v578_v28  ;;  %v304_v32 = vpop.permute.xlu1 %303 }
  0xe0   : > { %v308_v33 = vsel %vm305_vm5, %v915_v25, %v300_v31  ;;  %v309_v34 = vsel %vm305_vm5, %v916_v29, %v304_v32  ;;  %v562_v35 = vld [vmem:[#allocation3 + $0xc0] sm:$0xff]  ;;  %v515_v42 = vpop.permute.xlu2 %514 }
  0xe1   : > { %316 = vst.msk [vmem:[#allocation3 + $0x30] sm:$0xff] %vm147_vm0, %v308_v33  ;;  %v563_v36 = vld [vmem:[#allocation3 + $0xc8] sm:$0xff]  ;;  %v526_v45 = vsel %vm1136_vm4, %v515_v42, 0.0 }
  0xe2   : > { %317 = vst.msk [vmem:[#allocation3 + $0x38] sm:$0xff] %vm147_vm0, %v309_v34  ;;  %v586_v37 = vpack.c.bf16 %v563_v36, %v562_v35 }
  0xe3   : > { %530 = vst.msk [vmem:[#allocation3 + $0x100] sm:$0xff] %vm147_vm0, %v526_v45  ;;  %v864_v45 = vld [vmem:[%s1265_s1 + $0x8] sm:$0xf0] }
  0xe4   : > { %628 = vmatpush.bf16.msra.mxu1 %v586_v37  ;;  %v865_v37 = vld [vmem:[%s1265_s1 + $0x10] sm:$0xf0] }
  0xe5   : > { %v857_v42 = vor.u32 %v865_v37, %v856_v50 }
  0xe7   : > { %v441_v38 = vpop.permute.xlu0 %440  ;;  %v919_v39 = vpop.permute.xlu1 %918 }
  0xe8   : > { %v449_v40 = vsel %vm1136_vm4, %v441_v38, 0.0  ;;  %v920_v41 = vunpack.i.l.bf16 %v919_v39  ;;  %v544_v43 = vld [vmem:[#allocation3 + $0x30] sm:$0xff]  ;;  %v921_v48 = vunpack.i.h.bf16 %v919_v39  ;;  %v243_v24 = vpop.permute.xlu2 %242 }
  0xe9   : > { %453 = vst.msk [vmem:[#allocation3 + $0xb8] sm:$0xff] %vm147_vm0, %v449_v40  ;;  %v545_v44 = vld [vmem:[#allocation3 + $0x38] sm:$0xff] }
  0xea   : > { %v306_v46 = vsel %vm305_vm5, %v920_v41, %v292_v3  ;;  %v577_v47 = vpack.c.bf16 %v545_v44, %v544_v43  ;;  %v557_v3 = vld [vmem:[#allocation3 + $0x98] sm:$0xff]  ;;  %v570_v35 = vld [vmem:[#allocation3 + $0x100] sm:$0xff] }
  0xeb   : > { %314 = vst.msk [vmem:[#allocation3 + $0x20] sm:$0xff] %vm147_vm0, %v306_v46  ;;  %v583_v6 = vpack.c.bf16 %v557_v3, %v556_v2  ;;  %v848_v44 = vld [vmem:[%s1265_s1] sm:$0xf] }
  0xec   : > { %615 = vmatpush.bf16.msra.mxu0 %v577_v47  ;;  %v849_v16 = vor.u32 %v864_v45, %v848_v44 }
  0xef   : > { %v296_v51 = vpop.permute.xlu0 %295  ;;  %v435_v52 = vpop.permute.xlu1 %434 }
  0xf0   : > { %v307_v53 = vsel %vm305_vm5, %v921_v48, %v296_v51  ;;  %v561_v54 = vld [vmem:[#allocation3 + $0xb8] sm:$0xff]  ;;  %v446_v55 = vsel %vm1136_vm4, %v435_v52, 0.0 }
  0xf1   : > { %315 = vst.msk [vmem:[#allocation3 + $0x28] sm:$0xff] %vm147_vm0, %v307_v53  ;;  %v585_v56 = vpack.c.bf16 %v561_v54, %v560_v49 }
  0xf2   : > { %450 = vst.msk [vmem:[#allocation3 + $0xa0] sm:$0xff] %vm147_vm0, %v446_v55  ;;  %v542_v57 = vld [vmem:[#allocation3 + $0x20] sm:$0xff] }
  0xf3   : > { %629 = vmatpush.bf16.msra.mxu1 %v585_v56 }
  0xf7   : > { %v519_v58 = vpop.permute.xlu0 %518  ;;  %v521_v59 = vpop.permute.xlu1 %520 }
  0xf8   : > { %v528_v61 = vsel %vm1136_vm4, %v519_v58, 0.0  ;;  %v543_v62 = vld [vmem:[#allocation3 + $0x28] sm:$0xff]  ;;  %v529_v63 = vsel %vm1136_vm4, %v521_v59, 0.0 }
  0xf9   : > { %532 = vst.msk [vmem:[#allocation3 + $0x110] sm:$0xff] %vm147_vm0, %v528_v61  ;;  %v576_v0 = vpack.c.bf16 %v543_v62, %v542_v57  ;;  %v558_v1 = vld [vmem:[#allocation3 + $0xa0] sm:$0xff] }
  0xfa   : > { %533 = vst.msk [vmem:[#allocation3 + $0x118] sm:$0xff] %vm147_vm0, %v529_v63  ;;  %v584_v4 = vpack.c.bf16 %v559_v60, %v558_v1 }
  0xfb   : > { %616 = vmatpush.bf16.msra.mxu0 %v576_v0 }
  0xfc   : > { %630 = vmatpush.bf16.msra.mxu1 %v584_v4 }
  0xff   : > { %v251_v10 = vpop.permute.xlu0 %250  ;;  %v255_v11 = vpop.permute.xlu1 %254 }
 0x100   : > { %v259_v12 = vsel %vm256_vm6, %v925_v5, %v251_v10  ;;  %v260_v13 = vsel %vm256_vm6, %v926_v9, %v255_v11  ;;  %631 = vmatpush.bf16.msra.mxu1 %v583_v6  ;;  %v572_v20 = vld [vmem:[#allocation3 + $0x110] sm:$0xff] }
 0x101   : > { %v267_v18 = vsel %vm1105_vm2, %v259_v12, 0.0  ;;  %v268_v19 = vsel %vm1105_vm2, %v260_v13, 0.0  ;;  %v573_v21 = vld [vmem:[#allocation3 + $0x118] sm:$0xff] }
 0x102   : > { %271 = vst.msk [vmem:[#allocation3 + $0x10] sm:$0xff] %vm147_vm0, %v267_v18  ;;  %v591_v22 = vpack.c.bf16 %v573_v21, %v572_v20 }
 0x103   : > { %272 = vst.msk [vmem:[#allocation3 + $0x18] sm:$0xff] %vm147_vm0, %v268_v19 }
 0x104   : > { %645 = vmatpush.bf16.msra.mxu2 %v591_v22  ;;  %632 = vmatpush.bf16.msra.mxu1 %v582_v14 }
 0x107   : > { %v517_v25 = vpop.permute.xlu0 %516  ;;  %v929_v26 = vpop.permute.xlu1 %928  ;;  %633 = vmatmul.bf16.vlgmr.msra.gmra.mxu1 %v853_v23 }
 0x108   : > { %v527_v27 = vsel %vm1136_vm4, %v517_v25, 0.0  ;;  %v930_v28 = vunpack.i.l.bf16 %v929_v26  ;;  %v931_v34 = vunpack.i.h.bf16 %v929_v26 }
 0x109   : > { %531 = vst.msk [vmem:[#allocation3 + $0x108] sm:$0xff] %vm147_vm0, %v527_v27  ;;  %v540_v30 = vld [vmem:[#allocation3 + $0x10] sm:$0xff] }
 0x10a   : > { %v257_v29 = vsel %vm256_vm6, %v930_v28, %v243_v24  ;;  %v541_v31 = vld [vmem:[#allocation3 + $0x18] sm:$0xff] }
 0x10b   : > { %v265_v32 = vsel %vm1105_vm2, %v257_v29, 0.0  ;;  %v575_v33 = vpack.c.bf16 %v541_v31, %v540_v30 }
 0x10c   : > { %269 = vst.msk [vmem:[#allocation3] sm:$0xff] %vm147_vm0, %v265_v32 }
 0x10d   : > { %617 = vmatpush.bf16.msra.mxu0 %v575_v33 }
 0x10f   : > { %v247_v36 = vpop.permute.xlu0 %246 }
 0x110   : > { %v258_v38 = vsel %vm256_vm6, %v931_v34, %v247_v36  ;;  %v571_v39 = vld [vmem:[#allocation3 + $0x108] sm:$0xff] }
 0x111   : > { %v266_v40 = vsel %vm1105_vm2, %v258_v38, 0.0  ;;  %v590_v41 = vpack.c.bf16 %v571_v39, %v570_v35 }
 0x112   : > { %270 = vst.msk [vmem:[#allocation3 + $0x8] sm:$0xff] %vm147_vm0, %v266_v40 }
 0x113   : > { %646 = vmatpush.bf16.msra.mxu2 %v590_v41  ;;  %v538_v43 = vld [vmem:[#allocation3] sm:$0xff] }
 0x116   : > { %858 = vmatmul.msk.bf16.vlgmr.msra.gmra.mxu2 %vm607_vm7, %v857_v42  ;;  %vm779_vm7 = vcmask 519168  }
 0x119   : > { %v539_v46 = vld [vmem:[#allocation3 + $0x8] sm:$0xff] }
 0x11a   : > { %v574_v47 = vpack.c.bf16 %v539_v46, %v538_v43 }
 0x11c   : > { %618 = vmatpush.bf16.msra.mxu0 %v574_v47 }
 0x11f   : > { %619 = vmatmul.bf16.vlgmr.msra.gmra.mxu0 %v849_v16 }
 0x184   : > { %v634_v48 = vpop.f32.mrf.mxu1 }
 0x18c   : > { %v636_v55 = vpop.f32.mrf.mxu1 }
 0x199   : > { %v648_v49 = vpop.f32.mrf.mxu2 }
 0x19c   : > { %v620_v51 = vpop.f32.mrf.mxu0 }
 0x19d   : > { %v635_v52 = vadd.f32 %v634_v48, %v620_v51 }
 0x19f   : > { %v649_v53 = vadd.f32 %v648_v49, %v635_v52 }
 0x1a1   : > { %v653_v54 = vsel %vm147_vm0, %v649_v53, 0.0  ;;  %v650_v58 = vpop.f32.mrf.mxu2 }
 0x1a2   : > { %654 = vadd.xlane.f32.xlu1 %v653_v54 }
 0x1a4   : > { %v622_v56 = vpop.f32.mrf.mxu0 }
 0x1a5   : > { %v637_v57 = vadd.f32 %v636_v55, %v622_v56 }
 0x1a7   : > { %v651_v59 = vadd.f32 %v650_v58, %v637_v57 }
 0x1a9   : > { %v656_v60 = vsel %vm147_vm0, %v651_v59, 0.0 }
 0x1aa   : > { %657 = vadd.xlane.f32.xlu2 %v656_v60 }
 0x215   : > { %v655_v61 = vpop.xlane.xlu1 %654 }
 0x216   : > { %v659_v62 = vmul.f32 0.015625, %v655_v61 }
 0x218   : > { %v661_v63 = vsub.f32 %v649_v53, %v659_v62 }
 0x21a   : > { %v663_v0 = vmul.f32 %v661_v63, %v661_v63 }
 0x21c   : > { %v665_v1 = vsel %vm147_vm0, %v663_v0, 0.0 }
 0x21d   : > { %666 = vadd.xlane.f32.xlu0 %v665_v1  ;;  %v658_v2 = vpop.xlane.xlu2 %657 }
 0x21e   : > { %v660_v3 = vmul.f32 0.015625, %v658_v2 }
 0x220   : > { %v662_v4 = vsub.f32 %v651_v59, %v660_v3 }
 0x222   : > { %v664_v5 = vmul.f32 %v662_v4, %v662_v4 }
 0x224   : > { %v668_v6 = vsel %vm147_vm0, %v664_v5, 0.0 }
 0x225   : > { %669 = vadd.xlane.f32.xlu2 %v668_v6 }
 0x290   : > { %v667_v7 = vpop.xlane.xlu0 %666 }
 0x291   : > { %v671_v8 = vmul.f32 0.015625, %v667_v7 }
 0x293   : > { %v673_v9 = vadd.f32 1e-05, %v671_v8 }
 0x295   : > { %932 = vrsqrt.f32 %v673_v9  ;;  %vm681_vm9 = vweird.f32 %v673_v9 }
 0x298   : > { %v670_v10 = vpop.xlane.xlu2 %669 }
 0x299   : > { %v672_v11 = vmul.f32 0.015625, %v670_v10 }
 0x29b   : > { %v933_v12 = vpop.eup %932  ;;  %v674_v13 = vadd.f32 1e-05, %v672_v11 }
 0x29c   : > { %v676_v14 = vmul.f32 %v933_v12, %v673_v9  ;;  %vm682_vm8 = vweird.f32 %v933_v12 }
 0x29d   : > { %934 = vrsqrt.f32 %v674_v13  ;;  %vm683_vm10 = vmor %vm681_vm9, %vm682_vm8  ;;  %vm691_vm12 = vweird.f32 %v674_v13 }
 0x29e   : > { %v677_v15 = vmul.f32 %v933_v12, %v676_v14 }
 0x2a0   : > { %v678_v17 = vmul.f32 0.5, %v677_v15 }
 0x2a2   : > { %v679_v18 = vsub.f32 1.5, %v678_v17 }
 0x2a3   : > { %v935_v19 = vpop.eup %934 }
 0x2a4   : > { %v680_v20 = vmul.f32 %v933_v12, %v679_v18  ;;  %v686_v21 = vmul.f32 %v935_v19, %v674_v13  ;;  %vm692_vm11 = vweird.f32 %v935_v19 }
 0x2a5   : > { %vm693_vm13 = vmor %vm691_vm12, %vm692_vm11 }
 0x2a6   : > { %v684_v22 = vsel %vm683_vm10, %v933_v12, %v680_v20  ;;  %v687_v23 = vmul.f32 %v935_v19, %v686_v21 }
 0x2a7   : > { %v1241_v24 = vmul.f32 %v684_v22, %v661_v63 }
 0x2a8   : > { %v688_v25 = vmul.f32 0.5, %v687_v23 }
 0x2a9   : > { %v1244_v26 = vmul.f32 0.70710677, %v1241_v24  ;;  %v697_v22 = vmul.f32 0.5, %v1241_v24 }
 0x2aa   : > { %v689_v27 = vsub.f32 1.5, %v688_v25 }
 0x2ab   : > { %v701_v28 = vand.u32 2147483647, %v1244_v26  ;;  %vm767_vm6 = vcmp.ge.f32.partialorder %v1244_v26, 0.0 }
 0x2ac   : > { %v690_v29 = vmul.f32 %v935_v19, %v689_v27 }
 0x2ad   : > { %v703_v30 = vmul.f32 0.3275911, %v701_v28  ;;  %v755_v16 = vsub.f32 0.0, %v701_v28 }
 0x2ae   : > { %v694_v31 = vsel %vm693_vm13, %v935_v19, %v690_v29 }
 0x2af   : > { %v705_v32 = vadd.f32 1.0, %v703_v30  ;;  %v1247_v33 = vmul.f32 %v694_v31, %v662_v4  ;;  %v757_v54 = vmul.f32 %v755_v16, %v701_v28 }
 0x2b1   : > { %936 = vrcp.f32 %v705_v32  ;;  %v1250_v34 = vmul.f32 0.70710677, %v1247_v33  ;;  %v718_v40 = vand.u32 2147483648, %v705_v32  ;;  %v716_v42 = vand.u32 2147483647, %v705_v32 }
 0x2b2   : > { %vm712_vm15 = vweird.f32 %v705_v32  ;;  %v759_v61 = vmul.f32 1.442695, %v757_v54 }
 0x2b3   : > { %v702_v35 = vand.u32 2147483647, %v1250_v34  ;;  %v719_v44 = vor.u32 1.1754944e-38, %v718_v40  ;;  %vm717_vm1 = vcmp.eq.f32.partialorder %v716_v42, 8.507059e+37  ;;  %vm768_vm8 = vcmp.ge.f32.partialorder %v1250_v34, 0.0 }
 0x2b5   : > { %v704_v36 = vmul.f32 0.3275911, %v702_v35  ;;  %v756_v1 = vsub.f32 0.0, %v702_v35 }
 0x2b7   : > { %v937_v50 = vpop.eup %936  ;;  %v706_v38 = vadd.f32 1.0, %v704_v36  ;;  %v758_v6 = vmul.f32 %v756_v1, %v702_v35  ;;  %v698_v35 = vmul.f32 0.5, %v1247_v33 }
 0x2b8   : > { %v708_v37 = vmul.f32 %v937_v50, %v705_v32  ;;  %vm713_vm14 = vweird.f32 %v937_v50 }
 0x2b9   : > { %938 = vrcp.f32 %v706_v38  ;;  %vm714_vm0 = vmor %vm712_vm15, %vm713_vm14  ;;  %v733_v53 = vand.u32 2147483648, %v706_v38  ;;  %v731_v56 = vand.u32 2147483647, %v706_v38  ;;  %vm727_vm3 = vweird.f32 %v706_v38 }
 0x2ba   : > { %v709_v39 = vsub.f32 1.0, %v708_v37  ;;  %940 = vpow2.f32 %v759_v61  ;;  %v761_v11 = vmul.f32 1.442695, %v758_v6 }
 0x2bb   : > { %v734_v60 = vor.u32 1.1754944e-38, %v733_v53  ;;  %vm732_vm5 = vcmp.eq.f32.partialorder %v731_v56, 8.507059e+37 }
 0x2bc   : > { %v710_v41 = vmul.f32 %v937_v50, %v709_v39  ;;  %942 = vpow2.f32 %v761_v11 }
 0x2be   : > { %v711_v43 = vadd.f32 %v937_v50, %v710_v41 }
 0x2bf   : > { %v939_v45 = vpop.eup %938 }
 0x2c0   : > { %v715_v46 = vsel %vm714_vm0, %v937_v50, %v711_v43  ;;  %v723_v48 = vmul.f32 %v939_v45, %v706_v38  ;;  %vm728_vm2 = vweird.f32 %v939_v45  ;;  %v941_v12 = vpop.eup %940 }
 0x2c1   : > { %v720_v47 = vsel %vm717_vm1, %v719_v44, %v715_v46  ;;  %vm729_vm4 = vmor %vm727_vm3, %vm728_vm2 }
 0x2c2   : > { %v737_v49 = vmul.f32 1.0614054, %v720_v47  ;;  %v724_v51 = vsub.f32 1.0, %v723_v48  ;;  %v943_v27 = vpop.eup %942 }
 0x2c4   : > { %v739_v52 = vadd.f32 -1.4531521, %v737_v49  ;;  %v725_v55 = vmul.f32 %v939_v45, %v724_v51 }
 0x2c6   : > { %v741_v57 = vmul.f32 %v739_v52, %v720_v47  ;;  %v726_v58 = vadd.f32 %v939_v45, %v725_v55 }
 0x2c8   : > { %v743_v59 = vadd.f32 1.4214138, %v741_v57  ;;  %v730_v62 = vsel %vm729_vm4, %v939_v45, %v726_v58 }
 0x2c9   : > { %v735_v0 = vsel %vm732_vm5, %v734_v60, %v730_v62 }
 0x2ca   : > { %v745_v63 = vmul.f32 %v743_v59, %v720_v47  ;;  %v738_v2 = vmul.f32 1.0614054, %v735_v0 }
 0x2cc   : > { %v747_v3 = vadd.f32 -0.28449672, %v745_v63  ;;  %v740_v4 = vadd.f32 -1.4531521, %v738_v2 }
 0x2ce   : > { %v749_v5 = vmul.f32 %v747_v3, %v720_v47  ;;  %v742_v7 = vmul.f32 %v740_v4, %v735_v0 }
 0x2d0   : > { %v751_v8 = vadd.f32 0.2548296, %v749_v5  ;;  %v744_v9 = vadd.f32 1.4214138, %v742_v7 }
 0x2d2   : > { %v753_v10 = vmul.f32 %v751_v8, %v720_v47  ;;  %v746_v13 = vmul.f32 %v744_v9, %v735_v0 }
 0x2d4   : > { %v763_v14 = vmul.f32 %v941_v12, %v753_v10  ;;  %v748_v15 = vadd.f32 -0.28449672, %v746_v13 }
 0x2d6   : > { %v765_v17 = vsub.f32 1.0, %v763_v14  ;;  %v750_v18 = vmul.f32 %v748_v15, %v735_v0 }
 0x2d8   : > { %v769_v19 = vsub.f32 0.0, %v765_v17  ;;  %v752_v20 = vadd.f32 0.2548296, %v750_v18 }
 0x2da   : > { %v771_v21 = vsel %vm767_vm6, %v765_v17, %v769_v19  ;;  %v754_v25 = vmul.f32 %v752_v20, %v735_v0 }
 0x2db   : > { %v773_v23 = vadd.f32 1.0, %v771_v21 }
 0x2dc   : > { %v764_v29 = vmul.f32 %v943_v27, %v754_v25 }
 0x2dd   : > { %v775_v28 = vmul.f32 %v773_v23, %v697_v22 }
 0x2de   : > { %v766_v31 = vsub.f32 1.0, %v764_v29 }
 0x2df   : > { %v777_v30 = vpack.c.bf16 %v775_v28, %v775_v28 }
 0x2e0   : > { %v770_v32 = vsub.f32 0.0, %v766_v31 }
 0x2e1   : > { %780 = vst.msk [vmem:[%s143_s12] sm:$0xf] %vm779_vm7, %v777_v30 }
 0x2e2   : > { %v772_v26 = vsel %vm768_vm8, %v766_v31, %v770_v32 }
 0x2e3   : > { %v774_v24 = vadd.f32 1.0, %v772_v26 }
 0x2e5   : > { %v776_v36 = vmul.f32 %v774_v24, %v698_v35 }
 0x2e7   : > { %v778_v50 = vpack.c.bf16 %v776_v36, %v776_v36 }
 0x2e9   : > { %781 = vst.msk [vmem:[%s143_s12 + $0x4] sm:$0xf] %vm779_vm7, %v778_v50 }
 0x2ea PF: > { %s12_s9 = sadd.s32 1, %s950_s9  }
 0x2eb   : > { %p9_p4 = scmp.ge.s32.totalorder %s12_s9, 4  }
 0x2ed   :  { %11 = sbr.rel (!%p9_p4) target bundleno = 1 (0x1), region = 58 }

// kernel: unet_forward.9
= control target key start
LH: loop header
LB: loop body
LE: loop exit
PB: predicated region body
PF: predicated region fallthrough
CT: control target
= control target key end

     0   :  { %s1362_s9 = smov 0   ;;  %s1685_s0 = inlined_call_operand.vmem [shape: bf16[2,24,256], index: 0, kind: input, shape index: {}]   ;;  %s1686_s1 = inlined_call_operand.vmem [shape: bf16[8,216], index: 1, kind: input, shape index: {}]   ;;  %s1687_s2 = inlined_call_operand.vmem [shape: bf16[2,8,256], index: 2, kind: output, shape index: {}]  }
   0x1 LB: > { %s1067_s10 = sadd.s32 4294967295, %s1335_s9   ;;  %p1071_p0 = scmp.ge.s32.totalorder %s1335_s9, 1  ;;  %s1335_s9 = sphi %s1362_s9, %s12_s9  }
   0x2   : > { %p112_p1 = scmp.lt.s32.totalorder %s1335_s9, 3 }
   0x4   : > { %p113_p2 = pnand %p1071_p0, %p112_p1 }
   0x5   : > { %p134_p3 = scmp.lt.s32.totalorder (!%p113_p2), %s1067_s10, 1  ;;  %s1337_s15 = smov (!%p113_p2), 111  }
   0x6   : > { %116 = sbr.rel (%p113_p2) target bundleno = 700 (0x2bc), region = 28  ;;  %s1338_s16 = smov (!%p113_p2), 1  }
   0x7   : > { %s1339_s17 = smov (!%p113_p2), 127   ;;  %s1340_s18 = smov (!%p113_p2), 15  }
   0x8   : > { %s1342_s19 = smov (!%p113_p2), 112   ;;  %s1343_s20 = smov (!%p113_p2), 16  }
   0x9   : > { %s1344_s21 = smov (!%p113_p2), 113   ;;  %s1345_s22 = smov (!%p113_p2), 17  }
   0xb   : > { %s1709_s10 = smov (!%p134_p3, %s1067_s10), 1  ;;  %v1341_v17 = vmov 0.0   ;;  %v226_v21 = vlaneseq  ;;  %vm551_vm0 = vcmask 1039360   ;;  %vm728_vm1 = vcmask 908288  }
   0xc   : > { %s1140_s11 = smul.u32 24, %s1709_s10  ;;  %vm1346_vm3 = vmmov 1   ;;  %vm846_vm5 = vcmask 1043456   ;;  %vm478_vm6 = vcmask 7168   ;;  %vm417_vm11 = vcmask 121856   ;;  %s1079_s25 = sshll.u32 %s1709_s10, 3 }
   0xd   : > { %v1420_v22 = vand.u32 127, %v226_v21  ;;  %s143_s28 = scalar_lea.vmem %s1687_s2, %s1079_s25 }
   0xe   : > { %s138_s14 = scalar_lea.vmem %s1685_s0, %s1140_s11 }
   0xf   : > { %v159_v0 = vld [vmem:[%s138_s14 + $0x10] sm:$0xff]  ;;  %v157_v1 = vld [vmem:[%s138_s14] sm:$0xff]  ;;  %v158_v5 = vld [vmem:[%s138_s14 + $0x8] sm:$0xff]  ;;  %v228_v24 = vadd.s32 128, %v1420_v22  ;;  %v233_v36 = vand.u32 15, %v1420_v22 }
  0x10   : > { %v1376_v2 = vunpack.c.h.bf16 %v159_v0  ;;  %v1378_v3 = vunpack.c.l.bf16 %v159_v0  ;;  %v1380_v4 = vunpack.c.h.bf16 %v157_v1  ;;  %v1387_v9 = vunpack.c.l.bf16 %v158_v5 }
  0x11   : > { %v1389_v10 = vunpack.c.h.bf16 %v158_v5  ;;  %v1392_v11 = vunpack.c.l.bf16 %v157_v1  ;;  %v240_v25 = vand.u32 15, %v228_v24  ;;  %vm1454_vm7 = vcmp.ne.s32.totalorder %v233_v36, 15 }
  0x12   : > { %v1169_v6 = vpack.i.bf16 0.0, %v1376_v2  ;;  %v1179_v7 = vpack.i.bf16 %v1376_v2, %v1378_v3  ;;  %v1159_v8 = vpack.i.bf16 0.0, %v1380_v4  ;;  %v1259_v18 = vpack.i.bf16 %v1378_v3, %v1387_v9  ;;  %vm1080_vm9 = vmpackc.low %vm1454_vm7, %vm1346_vm3 }
  0x13   : > { %v1174_v12 = vpack.i.bf16 %v1389_v10, %v1387_v9  ;;  %v1164_v13 = vpack.i.bf16 %v1389_v10, %v1392_v11  ;;  %v1199_v14 = vpack.i.bf16 0.0, %v1389_v10  ;;  %v1189_v15 = vpack.i.bf16 %v1380_v4, %v1392_v11 }
  0x14   : > { %1170 = vrot.lane.b32.xlu1 %v1169_v6, %s1337_s15  ;;  %1180 = vrot.lane.b32.xlu2 %v1179_v7, %s1338_s16  ;;  %v1204_v16 = vpack.i.bf16 %v1392_v11, %v1378_v3  ;;  %vm1432_vm2 = vcmp.ne.s32.totalorder %v240_v25, 15  ;;  %v821_v42 = vpack.c.bf16 %v1389_v10, %v1380_v4  ;;  %vm1460_vm8 = vcmp.ne.s32.totalorder %v240_v25, 0 }
  0x15   : > { %1160 = vrot.lane.b32.xlu0 %v1159_v8, %s1339_s17  ;;  %vm1110_vm4 = vmpackc.low %vm1432_vm2, %vm1346_vm3  ;;  %v820_v62 = vpack.c.bf16 %v1387_v9, %v1392_v11  ;;  %vm1514_vm14 = vcmp.ne.s32.totalorder %v233_v36, 0 }
  0x16   : > { %vm1474_vm10 = vmpackc.low %vm1460_vm8, %vm1460_vm8 }
  0x17   : > { %vm1499_vm12 = vmpackc.low %vm1432_vm2, %vm1432_vm2 }
  0x18   : > { %vm1116_vm13 = vmpackc.low %vm1460_vm8, %vm1432_vm2 }
  0x19   : > { %vm1524_vm15 = vmpackc.low %vm1514_vm14, %vm1514_vm14 }
  0x1c   : > { %1185 = vrot.lane.b32.xlu2 %v1179_v7, %s1340_s18  ;;  %1175 = vrot.lane.b32.xlu1 %v1174_v12, %s1338_s16 }
  0x1d   : > { %1165 = vrot.lane.b32.xlu0 %v1164_v13, %s1339_s17 }
  0x24   : > { %1200 = vrot.lane.b32.xlu2 %v1199_v14, %s1337_s15  ;;  %1195 = vrot.lane.b32.xlu1 %v1159_v8, %s1337_s15 }
  0x25   : > { %1190 = vrot.lane.b32.xlu0 %v1189_v15, %s1338_s16 }
  0x2c   : > { %1210 = vrot.lane.b32.xlu1 %v1341_v17, %s1338_s16  ;;  %1215 = vrot.lane.b32.xlu2 %v1189_v15, %s1340_s18 }
  0x2d   : > { %1205 = vrot.lane.b32.xlu0 %v1204_v16, %s1337_s15 }
  0x34   : > { %1225 = vrot.lane.b32.xlu1 %v1199_v14, %s1342_s19  ;;  %1230 = vrot.lane.b32.xlu2 %v1169_v6, %s1342_s19 }
  0x35   : > { %1220 = vrot.lane.b32.xlu0 %v1174_v12, %s1340_s18 }
  0x3c   : > { %460 = vrot.lane.b32.xlu1 %v1341_v17, %s1338_s16  ;;  %716 = vrot.lane.b32.xlu2 %v1387_v9, %s1337_s15 }
  0x3d   : > { %1235 = vrot.lane.b32.xlu0 %v1341_v17, %s1340_s18 }
  0x44   : > { %1245 = vrot.lane.b32.xlu1 %v1179_v7, %s1343_s20  ;;  %1250 = vrot.lane.b32.xlu2 %v1169_v6, %s1344_s21 }
  0x45   : > { %1240 = vrot.lane.b32.xlu0 %v1174_v12, %s1343_s20 }
  0x4c   : > { %405 = vrot.lane.b32.xlu1 %v1341_v17, %s1340_s18  ;;  %1260 = vrot.lane.b32.xlu2 %v1259_v18, %s1342_s19 }
  0x4d   : > { %1255 = vrot.lane.b32.xlu0 %v1159_v8, %s1342_s19 }
  0x54   : > { %1270 = vrot.lane.b32.xlu1 %v1189_v15, %s1343_s20  ;;  %1275 = vrot.lane.b32.xlu2 %v1159_v8, %s1344_s21 }
  0x55   : > { %1265 = vrot.lane.b32.xlu0 %v1179_v7, %s1345_s22 }
  0x5c   : > { %1285 = vrot.lane.b32.xlu1 %v1341_v17, %s1343_s20  ;;  %1290 = vrot.lane.b32.xlu2 %v1204_v16, %s1344_s21 }
  0x5d   : > { %1280 = vrot.lane.b32.xlu0 %v1199_v14, %s1344_s21 }
  0x64   : > { %1295 = vrot.lane.b32.xlu1 %v1189_v15, %s1345_s22  ;;  %1300 = vrot.lane.b32.xlu2 %v1174_v12, %s1345_s22 }
  0x65   : > { %655 = vrot.lane.b32.xlu0 %v1392_v11, %s1342_s19 }
  0x6c   : > { %549 = vrot.lane.b32.xlu1 %v1341_v17, %s1339_s17  ;;  %1310 = vrot.lane.b32.xlu2 %v1341_v17, %s1345_s22 }
  0x6d   : > { %1305 = vrot.lane.b32.xlu0 %v1376_v2, %s1339_s17 }
  0x6e   : > { %v1415_v19 = vpop.permute.xlu2 %1180 }
  0x6f   : > { %v1183_v38 = vunpack.i.h.bf16 %v1415_v19  ;;  %v1182_v39 = vunpack.i.l.bf16 %v1415_v19 }
  0x71   : > { %v484_v51 = vsel %vm478_vm6, %v1182_v39, %v1183_v38 }
  0x74   : > { %600 = vrot.lane.b32.xlu1 %v1387_v9, %s1344_s21  ;;  %285 = vrot.lane.b32.xlu2 %v1341_v17, %s1345_s22 }
  0x75   : > { %340 = vrot.lane.b32.xlu0 %v1341_v17, %s1343_s20 }
  0x76   : > { %v1418_v20 = vpop.permute.xlu2 %1185 }
  0x77   : > { %v1188_v60 = vunpack.i.h.bf16 %v1418_v20  ;;  %v1187_v61 = vunpack.i.l.bf16 %v1418_v20 }
  0x79   : > { %v423_v7 = vsel %vm417_vm11, %v1187_v61, %v1188_v60 }
  0x7d   : > { %1315 = vrot.lane.b32.xlu0 %v1259_v18, %s1339_s17 }
  0x7e   : > { %v1423_v23 = vpop.permute.xlu2 %1200 }
  0x7f   : > { %v1203_v57 = vunpack.i.h.bf16 %v1423_v23  ;;  %v1202_v58 = vunpack.i.l.bf16 %v1423_v23 }
  0x86   : > { %v1426_v26 = vpop.permute.xlu1 %1170  ;;  %v1428_v27 = vpop.permute.xlu2 %1215 }
  0x87   : > { %v1173_v28 = vunpack.i.h.bf16 %v1426_v26  ;;  %v1172_v29 = vunpack.i.l.bf16 %v1426_v26  ;;  %v1161_v30 = vpop.permute.xlu0 %1160 }
  0x88   : > { %v1163_v32 = vunpack.i.h.bf16 %v1161_v30  ;;  %v1162_v33 = vunpack.i.l.bf16 %v1161_v30 }
  0x89   : > { %v734_v34 = vsel %vm728_vm1, %v1172_v29, %v1173_v28 }
  0x8a   : > { %v553_v35 = vsel %vm551_vm0, %v1162_v33, %v1163_v32  ;;  %v746_v37 = vsel %vm1432_vm2, %v734_v34, 0.0  ;;  %vm673_vm2 = vcmask 916480   ;;  %v1217_v34 = vunpack.i.l.bf16 %v1428_v27 }
  0x8b   : > { %v1111_v40 = vpack.c.bf16 %v553_v35, %v1376_v2  ;;  %v835_v41 = vpack.c.bf16 %v746_v37, %v746_v37 }
  0x8d   : > { %1112 = vmatpush.bf16.msk.msra.mxu2 %vm1110_vm4, %v1111_v40  ;;  %v851_v43 = vsel %vm846_vm5, %v835_v41, 0  ;;  %vm1545_vm4 = vmpackc.low %vm1454_vm7, %vm1454_vm7 }
  0x8e   : > { %v1176_v44 = vpop.permute.xlu1 %1175  ;;  %v1452_v45 = vpop.permute.xlu2 %1230  ;;  %894 = vmatpush.bf16.msra.mxu3 %v851_v43 }
  0x8f   : > { %v1178_v47 = vunpack.i.h.bf16 %v1176_v44  ;;  %v1177_v48 = vunpack.i.l.bf16 %v1176_v44  ;;  %v1458_v49 = vpop.permute.xlu0 %1165  ;;  %v1233_v21 = vunpack.i.h.bf16 %v1452_v45  ;;  %v1232_v25 = vunpack.i.l.bf16 %v1452_v45 }
  0x90   : > { %v1167_v52 = vunpack.i.l.bf16 %v1458_v49  ;;  %v1168_v15 = vunpack.i.h.bf16 %v1458_v49 }
  0x91   : > { %880 = vmatpush.bf16.msra.mxu2 %v821_v42  ;;  %v482_v53 = vsel %vm478_vm6, %v1177_v48, %v1178_v47 }
  0x92   : > { %v552_v54 = vsel %vm551_vm0, %v1167_v52, %v1162_v33  ;;  %v1114_v56 = vpack.c.bf16 %v484_v51, %v482_v53  ;;  %v1218_v33 = vunpack.i.h.bf16 %v1428_v27 }
  0x93   : > { %v1081_v59 = vpack.c.bf16 %v552_v54, %v1378_v3  ;;  %v732_v3 = vsel %vm728_vm1, %v1202_v58, %v1203_v57 }
  0x95   : > { %1082 = vmatpush.bf16.msk.msra.mxu0 %vm1080_vm9, %v1081_v59  ;;  %1115 = vmatpush.bf16.msk.msra.mxu2 %vm1474_vm10, %v1114_v56  ;;  %vm297_vm9 = vcmask 138240  }
  0x96   : > { %v1196_v63 = vpop.permute.xlu1 %1195  ;;  %v717_v0 = vpop.permute.xlu2 %716 }
  0x97   : > { %v1198_v1 = vunpack.i.h.bf16 %v1196_v63  ;;  %v1197_v2 = vunpack.i.l.bf16 %v1196_v63  ;;  %v1487_v4 = vpop.permute.xlu0 %1190  ;;  %v731_v36 = vsel %vm728_vm1, %v717_v0, %v1202_v58 }
  0x98   : > { %v1193_v5 = vunpack.i.h.bf16 %v1487_v4  ;;  %v1192_v6 = vunpack.i.l.bf16 %v1487_v4 }
  0x99   : > { %854 = vmatpush.bf16.msra.mxu0 %v820_v62  ;;  %v730_v8 = vsel %vm728_vm1, %v1197_v2, %v1198_v1 }
  0x9a   : > { %v480_v10 = vsel %vm478_vm6, %v1192_v6, %v1193_v5  ;;  %v1129_v11 = vpack.c.bf16 %v732_v3, %v730_v8 }
  0x9b   : > { %v1117_v12 = vpack.c.bf16 %v480_v10, %v423_v7 }
  0x9c   : > { %1130 = vmatpush.bf16.msk.msra.mxu3 %vm1499_vm12, %v1129_v11 }
  0x9d   : > { %1118 = vmatpush.bf16.msk.msra.mxu2 %vm1116_vm13, %v1117_v12 }
  0x9e   : > { %v1211_v13 = vpop.permute.xlu1 %1210  ;;  %v1512_v14 = vpop.permute.xlu2 %1250 }
  0x9f   : > { %v1213_v16 = vunpack.i.h.bf16 %v1211_v13  ;;  %v1212_v17 = vunpack.i.l.bf16 %v1211_v13  ;;  %v1206_v18 = vpop.permute.xlu0 %1205  ;;  %v1253_v46 = vunpack.i.h.bf16 %v1512_v14  ;;  %v1252_v12 = vunpack.i.l.bf16 %v1512_v14 }
  0xa0   : > { %v1207_v19 = vunpack.i.l.bf16 %v1206_v18  ;;  %v1208_v28 = vunpack.i.h.bf16 %v1206_v18 }
  0xa1   : > { %v481_v22 = vsel %vm478_vm6, %v1212_v17, %v1177_v48  ;;  %v483_v23 = vsel %vm478_vm6, %v1213_v16, %v1182_v39  ;;  %v679_v39 = vsel %vm673_vm2, %v1232_v25, %v1233_v21  ;;  %v419_v48 = vsel %vm417_vm11, %v1217_v34, %v1218_v33 }
  0xa2   : > { %v1084_v30 = vpack.c.bf16 %v483_v23, %v481_v22  ;;  %v733_v31 = vsel %vm728_vm1, %v1207_v19, %v1172_v29  ;;  %v729_v29 = vsel %vm728_vm1, %v1208_v28, %v1197_v2  ;;  %vm1086_vm1 = vmpackc.low %vm1514_vm14, %vm1454_vm7 }
  0xa3   : > { %v745_v32 = vsel %vm1454_vm7, %v733_v31, 0.0  ;;  %v1099_v51 = vpack.c.bf16 %v731_v36, %v729_v29  ;;  %vm1583_vm7 = vmpackc.low %vm1346_vm3, %vm1460_vm8 }
  0xa4   : > { %1085 = vmatpush.bf16.msk.msra.mxu0 %vm1524_vm15, %v1084_v30  ;;  %v834_v35 = vpack.c.bf16 %v745_v32, %v745_v32  ;;  %vm1625_vm8 = vmpackc.low %vm1346_vm3, %vm1514_vm14  ;;  %vm842_vm3 = vcmask 719872  }
  0xa6   : > { %v1226_v37 = vpop.permute.xlu1 %1225  ;;  %v1261_v38 = vpop.permute.xlu2 %1260  ;;  %v848_v26 = vsel %vm846_vm5, %v834_v35, 0  ;;  %vm358_vm5 = vcmask 130048  }
  0xa7   : > { %v1228_v40 = vunpack.i.h.bf16 %v1226_v37  ;;  %v1227_v41 = vunpack.i.l.bf16 %v1226_v37  ;;  %v1263_v42 = vunpack.i.h.bf16 %v1261_v38  ;;  %v1262_v43 = vunpack.i.l.bf16 %v1261_v38  ;;  %v1221_v44 = vpop.permute.xlu0 %1220  ;;  %868 = vmatpush.bf16.msra.mxu1 %v848_v26 }
  0xa8   : > { %v1223_v27 = vunpack.i.h.bf16 %v1221_v44  ;;  %v1222_v45 = vunpack.i.l.bf16 %v1221_v44 }
  0xa9   : > { %v676_v52 = vsel %vm673_vm2, %v1262_v43, %v1227_v41  ;;  %v678_v53 = vsel %vm673_vm2, %v1263_v42, %v1232_v25  ;;  %v677_v54 = vsel %vm673_vm2, %v1227_v41, %v1228_v40 }
  0xaa   : > { %v421_v56 = vsel %vm417_vm11, %v1222_v45, %v1223_v27  ;;  %v831_v57 = vpack.c.bf16 %v679_v39, %v677_v54  ;;  %v830_v59 = vpack.c.bf16 %v678_v53, %v676_v52 }
  0xab   : > { %1100 = vmatpush.bf16.msk.msra.mxu1 %vm1545_vm4, %v1099_v51  ;;  %v1120_v58 = vpack.c.bf16 %v421_v56, %v419_v48 }
  0xac   : > { %896 = vmatpush.bf16.msra.mxu3 %v831_v57 }
  0xad   : > { %1121 = vmatpush.bf16.msk.msra.mxu2 %vm1499_vm12, %v1120_v58 }
  0xae   : > { %v461_v60 = vpop.permute.xlu1 %460  ;;  %v1572_v13 = vpop.permute.xlu2 %1275 }
  0xaf   : > { %v1236_v62 = vpop.permute.xlu0 %1235  ;;  %870 = vmatpush.bf16.msra.mxu1 %v830_v59  ;;  %v479_v0 = vsel %vm478_vm6, %v461_v60, %v1192_v6  ;;  %vm612_vm6 = vcmask 924672   ;;  %v1278_v29 = vunpack.i.h.bf16 %v1572_v13  ;;  %v1277_v39 = vunpack.i.l.bf16 %v1572_v13  ;;  %v753_v60 = vld [vmem:[%s1686_s1] sm:$0xff] }
  0xb0   : > { %v1237_v63 = vunpack.i.l.bf16 %v1236_v62  ;;  %v1238_v11 = vunpack.i.h.bf16 %v1236_v62  ;;  %v618_v25 = vsel %vm612_vm6, %v1252_v12, %v1253_v46 }
  0xb2   : > { %v422_v1 = vsel %vm417_vm11, %v1237_v63, %v1187_v61  ;;  %v418_v17 = vsel %vm417_vm11, %v1238_v11, %v1217_v34 }
  0xb3   : > { %v1087_v2 = vpack.c.bf16 %v479_v0, %v422_v1 }
  0xb5   : > { %1088 = vmatpush.bf16.msk.msra.mxu0 %vm1086_vm1, %v1087_v2 }
  0xb6   : > { %v1246_v3 = vpop.permute.xlu1 %1245  ;;  %v1595_v35 = vpop.permute.xlu2 %1290 }
  0xb7   : > { %v1248_v5 = vunpack.i.h.bf16 %v1246_v3  ;;  %v1247_v7 = vunpack.i.l.bf16 %v1246_v3  ;;  %v1241_v8 = vpop.permute.xlu0 %1240  ;;  %v1292_v59 = vunpack.i.l.bf16 %v1595_v35  ;;  %v837_v3 = vunpack.c.l.b16 %v753_v60 }
  0xb8   : > { %v1243_v10 = vunpack.i.h.bf16 %v1241_v8  ;;  %v1242_v4 = vunpack.i.l.bf16 %v1241_v8 }
  0xb9   : > { %v364_v6 = vsel %vm358_vm5, %v1247_v7, %v1248_v5  ;;  %v617_v5 = vsel %vm612_vm6, %v1292_v59, %v1252_v12 }
  0xba   : > { %v362_v20 = vsel %vm358_vm5, %v1242_v4, %v1243_v10 }
  0xbb   : > { %v813_v61 = vpack.c.bf16 %v364_v6, %v362_v20  ;;  %v839_v20 = vpack.c.b16 %v837_v3, %v837_v3 }
  0xbd   : > { %884 = vmatpush.bf16.msra.mxu2 %v813_v61 }
  0xbe   : > { %v406_v16 = vpop.permute.xlu1 %405  ;;  %v1301_v52 = vpop.permute.xlu2 %1300 }
  0xbf   : > { %v420_v18 = vsel %vm417_vm11, %v406_v16, %v1222_v45  ;;  %v1256_v19 = vpop.permute.xlu0 %1255  ;;  %v614_v45 = vsel %vm612_vm6, %v1277_v39, %v1278_v29  ;;  %v1303_v56 = vunpack.i.h.bf16 %v1301_v52  ;;  %v1302_v57 = vunpack.i.l.bf16 %v1301_v52 }
  0xc0   : > { %v1090_v21 = vpack.c.bf16 %v420_v18, %v418_v17  ;;  %v1258_v22 = vunpack.i.h.bf16 %v1256_v19  ;;  %v1257_v23 = vunpack.i.l.bf16 %v1256_v19  ;;  %v838_v16 = vunpack.c.h.b16 %v753_v60 }
  0xc1   : > { %v301_v2 = vsel %vm297_vm9, %v1302_v57, %v1303_v56  ;;  %v1293_v19 = vunpack.i.h.bf16 %v1595_v35 }
  0xc2   : > { %1091 = vmatpush.bf16.msk.msra.mxu0 %vm1545_vm4, %v1090_v21  ;;  %v675_v14 = vsel %vm673_vm2, %v1257_v23, %v1258_v22 }
  0xc3   : > { %v1132_v30 = vpack.c.bf16 %v675_v14, %v618_v25  ;;  %v613_v49 = vsel %vm612_vm6, %v1293_v19, %v1277_v39 }
  0xc5   : > { %1133 = vmatpush.bf16.msk.msra.mxu3 %vm1583_vm7, %v1132_v30 }
  0xc6   : > { %v1589_v31 = vpop.permute.xlu1 %1270  ;;  %v1311_v61 = vpop.permute.xlu2 %1310 }
  0xc7   : > { %v1273_v32 = vunpack.i.h.bf16 %v1589_v31  ;;  %v1272_v33 = vunpack.i.l.bf16 %v1589_v31  ;;  %v1593_v34 = vpop.permute.xlu0 %1265  ;;  %v1312_v22 = vunpack.i.l.bf16 %v1311_v61  ;;  %v1313_v55 = vunpack.i.h.bf16 %v1311_v61 }
  0xc8   : > { %v1268_v50 = vunpack.i.h.bf16 %v1593_v34  ;;  %v1267_v36 = vunpack.i.l.bf16 %v1593_v34 }
  0xc9   : > { %v360_v37 = vsel %vm358_vm5, %v1272_v33, %v1273_v32 }
  0xca   : > { %v303_v38 = vsel %vm297_vm9, %v1267_v36, %v1268_v50  ;;  %v302_v35 = vsel %vm297_vm9, %v1312_v22, %v1267_v36 }
  0xcb   : > { %v1123_v26 = vpack.c.bf16 %v360_v37, %v303_v38 }
  0xcd   : > { %1124 = vmatpush.bf16.msk.msra.mxu2 %vm1583_vm7, %v1123_v26 }
  0xce   : > { %v1286_v40 = vpop.permute.xlu1 %1285  ;;  %v286_v14 = vpop.permute.xlu2 %285 }
  0xcf   : > { %v1288_v41 = vunpack.i.h.bf16 %v1286_v40  ;;  %v1287_v42 = vunpack.i.l.bf16 %v1286_v40  ;;  %v1281_v43 = vpop.permute.xlu0 %1280  ;;  %v300_v38 = vsel %vm297_vm9, %v286_v14, %v1302_v57 }
  0xd0   : > { %v1283_v44 = vunpack.i.h.bf16 %v1281_v43  ;;  %v1282_v27 = vunpack.i.l.bf16 %v1281_v43 }
  0xd1   : > { %v361_v48 = vsel %vm358_vm5, %v1287_v42, %v1242_v4  ;;  %v363_v51 = vsel %vm358_vm5, %v1288_v41, %v1247_v7 }
  0xd2   : > { %v812_v53 = vpack.c.bf16 %v363_v51, %v361_v48  ;;  %v616_v54 = vsel %vm612_vm6, %v1282_v27, %v1283_v44 }
  0xd3   : > { %v1135_v58 = vpack.c.bf16 %v616_v54, %v614_v45 }
  0xd4   : > { %858 = vmatpush.bf16.msra.mxu0 %v812_v53 }
  0xd5   : > { %1136 = vmatpush.bf16.msk.msra.mxu3 %vm1474_vm10, %v1135_v58 }
  0xd6   : > { %v1296_v62 = vpop.permute.xlu1 %1295 }
  0xd7   : > { %v1298_v63 = vunpack.i.h.bf16 %v1296_v62  ;;  %v1297_v0 = vunpack.i.l.bf16 %v1296_v62  ;;  %v656_v1 = vpop.permute.xlu0 %655 }
  0xd8   : > { %v674_v7 = vsel %vm673_vm2, %v656_v1, %v1257_v23  ;;  %v840_v23 = vpack.c.b16 %v838_v16, %v838_v16 }
  0xd9   : > { %v1102_v10 = vpack.c.bf16 %v674_v7, %v617_v5  ;;  %v299_v4 = vsel %vm297_vm9, %v1297_v0, %v1298_v63  ;;  %v298_v37 = vsel %vm297_vm9, %v1313_v55, %v1297_v0 }
  0xda   : > { %v1126_v6 = vpack.c.bf16 %v301_v2, %v299_v4  ;;  %v1096_v34 = vpack.c.bf16 %v300_v38, %v298_v37 }
  0xdb   : > { %1103 = vmatpush.bf16.msk.msra.mxu1 %vm1625_vm8, %v1102_v10 }
  0xdc   : > { %1127 = vmatpush.bf16.msk.msra.mxu2 %vm1474_vm10, %v1126_v6 }
  0xde   : > { %v550_v11 = vpop.permute.xlu1 %549 }
  0xdf   : > { %v1306_v46 = vpop.permute.xlu0 %1305  ;;  %887 = vmatmul.bf16.vlgmr.msra.gmra.mxu2 %v839_v20 }
  0xe0   : > { %v1308_v12 = vunpack.i.h.bf16 %v1306_v46  ;;  %v1307_v13 = vunpack.i.l.bf16 %v1306_v46 }
  0xe2   : > { %v555_v17 = vsel %vm551_vm0, %v1168_v15, %v1307_v13  ;;  %v557_v18 = vsel %vm551_vm0, %v1308_v12, %v550_v11 }
  0xe3   : > { %v1138_v21 = vpack.c.bf16 %v557_v18, %v555_v17 }
  0xe5   : > { %1139 = vmatpush.bf16.msk.msra.mxu3 %vm1499_vm12, %v1138_v21 }
  0xe6   : > { %v601_v25 = vpop.permute.xlu1 %600 }
  0xe7   : > { %v615_v28 = vsel %vm612_vm6, %v601_v25, %v1282_v27  ;;  %v341_v30 = vpop.permute.xlu0 %340 }
  0xe8   : > { %v1105_v32 = vpack.c.bf16 %v615_v28, %v613_v49  ;;  %v359_v50 = vsel %vm358_vm5, %v341_v30, %v1272_v33  ;;  %1076 = vmatmul.msk.bf16.vlgmr.msra.gmra.mxu3 %vm842_vm3, %v840_v23 }
  0xe9   : > { %v1093_v9 = vpack.c.bf16 %v359_v50, %v302_v35 }
  0xea   : > { %1106 = vmatpush.bf16.msk.msra.mxu1 %vm1524_vm15, %v1105_v32 }
  0xeb   : > { %1094 = vmatpush.bf16.msk.msra.mxu0 %vm1625_vm8, %v1093_v9 }
  0xef   : > { %v1316_v26 = vpop.permute.xlu0 %1315  ;;  %1097 = vmatpush.bf16.msk.msra.mxu0 %vm1524_vm15, %v1096_v34 }
  0xf0   : > { %v1318_v31 = vunpack.i.h.bf16 %v1316_v26  ;;  %v1317_v33 = vunpack.i.l.bf16 %v1316_v26 }
  0xf2   : > { %861 = vmatmul.bf16.vlgmr.msra.gmra.mxu0 %v839_v20  ;;  %v554_v36 = vsel %vm551_vm0, %v1317_v33, %v1168_v15  ;;  %v556_v29 = vsel %vm551_vm0, %v1318_v31, %v1308_v12 }
  0xf3   : > { %v1108_v39 = vpack.c.bf16 %v556_v29, %v554_v36 }
  0xf5   : > { %1109 = vmatpush.bf16.msk.msra.mxu1 %vm1545_vm4, %v1108_v39 }
  0xf8   : > { %1075 = vmatmul.msk.bf16.vlgmr.msra.gmra.mxu1 %vm842_vm3, %v840_v23 }
 0x162   : > { %v888_v40 = vpop.f32.mrf.mxu2 }
 0x16a   : > { %v890_v41 = vpop.f32.mrf.mxu2 }
 0x16b   : > { %v901_v42 = vpop.f32.mrf.mxu3 }
 0x16c   : > { %v902_v24 = vadd.f32 %v901_v42, %v888_v40 }
 0x16f   : > { %v862_v43 = vpop.f32.mrf.mxu0 }
 0x173   : > { %v903_v44 = vpop.f32.mrf.mxu3 }
 0x175   : > { %v875_v27 = vpop.f32.mrf.mxu1 }
 0x176   : > { %v876_v45 = vadd.f32 %v875_v27, %v862_v43 }
 0x177   : > { %v864_v48 = vpop.f32.mrf.mxu0 }
 0x178   : > { %v905_v51 = vadd.f32 %v902_v24, %v876_v45 }
 0x17a   : > { %906 = vadd.xlane.f32.xlu1 %v905_v51 }
 0x17d   : > { %v877_v52 = vpop.f32.mrf.mxu1 }
 0x1ed   : > { %v907_v53 = vpop.xlane.xlu1 %906 }
 0x1ee   : > { %v908_v54 = vmul.f32 0.00390625, %v907_v53 }
 0x1f0   : > { %v909_v56 = vsub.f32 %v876_v45, %v908_v54  ;;  %v910_v57 = vsub.f32 %v902_v24, %v908_v54 }
 0x1f2   : > { %v911_v47 = vmul.f32 %v909_v56, %v909_v56  ;;  %v912_v58 = vmul.f32 %v910_v57, %v910_v57 }
 0x1f4   : > { %v913_v59 = vadd.f32 %v912_v58, %v911_v47 }
 0x1f6   : > { %914 = vadd.xlane.f32.xlu2 %v913_v59 }
 0x269   : > { %v915_v60 = vpop.xlane.xlu2 %914 }
 0x26a   : > { %v916_v62 = vmul.f32 0.00390625, %v915_v60 }
 0x26c   : > { %v917_v63 = vadd.f32 1e-05, %v916_v62 }
 0x26e   : > { %1319 = vrsqrt.f32 %v917_v63  ;;  %vm924_vm10 = vweird.f32 %v917_v63 }
 0x274   : > { %v1320_v0 = vpop.eup %1319 }
 0x275   : > { %v919_v1 = vmul.f32 %v1320_v0, %v917_v63  ;;  %vm925_vm0 = vweird.f32 %v1320_v0 }
 0x276   : > { %vm926_vm11 = vmor %vm924_vm10, %vm925_vm0 }
 0x277   : > { %v920_v2 = vmul.f32 %v1320_v0, %v919_v1 }
 0x279   : > { %v921_v3 = vmul.f32 0.5, %v920_v2 }
 0x27b   : > { %v922_v5 = vsub.f32 1.5, %v921_v3 }
 0x27d   : > { %v923_v7 = vmul.f32 %v1320_v0, %v922_v5 }
 0x27f   : > { %v927_v8 = vsel %vm926_vm11, %v1320_v0, %v923_v7 }
 0x280   : > { %v1662_v10 = vmul.f32 %v927_v8, %v909_v56  ;;  %v1664_v4 = vmul.f32 %v927_v8, %v910_v57 }
 0x282   : > { %v1667_v6 = vmul.f32 0.70710677, %v1662_v10  ;;  %v1670_v20 = vmul.f32 0.70710677, %v1664_v4  ;;  %v930_v8 = vmul.f32 0.5, %v1662_v10 }
 0x284   : > { %v934_v11 = vand.u32 2147483647, %v1667_v6  ;;  %v935_v61 = vand.u32 2147483647, %v1670_v20  ;;  %vm1000_vm6 = vcmp.ge.f32.partialorder %v1667_v6, 0.0  ;;  %vm1001_vm7 = vcmp.ge.f32.partialorder %v1670_v20, 0.0 }
 0x286   : > { %v936_v46 = vmul.f32 0.3275911, %v934_v11  ;;  %v937_v15 = vmul.f32 0.3275911, %v935_v61  ;;  %v988_v34 = vsub.f32 0.0, %v934_v11  ;;  %v989_v33 = vsub.f32 0.0, %v935_v61 }
 0x288   : > { %v938_v12 = vadd.f32 1.0, %v936_v46  ;;  %v939_v13 = vadd.f32 1.0, %v937_v15  ;;  %v990_v40 = vmul.f32 %v988_v34, %v934_v11  ;;  %v991_v42 = vmul.f32 %v989_v33, %v935_v61 }
 0x289   : > { %v931_v46 = vmul.f32 0.5, %v1664_v4 }
 0x28a   : > { %1321 = vrcp.f32 %v938_v12  ;;  %v951_v22 = vand.u32 2147483648, %v938_v12  ;;  %v949_v25 = vand.u32 2147483647, %v938_v12  ;;  %v966_v14 = vand.u32 2147483648, %v939_v13 }
 0x28b   : > { %1323 = vrcp.f32 %v939_v13  ;;  %v964_v28 = vand.u32 2147483647, %v939_v13  ;;  %vm945_vm14 = vweird.f32 %v938_v12  ;;  %vm960_vm2 = vweird.f32 %v939_v13 }
 0x28c   : > { %v952_v32 = vor.u32 1.1754944e-38, %v951_v22  ;;  %vm950_vm4 = vcmp.eq.f32.partialorder %v949_v25, 8.507059e+37  ;;  %v967_v9 = vor.u32 1.1754944e-38, %v966_v14  ;;  %v992_v27 = vmul.f32 1.442695, %v990_v40 }
 0x28d   : > { %vm965_vm5 = vcmp.eq.f32.partialorder %v964_v28, 8.507059e+37  ;;  %v994_v48 = vmul.f32 1.442695, %v991_v42 }
 0x28e   : > { %1325 = vpow2.f32 %v992_v27 }
 0x28f   : > { %1327 = vpow2.f32 %v994_v48 }
 0x290   : > { %v1322_v16 = vpop.eup %1321 }
 0x291   : > { %v1324_v17 = vpop.eup %1323  ;;  %v941_v18 = vmul.f32 %v1322_v16, %v938_v12  ;;  %vm946_vm12 = vweird.f32 %v1322_v16 }
 0x292   : > { %v956_v19 = vmul.f32 %v1324_v17, %v939_v13  ;;  %vm961_vm13 = vweird.f32 %v1324_v17  ;;  %vm947_vm15 = vmor %vm945_vm14, %vm946_vm12 }
 0x293   : > { %v942_v21 = vsub.f32 1.0, %v941_v18  ;;  %vm962_vm1 = vmor %vm960_vm2, %vm961_vm13 }
 0x294   : > { %v957_v23 = vsub.f32 1.0, %v956_v19  ;;  %v1326_v59 = vpop.eup %1325 }
 0x295   : > { %v943_v55 = vmul.f32 %v1322_v16, %v942_v21  ;;  %v1328_v62 = vpop.eup %1327 }
 0x296   : > { %v958_v49 = vmul.f32 %v1324_v17, %v957_v23 }
 0x297   : > { %v944_v30 = vadd.f32 %v1322_v16, %v943_v55 }
 0x298   : > { %v959_v35 = vadd.f32 %v1324_v17, %v958_v49 }
 0x299   : > { %v948_v50 = vsel %vm947_vm15, %v1322_v16, %v944_v30 }
 0x29a   : > { %v953_v37 = vsel %vm950_vm4, %v952_v32, %v948_v50  ;;  %v963_v38 = vsel %vm962_vm1, %v1324_v17, %v959_v35 }
 0x29b   : > { %v968_v26 = vsel %vm965_vm5, %v967_v9, %v963_v38  ;;  %v970_v31 = vmul.f32 1.0614054, %v953_v37 }
 0x29c   : > { %v971_v36 = vmul.f32 1.0614054, %v968_v26 }
 0x29d   : > { %v972_v29 = vadd.f32 -1.4531521, %v970_v31 }
 0x29e   : > { %v973_v39 = vadd.f32 -1.4531521, %v971_v36 }
 0x29f   : > { %v974_v41 = vmul.f32 %v972_v29, %v953_v37 }
 0x2a0   : > { %v975_v43 = vmul.f32 %v973_v39, %v968_v26 }
 0x2a1   : > { %v976_v44 = vadd.f32 1.4214138, %v974_v41 }
 0x2a2   : > { %v977_v24 = vadd.f32 1.4214138, %v975_v43 }
 0x2a3   : > { %v978_v45 = vmul.f32 %v976_v44, %v953_v37 }
 0x2a4   : > { %v979_v51 = vmul.f32 %v977_v24, %v968_v26 }
 0x2a5   : > { %v980_v52 = vadd.f32 -0.28449672, %v978_v45 }
 0x2a6   : > { %v981_v53 = vadd.f32 -0.28449672, %v979_v51 }
 0x2a7   : > { %v982_v54 = vmul.f32 %v980_v52, %v953_v37 }
 0x2a8   : > { %v983_v56 = vmul.f32 %v981_v53, %v968_v26 }
 0x2a9   : > { %v984_v57 = vadd.f32 0.2548296, %v982_v54 }
 0x2aa   : > { %v985_v47 = vadd.f32 0.2548296, %v983_v56 }
 0x2ab   : > { %v986_v58 = vmul.f32 %v984_v57, %v953_v37 }
 0x2ac   : > { %v987_v60 = vmul.f32 %v985_v47, %v968_v26 }
 0x2ad   : > { %v996_v63 = vmul.f32 %v1326_v59, %v986_v58 }
 0x2ae   : > { %v997_v0 = vmul.f32 %v1328_v62, %v987_v60 }
 0x2af   : > { %v998_v1 = vsub.f32 1.0, %v996_v63 }
 0x2b0   : > { %v999_v2 = vsub.f32 1.0, %v997_v0 }
 0x2b1   : > { %v1002_v3 = vsub.f32 0.0, %v998_v1 }
 0x2b2   : > { %v1003_v5 = vsub.f32 0.0, %v999_v2 }
 0x2b3   : > { %v1004_v7 = vsel %vm1000_vm6, %v998_v1, %v1002_v3 }
 0x2b4   : > { %v1005_v11 = vsel %vm1001_vm7, %v999_v2, %v1003_v5  ;;  %v1006_v61 = vadd.f32 1.0, %v1004_v7 }
 0x2b5   : > { %v1007_v15 = vadd.f32 1.0, %v1005_v11 }
 0x2b6   : > { %v1008_v12 = vmul.f32 %v1006_v61, %v930_v8 }
 0x2b7   : > { %v1009_v13 = vmul.f32 %v1007_v15, %v931_v46 }
 0x2b9   : > { %v1010_v16 = vpack.c.bf16 %v1009_v13, %v1008_v12 }
 0x2bb   : > { %1011 = vst [vmem:[%s143_s28] sm:$0xff] %v1010_v16 }
 0x2bc PF: > { %s12_s9 = sadd.s32 1, %s1335_s9  }
 0x2bd   : > { %p9_p4 = scmp.ge.s32.totalorder %s12_s9, 4  }
 0x2bf   :  { %11 = sbr.rel (!%p9_p4) target bundleno = 1 (0x1), region = 58 }

</bundles_post_ra>
